<compile_context>
chip_gen: v7x
topology: tpu7x:2x2x1
jax: 0.10.0
libtpu: 0.0.40
codegen_flags: <defaults>
</compile_context>

<pallas_src>
import functools

import jax
import jax.numpy as jnp
from jax.experimental import pallas as pl
from jax.experimental.pallas import tpu as pltpu

C = 512                                   # Re-ID feature channels (stacker2_bn = BatchNorm2d(512))
FINAL_CFG = [1024, 512, 256, 128, 64, 1]  # add_final cfg
H1 = FINAL_CFG[1]                         # 512
LANE = 128                                # TPU lane width; narrow tail channels padded to this
BN_EPS = 1e-5


# ------------------------------- Pallas kernels -------------------------------
def sst_prep_kernel(pre_ref, nxt_ref, bn_s_ref, bn_b_ref,
                    w1p_ref, w1n_ref, s1_ref, t1_ref,
                    pre_proj_ref, nxt_proj_ref):
    """Shared BatchNorm (stacker2_bn, eval) + split layer-1 projections, computed once.

    conv1(concat(pre, nxt)) == pre @ W1_pre + nxt @ W1_nxt + b1, and the layer-1
    BatchNorm distributes as  s1*(a + b + b1) + t1 == (s1*a) + (s1*b + (s1*b1 + t1)),
    so the main kernel only needs a broadcast-add + ReLU for layer 1.
    (s1*b1 + t1 is folded into t1 at init time.)
    """
    pre_bn = (pre_ref[...] * bn_s_ref[...] + bn_b_ref[...]).astype(jnp.bfloat16)
    nxt_bn = (nxt_ref[...] * bn_s_ref[...] + bn_b_ref[...]).astype(jnp.bfloat16)
    s1 = s1_ref[...]
    pre_proj_ref[...] = s1 * jnp.dot(pre_bn, w1p_ref[...],
                                     preferred_element_type=jnp.float32)
    nxt_proj_ref[...] = (s1 * jnp.dot(nxt_bn, w1n_ref[...],
                                      preferred_element_type=jnp.float32)
                         + t1_ref[...])


def sst_pair_kernel(pre_proj_ref, nxt_proj_ref,
                    w2_ref, s2_ref, t2_ref,
                    w3_ref, s3_ref, t3_ref,
                    w4_ref, b4_ref,
                    w5_ref, b5_ref,
                    out_ref):
    """Row-tiled pairwise head: grid step i handles BLOCK_PRE pre-objects x all M
    next-objects = BLOCK_PRE*M rows of the flattened M*M association problem."""
    bp, h1w = pre_proj_ref.shape
    m = nxt_proj_ref.shape[0]
    rows = bp * m

    # ---- layer 1 (conv 1024->512 + BN + ReLU) via broadcast-add of projections ----
    h1 = pre_proj_ref[...][:, None, :] + nxt_proj_ref[...][None, :, :]   # (bp, m, 512) f32
    h = jnp.maximum(h1.reshape(rows, h1w), 0.0).astype(jnp.bfloat16)     # tile-aligned collapse

    # ---- layers 2..3: 1x1 conv + BN + ReLU (conv bias folded into BN offset) ----
    h = jnp.dot(h, w2_ref[...], preferred_element_type=jnp.float32)
    h = jnp.maximum(h * s2_ref[...] + t2_ref[...], 0.0).astype(jnp.bfloat16)
    h = jnp.dot(h, w3_ref[...], preferred_element_type=jnp.float32)
    h = jnp.maximum(h * s3_ref[...] + t3_ref[...], 0.0).astype(jnp.bfloat16)

    # ---- layer 4: 1x1 conv + ReLU (64 out-channels zero-padded to 128 lanes) ----
    h = jnp.dot(h, w4_ref[...], preferred_element_type=jnp.float32) + b4_ref[...]
    h = jnp.maximum(h, 0.0)                                              # (rows, 128) f32

    # ---- layer 5: 1x1 conv 64->1 + ReLU as a VPU dot + XLU lane reduction ----
    logit = jnp.sum(h * w5_ref[...], axis=-1, keepdims=True) + b5_ref[...]
    out_ref[...] = jnp.maximum(logit, 0.0)                               # (rows, 1)


# --------------------------------- wrappers ---------------------------------
def _full_spec(shape):
    nd = len(shape)
    return pl.BlockSpec(shape, lambda i: (0,) * nd)


def _choose_block_pre(m_pad, min_rows=256):
    """Smallest multiple-of-8 divisor of m_pad whose row tile (bp * m_pad) reaches
    min_rows (maximizes tile count for megacore); fall back to a single tile."""
    cands = [d for d in range(8, m_pad + 1, 8) if m_pad % d == 0]
    for d in cands:
        if d * m_pad >= min_rows:
            return d
    return cands[-1]


def sst_association_head(pre_feat, nxt_feat, params, max_object, false_constant):
    """pre_feat / nxt_feat: (max_object, C) f32 Re-ID features (padded/gathered).
    Returns the (1, 1, max_object+1, max_object+1) similarity map."""
    m = max_object
    m_pad = ((m + 7) // 8) * 8
    if m_pad != m:
        pad = jnp.zeros((m_pad - m, C), pre_feat.dtype)
        pre_feat = jnp.concatenate([pre_feat, pad], axis=0)
        nxt_feat = jnp.concatenate([nxt_feat, pad], axis=0)

    # ---- prep kernel: BN + split layer-1 projections (computed once) ----
    prep_in = [pre_feat, nxt_feat, params["bn0_s"], params["bn0_b"],
               params["w1_pre"], params["w1_nxt"], params["s1"], params["t1"]]
    pre_proj, nxt_proj = pl.pallas_call(
        sst_prep_kernel,
        out_shape=(jax.ShapeDtypeStruct((m_pad, H1), jnp.float32),
                   jax.ShapeDtypeStruct((m_pad, H1), jnp.float32)),
        grid=(1,),
        in_specs=[_full_spec(x.shape) for x in prep_in],
        out_specs=(_full_spec((m_pad, H1)), _full_spec((m_pad, H1))),
        compiler_params=pltpu.CompilerParams(
            dimension_semantics=("arbitrary",),
            vmem_limit_bytes=32 * 1024 * 1024),
    )(*prep_in)

    # ---- main kernel: row-tiled M*M matmul chain ----
    bp = _choose_block_pre(m_pad)
    n_blocks = m_pad // bp
    rows = bp * m_pad
    weights = [params[k] for k in
               ("w2", "s2", "t2", "w3", "s3", "t3", "w4", "b4", "w5_row", "b5")]
    out = pl.pallas_call(
        sst_pair_kernel,
        out_shape=jax.ShapeDtypeStruct((m_pad * m_pad, 1), jnp.float32),
        grid=(n_blocks,),
        in_specs=[pl.BlockSpec((bp, H1), lambda i: (i, 0)),       # pre projections tile
                  pl.BlockSpec((m_pad, H1), lambda i: (0, 0))]    # all next projections
                 + [_full_spec(w.shape) for w in weights],        # resident weights
        out_specs=pl.BlockSpec((rows, 1), lambda i: (i, 0)),      # only the real column
        compiler_params=pltpu.CompilerParams(
            dimension_semantics=("parallel",),    # shard row tiles across v7x's 2 TCs
            vmem_limit_bytes=32 * 1024 * 1024),
    )(pre_proj, nxt_proj, *weights)

    sim = out.reshape(m_pad, m_pad)[:m, :m].reshape(1, 1, m, m)

    # ---- add_unmatched_dim (plain JAX glue) ----
    col = jnp.full((1, 1, m, 1), false_constant, jnp.float32)
    sim = jnp.concatenate([sim, col], axis=3)
    row = jnp.full((1, 1, 1, m + 1), false_constant, jnp.float32)
    sim = jnp.concatenate([sim, row], axis=2)
    return sim


def resize_index_dim(x, index, max_object):
    """SST.resize_index_dim: zero-pad the object dim to max_object, gather by index,
       squeeze batch.  x: (1, n, C) -> (max_object, C)."""
    n = x.shape[1]
    pad = jnp.zeros((1, max(max_object - n, 0), x.shape[2]), x.dtype)
    return jnp.concatenate([x, pad], axis=1)[:, index, :][0]


def forward_stacker_features(xp, xn, index_pre, index_next, params,
                             max_object, false_constant):
    pre = resize_index_dim(xp, index_pre, max_object)
    nxt = resize_index_dim(xn, index_next, max_object)
    return sst_association_head(pre, nxt, params, max_object, false_constant)


# ---------------------- deterministic parameter initialization ----------------------
def init_params(key):
    """Builds kernel-format params: folded BN (eval), layer-1 weight split into
    pre/next halves, conv biases folded into BN offsets, bf16 matmul weights, layer-4
    output zero-padded to 128 lanes, layer-5 weight as a zero-padded (1,128) row."""
    p = {}
    ks = iter(jax.random.split(key, 64))

    def bn(c):
        gamma = 1.0 + 0.1 * jax.random.normal(next(ks), (c,), jnp.float32)
        beta = 0.05 * jax.random.normal(next(ks), (c,), jnp.float32)
        mean = 0.1 * jax.random.normal(next(ks), (c,), jnp.float32)
        var = jnp.abs(jax.random.normal(next(ks), (c,), jnp.float32)) + 0.5
        s = gamma / jnp.sqrt(var + BN_EPS)
        return s.reshape(1, -1), (beta - mean * s).reshape(1, -1)

    # stacker2_bn = BatchNorm2d(512)
    p["bn0_s"], p["bn0_b"] = bn(C)

    dims = FINAL_CFG
    ws, bs = [], []
    for cin, cout in zip(dims[:-1], dims[1:]):
        ws.append(0.05 * jax.random.normal(next(ks), (cin, cout), jnp.float32))
        bs.append(0.02 * jax.random.normal(next(ks), (1, cout), jnp.float32))

    # layer 1 (1024 -> 512, conv + BN + ReLU): split into pre/next halves, fold b1 into t1
    s1, t1 = bn(dims[1])
    p["w1_pre"] = ws[0][:C].astype(jnp.bfloat16)
    p["w1_nxt"] = ws[0][C:].astype(jnp.bfloat16)
    p["s1"] = s1
    p["t1"] = s1 * bs[0] + t1
    # layers 2, 3 (conv + BN + ReLU): fold conv bias into BN offset
    s2, t2 = bn(dims[2])
    p["w2"] = ws[1].astype(jnp.bfloat16); p["s2"] = s2; p["t2"] = s2 * bs[1] + t2
    s3, t3 = bn(dims[3])
    p["w3"] = ws[2].astype(jnp.bfloat16); p["s3"] = s3; p["t3"] = s3 * bs[2] + t3
    # layer 4 (conv + ReLU): zero-pad 64-wide output to 128 lanes (exact)
    p["w4"] = jnp.pad(ws[3], ((0, 0), (0, LANE - dims[4]))).astype(jnp.bfloat16)
    p["b4"] = jnp.pad(bs[3], ((0, 0), (0, LANE - dims[4])))
    # layer 5 (conv 64->1 + ReLU): weight as a zero-padded (1,128) f32 row for the VPU dot
    p["w5_row"] = jnp.pad(ws[4][:, 0].reshape(1, -1), ((0, 0), (0, LANE - dims[4])))
    p["b5"] = bs[4].reshape(1, 1)
    return p


# ------------------------------ pure-JAX reference ------------------------------
def ref_forward(pre, nxt, p, M, false_constant):
    """Same math as the PyTorch head with matching (bf16-input, f32-accumulate)
    matmul numerics; the layer-1 split, bias folding and zero padding are exact."""
    bf, f32 = jnp.bfloat16, jnp.float32
    pre_bn = (pre * p["bn0_s"] + p["bn0_b"]).astype(bf)
    nxt_bn = (nxt * p["bn0_s"] + p["bn0_b"]).astype(bf)
    pre_proj = p["s1"] * jnp.dot(pre_bn, p["w1_pre"], preferred_element_type=f32)
    nxt_proj = p["s1"] * jnp.dot(nxt_bn, p["w1_nxt"], preferred_element_type=f32) + p["t1"]
    h = jnp.maximum(pre_proj[:, None, :] + nxt_proj[None, :, :], 0.0)
    h = h.reshape(M * M, H1).astype(bf)
    h = jnp.dot(h, p["w2"], preferred_element_type=f32)
    h = jnp.maximum(h * p["s2"] + p["t2"], 0.0).astype(bf)
    h = jnp.dot(h, p["w3"], preferred_element_type=f32)
    h = jnp.maximum(h * p["s3"] + p["t3"], 0.0).astype(bf)
    h = jnp.maximum(jnp.dot(h, p["w4"], preferred_element_type=f32) + p["b4"], 0.0)
    sim = jnp.maximum(jnp.sum(h * p["w5_row"], axis=-1, keepdims=True) + p["b5"], 0.0)
    sim = sim.reshape(1, 1, M, M)
    col = jnp.full((1, 1, M, 1), false_constant, jnp.float32)
    sim = jnp.concatenate([sim, col], axis=3)
    row = jnp.full((1, 1, 1, M + 1), false_constant, jnp.float32)
    return jnp.concatenate([sim, row], axis=2)


if __name__ == "__main__":
    MAX_OBJECT = 32         # config['max_object'] (kept small; real SST configs use 80+)
    FALSE_CONSTANT = 10.0   # config['false_constant']
    n_pre, n_next = 5, 6    # detections surviving the score filter

    key = jax.random.PRNGKey(0)
    k1, k2, kp = jax.random.split(key, 3)
    xp = jax.random.normal(k1, (1, n_pre, C), jnp.float32)   # pre-frame Re-ID features
    xn = jax.random.normal(k2, (1, n_next, C), jnp.float32)  # next-frame Re-ID features
    index_pre = jnp.arange(MAX_OBJECT, dtype=jnp.int32)
    index_next = jnp.arange(MAX_OBJECT, dtype=jnp.int32)

    params = init_params(kp)

    run = jax.jit(functools.partial(forward_stacker_features,
                                    max_object=MAX_OBJECT,
                                    false_constant=FALSE_CONSTANT))
    sim = jax.block_until_ready(run(xp, xn, index_pre, index_next, params))
    assert sim.shape == (1, 1, MAX_OBJECT + 1, MAX_OBJECT + 1), sim.shape

    # correctness check against the pure-JAX reference
    pre = resize_index_dim(xp, index_pre, MAX_OBJECT)
    nxt = resize_index_dim(xn, index_next, MAX_OBJECT)
    ref = jax.block_until_ready(ref_forward(pre, nxt, params, MAX_OBJECT, FALSE_CONSTANT))
    if not jnp.allclose(sim, ref, rtol=1e-2, atol=1e-2):
        err = float(jnp.max(jnp.abs(sim - ref)))
        raise AssertionError(f"Pallas kernel does not match reference (max abs err {err})")

    print("KERNEL_OK")
</pallas_src>

<mosaic_0001>
module attributes {stable_mosaic.version = 11 : i64} {
  func.func @sst_prep_kernel(%arg0: i32, %arg1: memref<32x512xf32, #tpu.memory_space<vmem>>, %arg2: memref<32x512xf32, #tpu.memory_space<vmem>>, %arg3: memref<1x512xf32, #tpu.memory_space<vmem>>, %arg4: memref<1x512xf32, #tpu.memory_space<vmem>>, %arg5: memref<512x512xbf16, #tpu.memory_space<vmem>>, %arg6: memref<512x512xbf16, #tpu.memory_space<vmem>>, %arg7: memref<1x512xf32, #tpu.memory_space<vmem>>, %arg8: memref<1x512xf32, #tpu.memory_space<vmem>>, %arg9: memref<32x512xf32, #tpu.memory_space<vmem>>, %arg10: memref<32x512xf32, #tpu.memory_space<vmem>>) attributes {dimension_semantics = [#tpu.dimension_semantics<arbitrary>], iteration_bounds = array<i64: 1>, scalar_prefetch = 0 : i64, scratch_operands = 0 : i64, tpu.core_type = #tpu.core_type<tc>, window_params = [{pipeline_mode = #tpu.pipeline_mode<synchronous>, transform_indices = @transform_0, window_bounds = array<i64: 32, 512>}, {pipeline_mode = #tpu.pipeline_mode<synchronous>, transform_indices = @transform_1, window_bounds = array<i64: 32, 512>}, {pipeline_mode = #tpu.pipeline_mode<synchronous>, transform_indices = @transform_2, window_bounds = array<i64: 1, 512>}, {pipeline_mode = #tpu.pipeline_mode<synchronous>, transform_indices = @transform_3, window_bounds = array<i64: 1, 512>}, {pipeline_mode = #tpu.pipeline_mode<synchronous>, transform_indices = @transform_4, window_bounds = array<i64: 512, 512>}, {pipeline_mode = #tpu.pipeline_mode<synchronous>, transform_indices = @transform_5, window_bounds = array<i64: 512, 512>}, {pipeline_mode = #tpu.pipeline_mode<synchronous>, transform_indices = @transform_6, window_bounds = array<i64: 1, 512>}, {pipeline_mode = #tpu.pipeline_mode<synchronous>, transform_indices = @transform_7, window_bounds = array<i64: 1, 512>}, {pipeline_mode = #tpu.pipeline_mode<synchronous>, transform_indices = @transform_8, window_bounds = array<i64: 32, 512>}, {pipeline_mode = #tpu.pipeline_mode<synchronous>, transform_indices = @transform_9, window_bounds = array<i64: 32, 512>}]} {
    %c0 = arith.constant 0 : index
    %c0_0 = arith.constant 0 : index
    %0 = vector.load %arg1[%c0, %c0_0] : memref<32x512xf32, #tpu.memory_space<vmem>>, vector<32x512xf32>
    %c0_1 = arith.constant 0 : index
    %c0_2 = arith.constant 0 : index
    %1 = vector.load %arg3[%c0_1, %c0_2] : memref<1x512xf32, #tpu.memory_space<vmem>>, vector<1x512xf32>
    %2 = vector.broadcast %1 : vector<1x512xf32> to vector<32x512xf32>
    %3 = arith.mulf %0, %2 : vector<32x512xf32>
    %c0_3 = arith.constant 0 : index
    %c0_4 = arith.constant 0 : index
    %4 = vector.load %arg4[%c0_3, %c0_4] : memref<1x512xf32, #tpu.memory_space<vmem>>, vector<1x512xf32>
    %5 = vector.broadcast %4 : vector<1x512xf32> to vector<32x512xf32>
    %6 = arith.addf %3, %5 : vector<32x512xf32>
    %7 = arith.truncf %6 : vector<32x512xf32> to vector<32x512xbf16>
    %c0_5 = arith.constant 0 : index
    %c0_6 = arith.constant 0 : index
    %8 = vector.load %arg2[%c0_5, %c0_6] : memref<32x512xf32, #tpu.memory_space<vmem>>, vector<32x512xf32>
    %c0_7 = arith.constant 0 : index
    %c0_8 = arith.constant 0 : index
    %9 = vector.load %arg3[%c0_7, %c0_8] : memref<1x512xf32, #tpu.memory_space<vmem>>, vector<1x512xf32>
    %10 = vector.broadcast %9 : vector<1x512xf32> to vector<32x512xf32>
    %11 = arith.mulf %8, %10 : vector<32x512xf32>
    %c0_9 = arith.constant 0 : index
    %c0_10 = arith.constant 0 : index
    %12 = vector.load %arg4[%c0_9, %c0_10] : memref<1x512xf32, #tpu.memory_space<vmem>>, vector<1x512xf32>
    %13 = vector.broadcast %12 : vector<1x512xf32> to vector<32x512xf32>
    %14 = arith.addf %11, %13 : vector<32x512xf32>
    %15 = arith.truncf %14 : vector<32x512xf32> to vector<32x512xbf16>
    %c0_11 = arith.constant 0 : index
    %c0_12 = arith.constant 0 : index
    %16 = vector.load %arg7[%c0_11, %c0_12] : memref<1x512xf32, #tpu.memory_space<vmem>>, vector<1x512xf32>
    %c0_13 = arith.constant 0 : index
    %c0_14 = arith.constant 0 : index
    %17 = vector.load %arg5[%c0_13, %c0_14] : memref<512x512xbf16, #tpu.memory_space<vmem>>, vector<512x512xbf16>
    %cst = arith.constant dense<0.000000e+00> : vector<32x512xf32>
    %18 = tpu.matmul %7, %17, %cst {dimension_numbers = #tpu.dot_dimension_numbers<[1], [0], [0], [1], [0, 0, 1, 1], [], []>} : vector<32x512xbf16>, vector<512x512xbf16>, vector<32x512xf32> -> vector<32x512xf32>
    %19 = vector.broadcast %16 : vector<1x512xf32> to vector<32x512xf32>
    %20 = arith.mulf %19, %18 : vector<32x512xf32>
    %c0_15 = arith.constant 0 : index
    %c0_16 = arith.constant 0 : index
    %21 = vector.load %arg9[%c0_15, %c0_16] : memref<32x512xf32, #tpu.memory_space<vmem>>, vector<32x512xf32>
    tpu.vector_store %arg9[%c0_15, %c0_16], %20 {strides = array<i32>} : memref<32x512xf32, #tpu.memory_space<vmem>>, vector<32x512xf32>,
    %c0_17 = arith.constant 0 : index
    %c0_18 = arith.constant 0 : index
    %22 = vector.load %arg6[%c0_17, %c0_18] : memref<512x512xbf16, #tpu.memory_space<vmem>>, vector<512x512xbf16>
    %cst_19 = arith.constant dense<0.000000e+00> : vector<32x512xf32>
    %23 = tpu.matmul %15, %22, %cst_19 {dimension_numbers = #tpu.dot_dimension_numbers<[1], [0], [0], [1], [0, 0, 1, 1], [], []>} : vector<32x512xbf16>, vector<512x512xbf16>, vector<32x512xf32> -> vector<32x512xf32>
    %24 = vector.broadcast %16 : vector<1x512xf32> to vector<32x512xf32>
    %25 = arith.mulf %24, %23 : vector<32x512xf32>
    %c0_20 = arith.constant 0 : index
    %c0_21 = arith.constant 0 : index
    %26 = vector.load %arg8[%c0_20, %c0_21] : memref<1x512xf32, #tpu.memory_space<vmem>>, vector<1x512xf32>
    %27 = vector.broadcast %26 : vector<1x512xf32> to vector<32x512xf32>
    %28 = arith.addf %25, %27 : vector<32x512xf32>
    %c0_22 = arith.constant 0 : index
    %c0_23 = arith.constant 0 : index
    %29 = vector.load %arg10[%c0_22, %c0_23] : memref<32x512xf32, #tpu.memory_space<vmem>>, vector<32x512xf32>
    tpu.vector_store %arg10[%c0_22, %c0_23], %28 {strides = array<i32>} : memref<32x512xf32, #tpu.memory_space<vmem>>, vector<32x512xf32>,
    return
  }
  func.func @transform_0(%arg0: i32) -> (i32, i32) {
    %c0_i32 = arith.constant 0 : i32
    %c0_i32_0 = arith.constant 0 : i32
    %c0_i32_1 = arith.constant 0 : i32
    return %c0_i32, %c0_i32_0 : i32, i32
  }
  func.func @transform_1(%arg0: i32) -> (i32, i32) {
    %c0_i32 = arith.constant 0 : i32
    %c0_i32_0 = arith.constant 0 : i32
    %c0_i32_1 = arith.constant 0 : i32
    return %c0_i32, %c0_i32_0 : i32, i32
  }
  func.func @transform_2(%arg0: i32) -> (i32, i32) {
    %c0_i32 = arith.constant 0 : i32
    %c0_i32_0 = arith.constant 0 : i32
    %c0_i32_1 = arith.constant 0 : i32
    return %c0_i32, %c0_i32_0 : i32, i32
  }
  func.func @transform_3(%arg0: i32) -> (i32, i32) {
    %c0_i32 = arith.constant 0 : i32
    %c0_i32_0 = arith.constant 0 : i32
    %c0_i32_1 = arith.constant 0 : i32
    return %c0_i32, %c0_i32_0 : i32, i32
  }
  func.func @transform_4(%arg0: i32) -> (i32, i32) {
    %c0_i32 = arith.constant 0 : i32
    %c0_i32_0 = arith.constant 0 : i32
    %c0_i32_1 = arith.constant 0 : i32
    return %c0_i32, %c0_i32_0 : i32, i32
  }
  func.func @transform_5(%arg0: i32) -> (i32, i32) {
    %c0_i32 = arith.constant 0 : i32
    %c0_i32_0 = arith.constant 0 : i32
    %c0_i32_1 = arith.constant 0 : i32
    return %c0_i32, %c0_i32_0 : i32, i32
  }
  func.func @transform_6(%arg0: i32) -> (i32, i32) {
    %c0_i32 = arith.constant 0 : i32
    %c0_i32_0 = arith.constant 0 : i32
    %c0_i32_1 = arith.constant 0 : i32
    return %c0_i32, %c0_i32_0 : i32, i32
  }
  func.func @transform_7(%arg0: i32) -> (i32, i32) {
    %c0_i32 = arith.constant 0 : i32
    %c0_i32_0 = arith.constant 0 : i32
    %c0_i32_1 = arith.constant 0 : i32
    return %c0_i32, %c0_i32_0 : i32, i32
  }
  func.func @transform_8(%arg0: i32) -> (i32, i32) {
    %c0_i32 = arith.constant 0 : i32
    %c0_i32_0 = arith.constant 0 : i32
    %c0_i32_1 = arith.constant 0 : i32
    return %c0_i32, %c0_i32_0 : i32, i32
  }
  func.func @transform_9(%arg0: i32) -> (i32, i32) {
    %c0_i32 = arith.constant 0 : i32
    %c0_i32_0 = arith.constant 0 : i32
    %c0_i32_1 = arith.constant 0 : i32
    return %c0_i32, %c0_i32_0 : i32, i32
  }
}

module attributes {stable_mosaic.version = 11 : i64} {
  func.func @sst_pair_kernel(%arg0: i32, %arg1: memref<8x512xf32, #tpu.memory_space<vmem>>, %arg2: memref<32x512xf32, #tpu.memory_space<vmem>>, %arg3: memref<512x256xbf16, #tpu.memory_space<vmem>>, %arg4: memref<1x256xf32, #tpu.memory_space<vmem>>, %arg5: memref<1x256xf32, #tpu.memory_space<vmem>>, %arg6: memref<256x128xbf16, #tpu.memory_space<vmem>>, %arg7: memref<1x128xf32, #tpu.memory_space<vmem>>, %arg8: memref<1x128xf32, #tpu.memory_space<vmem>>, %arg9: memref<128x128xbf16, #tpu.memory_space<vmem>>, %arg10: memref<1x128xf32, #tpu.memory_space<vmem>>, %arg11: memref<1x128xf32, #tpu.memory_space<vmem>>, %arg12: memref<1x1xf32, #tpu.memory_space<vmem>>, %arg13: memref<256x1xf32, #tpu.memory_space<vmem>>) attributes {dimension_semantics = [#tpu.dimension_semantics<parallel>], iteration_bounds = array<i64: 4>, scalar_prefetch = 0 : i64, scratch_operands = 0 : i64, tpu.core_type = #tpu.core_type<tc>, window_params = [{transform_indices = @transform_0, window_bounds = array<i64: 8, 512>}, {pipeline_mode = #tpu.pipeline_mode<synchronous>, transform_indices = @transform_1, window_bounds = array<i64: 32, 512>}, {pipeline_mode = #tpu.pipeline_mode<synchronous>, transform_indices = @transform_2, window_bounds = array<i64: 512, 256>}, {pipeline_mode = #tpu.pipeline_mode<synchronous>, transform_indices = @transform_3, window_bounds = array<i64: 1, 256>}, {pipeline_mode = #tpu.pipeline_mode<synchronous>, transform_indices = @transform_4, window_bounds = array<i64: 1, 256>}, {pipeline_mode = #tpu.pipeline_mode<synchronous>, transform_indices = @transform_5, window_bounds = array<i64: 256, 128>}, {pipeline_mode = #tpu.pipeline_mode<synchronous>, transform_indices = @transform_6, window_bounds = array<i64: 1, 128>}, {pipeline_mode = #tpu.pipeline_mode<synchronous>, transform_indices = @transform_7, window_bounds = array<i64: 1, 128>}, {pipeline_mode = #tpu.pipeline_mode<synchronous>, transform_indices = @transform_8, window_bounds = array<i64: 128, 128>}, {pipeline_mode = #tpu.pipeline_mode<synchronous>, transform_indices = @transform_9, window_bounds = array<i64: 1, 128>}, {pipeline_mode = #tpu.pipeline_mode<synchronous>, transform_indices = @transform_10, window_bounds = array<i64: 1, 128>}, {pipeline_mode = #tpu.pipeline_mode<synchronous>, transform_indices = @transform_11, window_bounds = array<i64: 1, 1>}, {transform_indices = @transform_12, window_bounds = array<i64: 256, 1>}]} {
    %c0 = arith.constant 0 : index
    %c0_0 = arith.constant 0 : index
    %0 = vector.load %arg1[%c0, %c0_0] : memref<8x512xf32, #tpu.memory_space<vmem>>, vector<8x512xf32>
    %1 = vector.shape_cast %0 : vector<8x512xf32> to vector<8x1x512xf32>
    %c0_1 = arith.constant 0 : index
    %c0_2 = arith.constant 0 : index
    %2 = vector.load %arg2[%c0_1, %c0_2] : memref<32x512xf32, #tpu.memory_space<vmem>>, vector<32x512xf32>
    %3 = vector.shape_cast %2 : vector<32x512xf32> to vector<1x32x512xf32>
    %4 = vector.broadcast %1 : vector<8x1x512xf32> to vector<8x32x512xf32>
    %5 = vector.broadcast %3 : vector<1x32x512xf32> to vector<8x32x512xf32>
    %6 = arith.addf %4, %5 : vector<8x32x512xf32>
    %7 = vector.shape_cast %6 : vector<8x32x512xf32> to vector<256x512xf32>
    %cst = arith.constant 0.000000e+00 : f32
    %8 = vector.broadcast %cst : f32 to vector<256x512xf32>
    %9 = arith.maximumf %7, %8 : vector<256x512xf32>
    %10 = arith.truncf %9 : vector<256x512xf32> to vector<256x512xbf16>
    %c0_3 = arith.constant 0 : index
    %c0_4 = arith.constant 0 : index
    %11 = vector.load %arg3[%c0_3, %c0_4] : memref<512x256xbf16, #tpu.memory_space<vmem>>, vector<512x256xbf16>
    %cst_5 = arith.constant dense<0.000000e+00> : vector<256x256xf32>
    %12 = tpu.matmul %10, %11, %cst_5 {dimension_numbers = #tpu.dot_dimension_numbers<[1], [0], [0], [1], [0, 0, 1, 1], [], []>} : vector<256x512xbf16>, vector<512x256xbf16>, vector<256x256xf32> -> vector<256x256xf32>
    %c0_6 = arith.constant 0 : index
    %c0_7 = arith.constant 0 : index
    %13 = vector.load %arg4[%c0_6, %c0_7] : memref<1x256xf32, #tpu.memory_space<vmem>>, vector<1x256xf32>
    %14 = vector.broadcast %13 : vector<1x256xf32> to vector<256x256xf32>
    %15 = arith.mulf %12, %14 : vector<256x256xf32>
    %c0_8 = arith.constant 0 : index
    %c0_9 = arith.constant 0 : index
    %16 = vector.load %arg5[%c0_8, %c0_9] : memref<1x256xf32, #tpu.memory_space<vmem>>, vector<1x256xf32>
    %17 = vector.broadcast %16 : vector<1x256xf32> to vector<256x256xf32>
    %18 = arith.addf %15, %17 : vector<256x256xf32>
    %cst_10 = arith.constant 0.000000e+00 : f32
    %19 = vector.broadcast %cst_10 : f32 to vector<256x256xf32>
    %20 = arith.maximumf %18, %19 : vector<256x256xf32>
    %21 = arith.truncf %20 : vector<256x256xf32> to vector<256x256xbf16>
    %c0_11 = arith.constant 0 : index
    %c0_12 = arith.constant 0 : index
    %22 = vector.load %arg6[%c0_11, %c0_12] : memref<256x128xbf16, #tpu.memory_space<vmem>>, vector<256x128xbf16>
    %cst_13 = arith.constant dense<0.000000e+00> : vector<256x128xf32>
    %23 = tpu.matmul %21, %22, %cst_13 {dimension_numbers = #tpu.dot_dimension_numbers<[1], [0], [0], [1], [0, 0, 1, 1], [], []>} : vector<256x256xbf16>, vector<256x128xbf16>, vector<256x128xf32> -> vector<256x128xf32>
    %c0_14 = arith.constant 0 : index
    %c0_15 = arith.constant 0 : index
    %24 = vector.load %arg7[%c0_14, %c0_15] : memref<1x128xf32, #tpu.memory_space<vmem>>, vector<1x128xf32>
    %25 = vector.broadcast %24 : vector<1x128xf32> to vector<256x128xf32>
    %26 = arith.mulf %23, %25 : vector<256x128xf32>
    %c0_16 = arith.constant 0 : index
    %c0_17 = arith.constant 0 : index
    %27 = vector.load %arg8[%c0_16, %c0_17] : memref<1x128xf32, #tpu.memory_space<vmem>>, vector<1x128xf32>
    %28 = vector.broadcast %27 : vector<1x128xf32> to vector<256x128xf32>
    %29 = arith.addf %26, %28 : vector<256x128xf32>
    %cst_18 = arith.constant 0.000000e+00 : f32
    %30 = vector.broadcast %cst_18 : f32 to vector<256x128xf32>
    %31 = arith.maximumf %29, %30 : vector<256x128xf32>
    %32 = arith.truncf %31 : vector<256x128xf32> to vector<256x128xbf16>
    %c0_19 = arith.constant 0 : index
    %c0_20 = arith.constant 0 : index
    %33 = vector.load %arg9[%c0_19, %c0_20] : memref<128x128xbf16, #tpu.memory_space<vmem>>, vector<128x128xbf16>
    %cst_21 = arith.constant dense<0.000000e+00> : vector<256x128xf32>
    %34 = tpu.matmul %32, %33, %cst_21 {dimension_numbers = #tpu.dot_dimension_numbers<[1], [0], [0], [1], [0, 0, 1, 1], [], []>} : vector<256x128xbf16>, vector<128x128xbf16>, vector<256x128xf32> -> vector<256x128xf32>
    %c0_22 = arith.constant 0 : index
    %c0_23 = arith.constant 0 : index
    %35 = vector.load %arg10[%c0_22, %c0_23] : memref<1x128xf32, #tpu.memory_space<vmem>>, vector<1x128xf32>
    %36 = vector.broadcast %35 : vector<1x128xf32> to vector<256x128xf32>
    %37 = arith.addf %34, %36 : vector<256x128xf32>
    %cst_24 = arith.constant 0.000000e+00 : f32
    %38 = vector.broadcast %cst_24 : f32 to vector<256x128xf32>
    %39 = arith.maximumf %37, %38 : vector<256x128xf32>
    %c0_25 = arith.constant 0 : index
    %c0_26 = arith.constant 0 : index
    %40 = vector.load %arg11[%c0_25, %c0_26] : memref<1x128xf32, #tpu.memory_space<vmem>>, vector<1x128xf32>
    %41 = vector.broadcast %40 : vector<1x128xf32> to vector<256x128xf32>
    %42 = arith.mulf %39, %41 : vector<256x128xf32>
    %cst_27 = arith.constant dense<0.000000e+00> : vector<256xf32>
    %43 = vector.multi_reduction <add>, %42, %cst_27 [1] : vector<256x128xf32> to vector<256xf32>
    %44 = vector.shape_cast %43 : vector<256xf32> to vector<256x1xf32>
    %c0_28 = arith.constant 0 : index
    %c0_29 = arith.constant 0 : index
    %45 = vector.load %arg12[%c0_28, %c0_29] : memref<1x1xf32, #tpu.memory_space<vmem>>, vector<1x1xf32>
    %46 = vector.broadcast %45 : vector<1x1xf32> to vector<256x1xf32>
    %47 = arith.addf %44, %46 : vector<256x1xf32>
    %cst_30 = arith.constant 0.000000e+00 : f32
    %48 = vector.broadcast %cst_30 : f32 to vector<256x1xf32>
    %49 = arith.maximumf %47, %48 : vector<256x1xf32>
    %c0_31 = arith.constant 0 : index
    %c0_32 = arith.constant 0 : index
    %50 = vector.load %arg13[%c0_31, %c0_32] : memref<256x1xf32, #tpu.memory_space<vmem>>, vector<256x1xf32>
    tpu.vector_store %arg13[%c0_31, %c0_32], %49 {strides = array<i32>} : memref<256x1xf32, #tpu.memory_space<vmem>>, vector<256x1xf32>,
    return
  }
  func.func @transform_0(%arg0: i32) -> (i32, i32) {
    %c0_i32 = arith.constant 0 : i32
    %c0_i32_0 = arith.constant 0 : i32
    return %arg0, %c0_i32 : i32, i32
  }
  func.func @transform_1(%arg0: i32) -> (i32, i32) {
    %c0_i32 = arith.constant 0 : i32
    %c0_i32_0 = arith.constant 0 : i32
    %c0_i32_1 = arith.constant 0 : i32
    return %c0_i32, %c0_i32_0 : i32, i32
  }
  func.func @transform_2(%arg0: i32) -> (i32, i32) {
    %c0_i32 = arith.constant 0 : i32
    %c0_i32_0 = arith.constant 0 : i32
    %c0_i32_1 = arith.constant 0 : i32
    return %c0_i32, %c0_i32_0 : i32, i32
  }
  func.func @transform_3(%arg0: i32) -> (i32, i32) {
    %c0_i32 = arith.constant 0 : i32
    %c0_i32_0 = arith.constant 0 : i32
    %c0_i32_1 = arith.constant 0 : i32
    return %c0_i32, %c0_i32_0 : i32, i32
  }
  func.func @transform_4(%arg0: i32) -> (i32, i32) {
    %c0_i32 = arith.constant 0 : i32
    %c0_i32_0 = arith.constant 0 : i32
    %c0_i32_1 = arith.constant 0 : i32
    return %c0_i32, %c0_i32_0 : i32, i32
  }
  func.func @transform_5(%arg0: i32) -> (i32, i32) {
    %c0_i32 = arith.constant 0 : i32
    %c0_i32_0 = arith.constant 0 : i32
    %c0_i32_1 = arith.constant 0 : i32
    return %c0_i32, %c0_i32_0 : i32, i32
  }
  func.func @transform_6(%arg0: i32) -> (i32, i32) {
    %c0_i32 = arith.constant 0 : i32
    %c0_i32_0 = arith.constant 0 : i32
    %c0_i32_1 = arith.constant 0 : i32
    return %c0_i32, %c0_i32_0 : i32, i32
  }
  func.func @transform_7(%arg0: i32) -> (i32, i32) {
    %c0_i32 = arith.constant 0 : i32
    %c0_i32_0 = arith.constant 0 : i32
    %c0_i32_1 = arith.constant 0 : i32
    return %c0_i32, %c0_i32_0 : i32, i32
  }
  func.func @transform_8(%arg0: i32) -> (i32, i32) {
    %c0_i32 = arith.constant 0 : i32
    %c0_i32_0 = arith.constant 0 : i32
    %c0_i32_1 = arith.constant 0 : i32
    return %c0_i32, %c0_i32_0 : i32, i32
  }
  func.func @transform_9(%arg0: i32) -> (i32, i32) {
    %c0_i32 = arith.constant 0 : i32
    %c0_i32_0 = arith.constant 0 : i32
    %c0_i32_1 = arith.constant 0 : i32
    return %c0_i32, %c0_i32_0 : i32, i32
  }
  func.func @transform_10(%arg0: i32) -> (i32, i32) {
    %c0_i32 = arith.constant 0 : i32
    %c0_i32_0 = arith.constant 0 : i32
    %c0_i32_1 = arith.constant 0 : i32
    return %c0_i32, %c0_i32_0 : i32, i32
  }
  func.func @transform_11(%arg0: i32) -> (i32, i32) {
    %c0_i32 = arith.constant 0 : i32
    %c0_i32_0 = arith.constant 0 : i32
    %c0_i32_1 = arith.constant 0 : i32
    return %c0_i32, %c0_i32_0 : i32, i32
  }
  func.func @transform_12(%arg0: i32) -> (i32, i32) {
    %c0_i32 = arith.constant 0 : i32
    %c0_i32_0 = arith.constant 0 : i32
    return %arg0, %c0_i32 : i32, i32
  }
}

</mosaic_0001>

<bundles_post_ra>
// kernel: forward_stacker_features.3
= control target key start
LH: loop header
LB: loop body
LE: loop exit
PB: predicated region body
PF: predicated region fallthrough
CT: control target
= control target key end

     0   :  { %s3547_s23 = smov 0   ;;  %s4604_s0 = inlined_call_operand.vmem [shape: f32[32,512], index: 0, kind: input, shape index: {}]   ;;  %s4605_s1 = inlined_call_operand.vmem [shape: f32[32,512], index: 1, kind: input, shape index: {}]   ;;  %s4606_s2 = inlined_call_operand.vmem [shape: bf16[512,256], index: 2, kind: input, shape index: {}]   ;;  %s4607_s3 = inlined_call_operand.vmem [shape: f32[1,256], index: 3, kind: input, shape index: {}]   ;;  %s4608_s4 = inlined_call_operand.vmem [shape: f32[1,256], index: 4, kind: input, shape index: {}]   ;;  %s4609_s5 = inlined_call_operand.vmem [shape: bf16[256,128], index: 5, kind: input, shape index: {}]   ;;  %s4610_s6 = inlined_call_operand.vmem [shape: f32[1,128], index: 6, kind: input, shape index: {}]   ;;  %s4611_s7 = inlined_call_operand.vmem [shape: f32[1,128], index: 7, kind: input, shape index: {}]   ;;  %s4612_s8 = inlined_call_operand.vmem [shape: bf16[128,128], index: 8, kind: input, shape index: {}]   ;;  %s4613_s9 = inlined_call_operand.vmem [shape: f32[1,128], index: 9, kind: input, shape index: {}]   ;;  %s4614_s10 = inlined_call_operand.vmem [shape: f32[1,128], index: 10, kind: input, shape index: {}]   ;;  %s4615_s11 = inlined_call_operand.<no memory space> [shape: f32[1,1], index: 11, kind: input, shape index: {}]   ;;  %s4616_s12 = inlined_call_operand.vmem [shape: f32[1024,1], index: 12, kind: output, shape index: {}]  }
   0x1   :  { %v17_v0 = vstv %s4615_s11 }
   0x2   :  { %18 = vst [vmem:[#allocation2] sm:$0x1] %v17_v0 }
   0x3 LB: > { %s3553_s24 = sadd.s32 4294967295, %s3476_s23   ;;  %p2954_p0 = scmp.ge.s32.totalorder %s3476_s23, 1  ;;  %s3476_s23 = sphi %s3547_s23, %s24_s23  }
   0x4   : > { %p364_p1 = scmp.lt.s32.totalorder %s3476_s23, 5 }
   0x6   : > { %p365_p2 = pnand %p2954_p0, %p364_p1 }
   0x7   : > { %v3344_v1 = vld [vmem:[%s4606_s2 + $0x4] ss:$8 sps:$4 sm:$0xff] (!%p365_p2)   ;;  %v3346_v2 = vld [vmem:[%s4606_s2] ss:$8 sps:$4 sm:$0xff] (!%p365_p2)   ;;  %v3347_v3 = vld [vmem:[%s4606_s2 + $0x14] ss:$8 sps:$4 sm:$0xff] (!%p365_p2)   ;;  %v433_v12 = vlaneseq (!%p365_p2) }
   0x8   : > { %368 = sbr.rel (%p365_p2) target bundleno = 1111 (0x457), region = 68  ;;  %1374 = vmatprep.subr.bf16.mxu0 (!%p365_p2), %v3344_v1  ;;  %3239 = vmatprep.subr.bf16.mxu1 (!%p365_p2), %v3344_v1  ;;  %v3349_v4 = vld [vmem:[%s4606_s2 + $0x10] ss:$8 sps:$4 sm:$0xff] (!%p365_p2)   ;;  %v3350_v5 = vld [vmem:[%s4606_s2 + $0x24] ss:$8 sps:$4 sm:$0xff] (!%p365_p2)   ;;  %p406_p3 = scmp.lt.s32.totalorder (!%p365_p2), %s3553_s24, 3 }
   0x9   : > { %1375 = vmatpush1.bf16.msra.mxu0 (!%p365_p2), %v3346_v2  ;;  %3255 = vmatpush1.bf16.msra.mxu1 (!%p365_p2), %v3346_v2  ;;  %v3352_v6 = vld [vmem:[%s4606_s2 + $0x20] ss:$8 sps:$4 sm:$0xff] (!%p365_p2)   ;;  %v3353_v7 = vld [vmem:[%s4606_s2 + $0x34] ss:$8 sps:$4 sm:$0xff] (!%p365_p2)   ;;  %v3355_v8 = vld [vmem:[%s4606_s2 + $0x30] ss:$8 sps:$4 sm:$0xff] (!%p365_p2)  }
   0xa   : > { %1376 = vmatprep.subr.bf16.mxu0 (!%p365_p2), %v3347_v3  ;;  %3240 = vmatprep.subr.bf16.mxu1 (!%p365_p2), %v3347_v3  ;;  %v3356_v9 = vld [vmem:[%s4606_s2 + $0x44] ss:$8 sps:$4 sm:$0xff] (!%p365_p2)   ;;  %v3478_v10 = vmov (!%p365_p2), 1966171168   ;;  %v3358_v13 = vld [vmem:[%s4606_s2 + $0x40] ss:$8 sps:$4 sm:$0xff] (!%p365_p2)  }
   0xb   : > { %v431_v11 = vunpack.c.l.s4 (!%p365_p2), %v3478_v10  ;;  %v3359_v14 = vld [vmem:[%s4606_s2 + $0x54] ss:$8 sps:$4 sm:$0xff] (!%p365_p2)   ;;  %v3592_v16 = vshrl.u32 (!%p365_p2), %v433_v12, 7  ;;  %v3361_v17 = vld [vmem:[%s4606_s2 + $0x50] ss:$8 sps:$4 sm:$0xff] (!%p365_p2)   ;;  %v3637_v37 = vld [vmem:[%s4605_s1 + $0x8] sm:$0xff] (!%p365_p2) }
   0xc   : > { %v3362_v18 = vld [vmem:[%s4606_s2 + $0x64] ss:$8 sps:$4 sm:$0xff] (!%p365_p2)   ;;  %v3364_v20 = vld [vmem:[%s4606_s2 + $0x60] ss:$8 sps:$4 sm:$0xff] (!%p365_p2)   ;;  %v3365_v25 = vld [vmem:[%s4606_s2 + $0x74] ss:$8 sps:$4 sm:$0xff] (!%p365_p2)  }
   0xd   : > { %1377 = vmatpush1.bf16.msra.mxu0 (!%p365_p2), %v3349_v4  ;;  %3256 = vmatpush1.bf16.msra.mxu1 (!%p365_p2), %v3349_v4  ;;  %v432_v15 = vunpack.c.0.s8 (!%p365_p2), %v431_v11  ;;  %v3367_v30 = vld [vmem:[%s4606_s2 + $0x70] ss:$8 sps:$4 sm:$0xff] (!%p365_p2)   ;;  %v3626_v32 = vsub.s32 (!%p365_p2), 1, %v3592_v16  ;;  %v3368_v33 = vld [vmem:[%s4606_s2 + $0x84] ss:$8 sps:$4 sm:$0xff] (!%p365_p2)   ;;  %v3679_v55 = vsub.s32 (!%p365_p2), 0, %v3592_v16 }
   0xe   : > { %1378 = vmatprep.subr.bf16.mxu0 (!%p365_p2), %v3350_v5  ;;  %3241 = vmatprep.subr.bf16.mxu1 (!%p365_p2), %v3350_v5  ;;  %v3642_v38 = vld [vmem:[%s4605_s1 + $0x28] sm:$0xff] (!%p365_p2)  ;;  %v3371_v43 = vld [vmem:[%s4606_s2 + $0x94] ss:$8 sps:$4 sm:$0xff] (!%p365_p2)   ;;  %v3373_v46 = vld [vmem:[%s4606_s2 + $0x90] ss:$8 sps:$4 sm:$0xff] (!%p365_p2)   ;;  %s2957_s28 = sshll.u32 (!%p365_p2), %s3553_s24, 5 }
   0xf   : > { %s407_s26 = scalar_select %p406_p3, %s3553_s24, 3  ;;  %v3604_v19 = vsub.s32 %v432_v15, %v3592_v16  ;;  %v3370_v41 = vld [vmem:[%s4606_s2 + $0x80] ss:$8 sps:$4 sm:$0xff]   ;;  %v3374_v49 = vld [vmem:[%s4606_s2 + $0xa4] ss:$8 sps:$4 sm:$0xff]   ;;  %vm2861_vm0 = vcmask 7168  }
  0x10   : > { %v3376_v51 = vld [vmem:[%s4606_s2 + $0xa0] ss:$8 sps:$4 sm:$0xff]   ;;  %v3377_v52 = vld [vmem:[%s4606_s2 + $0xb4] ss:$8 sps:$4 sm:$0xff]   ;;  %v3379_v53 = vld [vmem:[%s4606_s2 + $0xb0] ss:$8 sps:$4 sm:$0xff]  }
  0x11   : > { %1379 = vmatpush1.bf16.msra.mxu0 %v3352_v6  ;;  %3257 = vmatpush1.bf16.msra.mxu1 %v3352_v6  ;;  %s3054_s30 = sshll.u32 %s407_s26, 5  ;;  %v3380_v54 = vld [vmem:[%s4606_s2 + $0xc4] ss:$8 sps:$4 sm:$0xff]   ;;  %v3382_v56 = vld [vmem:[%s4606_s2 + $0xc0] ss:$8 sps:$4 sm:$0xff]   ;;  %p412_p4 = scmp.lt.s32.totalorder %s2957_s28, 127 }
  0x12   : > { %1380 = vmatprep.subr.bf16.mxu0 %v3353_v7  ;;  %3242 = vmatprep.subr.bf16.mxu1 %v3353_v7  ;;  %s410_s17 = scalar_lea.vmem %s4604_s0, %s3054_s30  ;;  %v3383_v57 = vld [vmem:[%s4606_s2 + $0xd4] ss:$8 sps:$4 sm:$0xff]   ;;  %v3692_v59 = vld [vmem:[%s4605_s1] sm:$0xff]  ;;  %v3385_v61 = vld [vmem:[%s4606_s2 + $0xd0] ss:$8 sps:$4 sm:$0xff]  }
  0x13   : > { %v3392_v21 = vld [vmem:[%s410_s17] ss:$8 sps:$4 sm:$0xff]   ;;  %v3394_v22 = vld [vmem:[%s410_s17 + $0x4] ss:$8 sps:$4 sm:$0xff]   ;;  %v3395_v23 = vld [vmem:[%s410_s17 + $0x10] ss:$8 sps:$4 sm:$0xff]  }
  0x14   : > { %v3397_v24 = vld [vmem:[%s410_s17 + $0x14] ss:$8 sps:$4 sm:$0xff]   ;;  %v3613_v26 = vrot.slane %v3392_v21, %v3604_v19  ;;  %v3616_v27 = vrot.slane %v3395_v23, %v3604_v19  ;;  %v443_v28 = vrot.slane %v3394_v22, %v3604_v19  ;;  %v3697_v60 = vld [vmem:[%s4605_s1 + $0x20] sm:$0xff]  ;;  %v3705_v62 = vld [vmem:[%s4605_s1 + $0x48] sm:$0xff]  ;;  %s4618_s28 = smov (!%p412_p4, %s2957_s28), 127 }
  0x15   : > { %1381 = vmatpush1.bf16.msra.mxu0 %v3355_v8  ;;  %3258 = vmatpush1.bf16.msra.mxu1 %v3355_v8  ;;  %v457_v29 = vrot.slane %v3397_v24, %v3604_v19  ;;  %v3710_v63 = vld [vmem:[%s4605_s1 + $0x68] sm:$0xff]  ;;  %v3389_v8 = vld [vmem:[%s4606_s2 + $0xf4] ss:$8 sps:$4 sm:$0xff]   ;;  %v3736_v12 = vld [vmem:[%s4605_s1 + $0x40] sm:$0xff]  ;;  %s2958_s29 = sshll.u32 %s4618_s28, 3 }
  0x16   : > { %1382 = vmatprep.subr.bf16.mxu0 %v3356_v9  ;;  %3243 = vmatprep.subr.bf16.mxu1 %v3356_v9  ;;  %v458_v31 = vcombine.low %v3613_v26, %v3616_v27  ;;  %v459_v0 = vcombine.high %v3613_v26, %v3616_v27  ;;  %v3386_v1 = vld [vmem:[%s4606_s2 + $0xe4] ss:$8 sps:$4 sm:$0xff]   ;;  %v3388_v6 = vld [vmem:[%s4606_s2 + $0xe0] ss:$8 sps:$4 sm:$0xff]   ;;  %v3391_v9 = vld [vmem:[%s4606_s2 + $0xf0] ss:$8 sps:$4 sm:$0xff]   ;;  %s4504_s14 = scalar_lea.vmem %s4616_s12, %s2958_s29 }
  0x17   : > { %v460_v34 = vcombine.low %v443_v28, %v457_v29  ;;  %v461_v35 = vcombine.high %v443_v28, %v457_v29  ;;  %v3398_v22 = vld [vmem:[%s4606_s2 + $0x100] ss:$8 sps:$4 sm:$0xff]   ;;  %v3403_v26 = vld [vmem:[%s4606_s2 + $0x114] ss:$8 sps:$4 sm:$0xff]   ;;  %v3401_v27 = vld [vmem:[%s4606_s2 + $0x110] ss:$8 sps:$4 sm:$0xff]  }
  0x18   : > { %v3632_v36 = vrot.slane %v458_v31, %v3604_v19  ;;  %v3725_v7 = vrot.slane %v459_v0, %v3604_v19 }
  0x19   : > { %1383 = vmatpush1.bf16.msra.mxu0 %v3358_v13  ;;  %3259 = vmatpush1.bf16.msra.mxu1 %v3358_v13  ;;  %v3645_v39 = vrot.slane %v460_v34, %v3604_v19  ;;  %v3648_v40 = vrot.slane %v461_v35, %v3604_v19  ;;  %v3741_v13 = vld [vmem:[%s4605_s1 + $0x60] sm:$0xff] }
  0x1a   : > { %1384 = vmatprep.subr.bf16.mxu0 %v3359_v14  ;;  %3244 = vmatprep.subr.bf16.mxu1 %v3359_v14  ;;  %v517_v42 = vrot.slane %v3632_v36, %v3626_v32  ;;  %v513_v58 = vrot.slane %v3632_v36, %v3679_v55  ;;  %v3400_v14 = vld [vmem:[%s4606_s2 + $0x104] ss:$8 sps:$4 sm:$0xff]  }
  0x1b   : > { %v3406_v34 = vld [vmem:[%s4606_s2 + $0x124] ss:$8 sps:$4 sm:$0xff]  }
  0x1c   : > { %v671_v44 = vadd.f32 %v517_v42, %v3637_v37  ;;  %v675_v45 = vadd.f32 %v517_v42, %v3642_v38  ;;  %v670_v2 = vadd.f32 %v513_v58, %v3692_v59  ;;  %v674_v3 = vadd.f32 %v513_v58, %v3697_v60 }
  0x1d   : > { %1385 = vmatpush1.bf16.msra.mxu0 %v3361_v17  ;;  %3260 = vmatpush1.bf16.msra.mxu1 %v3361_v17  ;;  %v679_v4 = vadd.f32 %v517_v42, %v3705_v62  ;;  %v683_v5 = vadd.f32 %v517_v42, %v3710_v63  ;;  %v682_v21 = vadd.f32 %v513_v58, %v3741_v13 }
  0x1e   : > { %1386 = vmatprep.subr.bf16.mxu0 %v3362_v18  ;;  %3245 = vmatprep.subr.bf16.mxu1 %v3362_v18  ;;  %v799_v47 = vmax.f32 %v671_v44, 0.0  ;;  %v803_v48 = vmax.f32 %v675_v45, 0.0  ;;  %v798_v10 = vmax.f32 %v670_v2, 0.0  ;;  %v802_v11 = vmax.f32 %v674_v3, 0.0 }
  0x1f   : > { %v807_v15 = vmax.f32 %v679_v4, 0.0  ;;  %v811_v17 = vmax.f32 %v683_v5, 0.0  ;;  %v533_v18 = vrot.slane %v3725_v7, %v3626_v32  ;;  %v810_v29 = vmax.f32 %v682_v21, 0.0  ;;  %v3415_v4 = vld [vmem:[%s4606_s2 + $0x154] ss:$8 sps:$4 sm:$0xff]  }
  0x20   : > { %v927_v50 = vpack.c.bf16 %v803_v48, %v799_v47  ;;  %v926_v19 = vpack.c.bf16 %v802_v11, %v798_v10  ;;  %v3775_v47 = vcombine.high %v3632_v36, %v3632_v36  ;;  %v3409_v48 = vld [vmem:[%s4606_s2 + $0x134] ss:$8 sps:$4 sm:$0xff]  }
  0x21   : > { %1387 = vmatpush1.bf16.msra.mxu0 %v3364_v20  ;;  %3261 = vmatpush1.bf16.msra.mxu1 %v3364_v20  ;;  %v678_v20 = vadd.f32 %v513_v58, %v3736_v12  ;;  %v931_v23 = vpack.c.bf16 %v811_v17, %v807_v15  ;;  %v687_v24 = vadd.f32 %v533_v18, %v3637_v37 }
  0x22   : > { %1388 = vmatprep.subr.bf16.mxu0 %v3365_v25  ;;  %3246 = vmatprep.subr.bf16.mxu1 %v3365_v25  ;;  %v691_v25 = vadd.f32 %v533_v18, %v3642_v38  ;;  %v695_v45 = vadd.f32 %v533_v18, %v3705_v62 }
  0x23   : > { %1406 = vmatprep.mubr.bf16.mxu0 %v927_v50  ;;  %v806_v28 = vmax.f32 %v678_v20, 0.0  ;;  %v815_v31 = vmax.f32 %v687_v24, 0.0  ;;  %v3416_v20 = vld [vmem:[%s4606_s2 + $0x160] ss:$8 sps:$4 sm:$0xff]   ;;  %v3421_v24 = vld [vmem:[%s4606_s2 + $0x174] ss:$8 sps:$4 sm:$0xff]  }
  0x25   : > { %1389 = vmatpush1.bf16.msra.mxu0 %v3367_v30  ;;  %3262 = vmatpush1.bf16.msra.mxu1 %v3367_v30  ;;  %v529_v30 = vrot.slane %v3725_v7, %v3679_v55  ;;  %v930_v35 = vpack.c.bf16 %v810_v29, %v806_v28  ;;  %v3419_v29 = vld [vmem:[%s4606_s2 + $0x170] ss:$8 sps:$4 sm:$0xff]  }
  0x26   : > { %1390 = vmatprep.subr.bf16.mxu0 %v3368_v33  ;;  %3247 = vmatprep.subr.bf16.mxu1 %v3368_v33  ;;  %v819_v33 = vmax.f32 %v691_v25, 0.0 }
  0x27   : > { %v690_v42 = vadd.f32 %v529_v30, %v3697_v60  ;;  %v694_v58 = vadd.f32 %v529_v30, %v3736_v12 }
  0x28   : > { %v935_v44 = vpack.c.bf16 %v819_v33, %v815_v31  ;;  %v3424_v31 = vld [vmem:[%s4606_s2 + $0x184] ss:$8 sps:$4 sm:$0xff]  }
  0x29   : > { %1391 = vmatpush1.bf16.msra.mxu0 %v3370_v41  ;;  %3263 = vmatpush1.bf16.msra.mxu1 %v3370_v41  ;;  %v686_v41 = vadd.f32 %v529_v30, %v3692_v59  ;;  %v822_v5 = vmax.f32 %v694_v58, 0.0 }
  0x2a   : > { %1392 = vmatprep.subr.bf16.mxu0 %v3371_v43  ;;  %3248 = vmatprep.subr.bf16.mxu1 %v3371_v43  ;;  %v3404_v43 = vld [vmem:[%s4606_s2 + $0x120] ss:$8 sps:$4 sm:$0xff]  }
  0x2b   : > { %v814_v50 = vmax.f32 %v686_v41, 0.0 }
  0x2d   : > { %1393 = vmatpush1.bf16.msra.mxu0 %v3373_v46  ;;  %3264 = vmatpush1.bf16.msra.mxu1 %v3373_v46  ;;  %v699_v46 = vadd.f32 %v533_v18, %v3710_v63 }
  0x2e   : > { %1394 = vmatprep.subr.bf16.mxu0 %v3374_v49  ;;  %3249 = vmatprep.subr.bf16.mxu1 %v3374_v49  ;;  %v3407_v49 = vld [vmem:[%s4606_s2 + $0x130] ss:$8 sps:$4 sm:$0xff]  }
  0x31   : > { %1395 = vmatpush1.bf16.msra.mxu0 %v3376_v51  ;;  %3265 = vmatpush1.bf16.msra.mxu1 %v3376_v51  ;;  %v818_v51 = vmax.f32 %v690_v42, 0.0 }
  0x32   : > { %1396 = vmatprep.subr.bf16.mxu0 %v3377_v52  ;;  %3250 = vmatprep.subr.bf16.mxu1 %v3377_v52  ;;  %v823_v52 = vmax.f32 %v695_v45, 0.0  ;;  %v3427_v45 = vld [vmem:[%s4606_s2 + $0x194] ss:$8 sps:$4 sm:$0xff]  }
  0x35   : > { %1397 = vmatpush1.bf16.msra.mxu0 %v3379_v53  ;;  %3266 = vmatpush1.bf16.msra.mxu1 %v3379_v53  ;;  %v827_v53 = vmax.f32 %v699_v46, 0.0 }
  0x36   : > { %1398 = vmatprep.subr.bf16.mxu0 %v3380_v54  ;;  %3251 = vmatprep.subr.bf16.mxu1 %v3380_v54  ;;  %v549_v54 = vrot.slane %v3775_v47, %v3626_v32 }
  0x37   : > { %v939_v0 = vpack.c.bf16 %v827_v53, %v823_v52  ;;  %v3425_v52 = vld [vmem:[%s4606_s2 + $0x190] ss:$8 sps:$4 sm:$0xff]   ;;  %v3430_v53 = vld [vmem:[%s4606_s2 + $0x1a4] ss:$8 sps:$4 sm:$0xff]  }
  0x38   : > { %v703_v2 = vadd.f32 %v549_v54, %v3637_v37  ;;  %v707_v3 = vadd.f32 %v549_v54, %v3642_v38  ;;  %v711_v21 = vadd.f32 %v549_v54, %v3705_v62 }
  0x39   : > { %1399 = vmatpush1.bf16.msra.mxu0 %v3382_v56  ;;  %3267 = vmatpush1.bf16.msra.mxu1 %v3382_v56  ;;  %v3412_v56 = vld [vmem:[%s4606_s2 + $0x144] ss:$8 sps:$4 sm:$0xff]  }
  0x3a   : > { %1400 = vmatprep.subr.bf16.mxu0 %v3383_v57  ;;  %3252 = vmatprep.subr.bf16.mxu1 %v3383_v57  ;;  %v934_v57 = vpack.c.bf16 %v818_v51, %v814_v50  ;;  %v831_v10 = vmax.f32 %v703_v2, 0.0  ;;  %v835_v11 = vmax.f32 %v707_v3, 0.0  ;;  %v3433_v2 = vld [vmem:[%s4606_s2 + $0x1b4] ss:$8 sps:$4 sm:$0xff]  }
  0x3d   : > { %1401 = vmatpush1.bf16.msra.mxu0 %v3385_v61  ;;  %3268 = vmatpush1.bf16.msra.mxu1 %v3385_v61  ;;  %v698_v61 = vadd.f32 %v529_v30, %v3741_v13 }
  0x3e   : > { %1402 = vmatprep.subr.bf16.mxu0 %v3386_v1  ;;  %3253 = vmatprep.subr.bf16.mxu1 %v3386_v1  ;;  %v3410_v1 = vld [vmem:[%s4606_s2 + $0x140] ss:$8 sps:$4 sm:$0xff]  }
  0x41   : > { %1403 = vmatpush1.bf16.msra.mxu0 %v3388_v6  ;;  %3269 = vmatpush1.bf16.msra.mxu1 %v3388_v6  ;;  %v826_v6 = vmax.f32 %v698_v61, 0.0 }
  0x42   : > { %1404 = vmatprep.subr.bf16.mxu0 %v3389_v8  ;;  %3254 = vmatprep.subr.bf16.mxu1 %v3389_v8  ;;  %v545_v8 = vrot.slane %v3775_v47, %v3679_v55 }
  0x43   : > { %v938_v15 = vpack.c.bf16 %v826_v6, %v822_v5 }
  0x44   : > { %v702_v17 = vadd.f32 %v545_v8, %v3692_v59  ;;  %v706_v18 = vadd.f32 %v545_v8, %v3697_v60 }
  0x45   : > { %1405 = vmatpush1.bf16.msra.mxu0 %v3391_v9  ;;  %3270 = vmatpush1.bf16.msra.mxu1 %v3391_v9  ;;  %v3413_v9 = vld [vmem:[%s4606_s2 + $0x150] ss:$8 sps:$4 sm:$0xff]  }
  0x46   : > { %1567 = vmatprep.subr.bf16.mxu0 %v3400_v14  ;;  %v3418_v14 = vld [vmem:[%s4606_s2 + $0x164] ss:$8 sps:$4 sm:$0xff]   ;;  %v830_v25 = vmax.f32 %v702_v17, 0.0 }
  0x48   : > { %1407 = vmatmul.mubr.bf16.vlgmr.msra.gmra.mrb[0].mxu0 %v926_v19  ;;  %v943_v19 = vpack.c.bf16 %v835_v11, %v831_v10  ;;  %v3436_v10 = vld [vmem:[%s4606_s2 + $0x1c4] ss:$8 sps:$4 sm:$0xff]  }
  0x49   : > { %1568 = vmatpush1.bf16.msra.mxu0 %v3398_v22  ;;  %1416 = vmatprep.mubr.bf16.mxu0 %v931_v23  ;;  %v715_v22 = vadd.f32 %v549_v54, %v3710_v63  ;;  %v3815_v23 = vcombine.high %v3725_v7, %v3725_v7 }
  0x4a   : > { %1569 = vmatprep.subr.bf16.mxu0 %v3403_v26  ;;  %v834_v26 = vmax.f32 %v706_v18, 0.0 }
  0x4b   : > { %v843_v28 = vmax.f32 %v715_v22, 0.0  ;;  %v565_v30 = vrot.slane %v3815_v23, %v3626_v32  ;;  %v577_v22 = vrot.slane %v3645_v39, %v3679_v55 }
  0x4c   : > { %v942_v33 = vpack.c.bf16 %v834_v26, %v830_v25 }
  0x4d   : > { %1570 = vmatpush1.bf16.msra.mxu0 %v3401_v27  ;;  %v839_v27 = vmax.f32 %v711_v21, 0.0  ;;  %v719_v42 = vadd.f32 %v565_v30, %v3637_v37  ;;  %v727_v61 = vadd.f32 %v565_v30, %v3705_v62  ;;  %v3439_v21 = vld [vmem:[%s4606_s2 + $0x1d4] ss:$8 sps:$4 sm:$0xff]  }
  0x4e   : > { %1571 = vmatprep.subr.bf16.mxu0 %v3406_v34  ;;  %v710_v34 = vadd.f32 %v545_v8, %v3736_v12 }
  0x4f   : > { %v947_v41 = vpack.c.bf16 %v843_v28, %v839_v27  ;;  %v847_v50 = vmax.f32 %v719_v42, 0.0  ;;  %v855_v5 = vmax.f32 %v727_v61, 0.0  ;;  %v3437_v28 = vld [vmem:[%s4606_s2 + $0x1d0] ss:$8 sps:$4 sm:$0xff]   ;;  %v597_v61 = vrot.slane %v3648_v40, %v3626_v32 }
  0x50   : > { %1417 = vmatmul.mubr.bf16.gmra.mrb[4].mxu0 %v930_v35  ;;  %v714_v35 = vadd.f32 %v545_v8, %v3741_v13  ;;  %v838_v46 = vmax.f32 %v710_v34, 0.0  ;;  %v581_v8 = vrot.slane %v3645_v39, %v3626_v32  ;;  %v738_v34 = vadd.f32 %v577_v22, %v3697_v60 }
  0x51   : > { %1572 = vmatpush1.bf16.msra.mxu0 %v3404_v43  ;;  %1426 = vmatprep.mubr.bf16.mxu0 %v935_v44  ;;  %v723_v43 = vadd.f32 %v565_v30, %v3642_v38  ;;  %v3422_v44 = vld [vmem:[%s4606_s2 + $0x180] ss:$8 sps:$4 sm:$0xff]  }
  0x52   : > { %1573 = vmatprep.subr.bf16.mxu0 %v3409_v48  ;;  %v842_v48 = vmax.f32 %v714_v35, 0.0  ;;  %v735_v18 = vadd.f32 %v581_v8, %v3637_v37  ;;  %v743_v35 = vadd.f32 %v581_v8, %v3705_v62 }
  0x53   : > { %v851_v51 = vmax.f32 %v723_v43, 0.0  ;;  %v747_v43 = vadd.f32 %v581_v8, %v3710_v63 }
  0x54   : > { %v946_v54 = vpack.c.bf16 %v842_v48, %v838_v46  ;;  %v863_v26 = vmax.f32 %v735_v18, 0.0  ;;  %v3445_v46 = vld [vmem:[%s4606_s2 + $0x1f4] ss:$8 sps:$4 sm:$0xff]  }
  0x55   : > { %1574 = vmatpush1.bf16.msra.mxu0 %v3407_v49  ;;  %v561_v49 = vrot.slane %v3815_v23, %v3679_v55  ;;  %v951_v58 = vpack.c.bf16 %v851_v51, %v847_v50 }
  0x56   : > { %1575 = vmatprep.subr.bf16.mxu0 %v3412_v56 }
  0x57   : > { %v718_v56 = vadd.f32 %v561_v49, %v3692_v59 }
  0x58   : > { %1427 = vmatmul.mubr.bf16.gmra.mrb[8].mxu0 %v934_v57  ;;  %v722_v57 = vadd.f32 %v561_v49, %v3697_v60 }
  0x59   : > { %1436 = vmatprep.mubr.bf16.mxu0 %v939_v0  ;;  %1576 = vmatpush1.bf16.msra.mxu0 %v3410_v1  ;;  %v731_v0 = vadd.f32 %v565_v30, %v3710_v63  ;;  %v3428_v1 = vld [vmem:[%s4606_s2 + $0x1a0] ss:$8 sps:$4 sm:$0xff]   ;;  %v846_v3 = vmax.f32 %v718_v56, 0.0  ;;  %v3884_v30 = vcombine.high %v3645_v39, %v3645_v39 }
  0x5a   : > { %1577 = vmatprep.subr.bf16.mxu0 %v3415_v4  ;;  %v850_v4 = vmax.f32 %v722_v57, 0.0 }
  0x5b   : > { %v859_v6 = vmax.f32 %v731_v0, 0.0  ;;  %v3443_v0 = vld [vmem:[%s4606_s2 + $0x1f0] ss:$8 sps:$4 sm:$0xff]  }
  0x5c   : > { %v950_v11 = vpack.c.bf16 %v850_v4, %v846_v3  ;;  %v742_v4 = vadd.f32 %v577_v22, %v3736_v12 }
  0x5d   : > { %1578 = vmatpush1.bf16.msra.mxu0 %v3413_v9  ;;  %v3431_v9 = vld [vmem:[%s4606_s2 + $0x1b0] ss:$8 sps:$4 sm:$0xff]   ;;  %v955_v17 = vpack.c.bf16 %v859_v6, %v855_v5 }
  0x5e   : > { %1579 = vmatprep.subr.bf16.mxu0 %v3418_v14  ;;  %v726_v14 = vadd.f32 %v561_v49, %v3736_v12 }
  0x60   : > { %1437 = vmatmul.mubr.bf16.gmra.mrb[12].mxu0 %v938_v15  ;;  %v730_v15 = vadd.f32 %v561_v49, %v3741_v13 }
  0x61   : > { %1446 = vmatprep.mubr.bf16.mxu0 %v943_v19  ;;  %1580 = vmatpush1.bf16.msra.mxu0 %v3416_v20  ;;  %v739_v19 = vadd.f32 %v581_v8, %v3642_v38  ;;  %v3434_v20 = vld [vmem:[%s4606_s2 + $0x1c0] ss:$8 sps:$4 sm:$0xff]   ;;  %v746_v8 = vadd.f32 %v577_v22, %v3741_v13 }
  0x62   : > { %1581 = vmatprep.subr.bf16.mxu0 %v3421_v24  ;;  %v854_v24 = vmax.f32 %v726_v14, 0.0  ;;  %v858_v25 = vmax.f32 %v730_v15, 0.0 }
  0x63   : > { %v867_v27 = vmax.f32 %v739_v19, 0.0 }
  0x65   : > { %1582 = vmatpush1.bf16.msra.mxu0 %v3419_v29  ;;  %v3442_v29 = vld [vmem:[%s4606_s2 + $0x1e4] ss:$8 sps:$4 sm:$0xff]   ;;  %v959_v42 = vpack.c.bf16 %v867_v27, %v863_v26 }
  0x66   : > { %1583 = vmatprep.subr.bf16.mxu0 %v3424_v31  ;;  %v734_v31 = vadd.f32 %v577_v22, %v3692_v59 }
  0x68   : > { %1447 = vmatmul.mubr.bf16.gmra.mrb[16].mxu0 %v942_v33  ;;  %v954_v33 = vpack.c.bf16 %v858_v25, %v854_v24  ;;  %v862_v50 = vmax.f32 %v734_v31, 0.0  ;;  %v3921_v31 = vcombine.high %v3648_v40, %v3648_v40 }
  0x69   : > { %1456 = vmatprep.mubr.bf16.mxu0 %v947_v41  ;;  %1584 = vmatpush1.bf16.msra.mxu0 %v3422_v44  ;;  %v613_v41 = vrot.slane %v3884_v30, %v3626_v32  ;;  %v3440_v44 = vld [vmem:[%s4606_s2 + $0x1e0] ss:$8 sps:$4 sm:$0xff]  }
  0x6a   : > { %1585 = vmatprep.subr.bf16.mxu0 %v3427_v45  ;;  %v609_v45 = vrot.slane %v3884_v30, %v3679_v55 }
  0x6b   : > { %v767_v48 = vadd.f32 %v613_v41, %v3637_v37  ;;  %v771_v49 = vadd.f32 %v613_v41, %v3642_v38  ;;  %v775_v14 = vadd.f32 %v613_v41, %v3705_v62  ;;  %v779_v15 = vadd.f32 %v613_v41, %v3710_v63 }
  0x6c   : > { %v766_v51 = vadd.f32 %v609_v45, %v3692_v59  ;;  %v774_v18 = vadd.f32 %v609_v45, %v3736_v12  ;;  %v778_v19 = vadd.f32 %v609_v45, %v3741_v13 }
  0x6d   : > { %1586 = vmatpush1.bf16.msra.mxu0 %v3425_v52  ;;  %v770_v52 = vadd.f32 %v609_v45, %v3697_v60  ;;  %v895_v56 = vmax.f32 %v767_v48, 0.0  ;;  %v899_v57 = vmax.f32 %v771_v49, 0.0  ;;  %v903_v22 = vmax.f32 %v775_v14, 0.0 }
  0x6e   : > { %1587 = vmatprep.subr.bf16.mxu0 %v3430_v53  ;;  %v866_v53 = vmax.f32 %v738_v34, 0.0  ;;  %v907_v24 = vmax.f32 %v779_v15, 0.0  ;;  %v902_v27 = vmax.f32 %v774_v18, 0.0  ;;  %v759_v45 = vadd.f32 %v597_v61, %v3705_v62 }
  0x6f   : > { %v975_v3 = vpack.c.bf16 %v899_v57, %v895_v56  ;;  %v625_v48 = vrot.slane %v3921_v31, %v3679_v55 }
  0x70   : > { %1457 = vmatmul.mubr.bf16.gmra.mrb[20].mxu0 %v946_v54  ;;  %v871_v54 = vmax.f32 %v743_v35, 0.0  ;;  %v958_v6 = vpack.c.bf16 %v866_v53, %v862_v50 }
  0x71   : > { %1466 = vmatprep.mubr.bf16.mxu0 %v951_v58  ;;  %1588 = vmatpush1.bf16.msra.mxu0 %v3428_v1  ;;  %v875_v58 = vmax.f32 %v747_v43, 0.0  ;;  %v894_v1 = vmax.f32 %v766_v51, 0.0  ;;  %v629_v43 = vrot.slane %v3921_v31, %v3626_v32  ;;  %v786_v53 = vadd.f32 %v625_v48, %v3697_v60 }
  0x72   : > { %1589 = vmatprep.subr.bf16.mxu0 %v3433_v2  ;;  %v898_v2 = vmax.f32 %v770_v52, 0.0  ;;  %1526 = vmatprep.mubr.bf16.mxu1 %v975_v3  ;;  %v782_v52 = vadd.f32 %v625_v48, %v3692_v59  ;;  %v790_v15 = vadd.f32 %v625_v48, %v3736_v12 }
  0x73   : > { %v783_v49 = vadd.f32 %v629_v43, %v3637_v37  ;;  %v787_v50 = vadd.f32 %v629_v43, %v3642_v38  ;;  %v795_v14 = vadd.f32 %v629_v43, %v3710_v63 }
  0x74   : > { %v974_v5 = vpack.c.bf16 %v898_v2, %v894_v1  ;;  %v910_v1 = vmax.f32 %v782_v52, 0.0  ;;  %v914_v2 = vmax.f32 %v786_v53, 0.0  ;;  %v4004_v52 = vld [vmem:[%s4605_s1 + $0x70] sm:$0xff] }
  0x75   : > { %1590 = vmatpush1.bf16.msra.mxu0 %v3431_v9  ;;  %v963_v9 = vpack.c.bf16 %v875_v58, %v871_v54  ;;  %v911_v57 = vmax.f32 %v783_v49, 0.0  ;;  %v915_v58 = vmax.f32 %v787_v50, 0.0 }
  0x76   : > { %1591 = vmatprep.subr.bf16.mxu0 %v3436_v10  ;;  %v751_v10 = vadd.f32 %v597_v61, %v3637_v37  ;;  %1527 = vmatmul.mubr.bf16.vlgmr.msra.gmra.mrb[0].mxu1 %v974_v5  ;;  %v3943_v37 = vld [vmem:[%s4605_s1 + $0x18] sm:$0xff]  ;;  %v982_v3 = vpack.c.bf16 %v914_v2, %v910_v1 }
  0x78   : > { %1467 = vmatmul.mubr.bf16.gmra.mrb[24].mxu0 %v950_v11  ;;  %v755_v11 = vadd.f32 %v597_v61, %v3642_v38  ;;  %v879_v25 = vmax.f32 %v751_v10, 0.0  ;;  %v3948_v38 = vld [vmem:[%s4605_s1 + $0x38] sm:$0xff] }
  0x79   : > { %1476 = vmatprep.mubr.bf16.mxu0 %v955_v17  ;;  %1592 = vmatpush1.bf16.msra.mxu0 %v3434_v20  ;;  %v870_v17 = vmax.f32 %v742_v4, 0.0  ;;  %v874_v20 = vmax.f32 %v746_v8, 0.0 }
  0x7a   : > { %1593 = vmatprep.subr.bf16.mxu0 %v3439_v21  ;;  %v593_v21 = vrot.slane %v3648_v40, %v3679_v55  ;;  %v883_v26 = vmax.f32 %v755_v11, 0.0  ;;  %v791_v11 = vadd.f32 %v629_v43, %v3705_v62  ;;  %v3966_v62 = vld [vmem:[%s4605_s1 + $0x10] sm:$0xff] }
  0x7b   : > { %v962_v35 = vpack.c.bf16 %v874_v20, %v870_v17  ;;  %v794_v17 = vadd.f32 %v625_v48, %v3741_v13  ;;  %v3448_v48 = vld [vmem:[%s4609_s5 + $0x48] sm:$0xff]  }
  0x7c   : > { %v750_v41 = vadd.f32 %v593_v21, %v3692_v59  ;;  %v983_v59 = vpack.c.bf16 %v915_v58, %v911_v57  ;;  %v758_v5 = vadd.f32 %v593_v21, %v3736_v12  ;;  %v919_v20 = vmax.f32 %v791_v11, 0.0 }
  0x7d   : > { %1594 = vmatpush1.bf16.msra.mxu0 %v3437_v28  ;;  %v906_v28 = vmax.f32 %v778_v19, 0.0  ;;  %v922_v12 = vmax.f32 %v794_v17, 0.0 }
  0x7e   : > { %1595 = vmatprep.subr.bf16.mxu0 %v3442_v29  ;;  %v979_v29 = vpack.c.bf16 %v907_v24, %v903_v22  ;;  %v878_v54 = vmax.f32 %v750_v41, 0.0  ;;  %v886_v18 = vmax.f32 %v758_v5, 0.0 }
  0x7f   : > { %v978_v34 = vpack.c.bf16 %v906_v28, %v902_v27 }
  0x80   : > { %1477 = vmatmul.mubr.bf16.gmra.mrb[28].mxu0 %v954_v33  ;;  %v3924_v33 = vsub.s32 3, %v3592_v16  ;;  %1536 = vmatprep.mubr.bf16.mxu1 %v979_v29 }
  0x81   : > { %1486 = vmatprep.mubr.bf16.mxu0 %v959_v42  ;;  %1596 = vmatpush1.bf16.msra.mxu0 %v3440_v44  ;;  %v754_v42 = vadd.f32 %v593_v21, %v3697_v60  ;;  %v967_v44 = vpack.c.bf16 %v883_v26, %v879_v25  ;;  %v3951_v60 = vsub.s32 2, %v3592_v16  ;;  %v3981_v25 = vld [vmem:[%s4605_s1 + $0x78] sm:$0xff] }
  0x82   : > { %1597 = vmatprep.subr.bf16.mxu0 %v3445_v46  ;;  %v763_v46 = vadd.f32 %v597_v61, %v3710_v63  ;;  %1537 = vmatmul.mubr.bf16.gmra.mrb[4].mxu1 %v978_v34  ;;  %v525_v51 = vrot.slane %v3632_v36, %v3924_v33  ;;  %v887_v61 = vmax.f32 %v759_v45, 0.0  ;;  %v918_v63 = vmax.f32 %v790_v15, 0.0  ;;  %v3446_v45 = vld [vmem:[%s4609_s5 + $0x40] sm:$0xff]  }
  0x83   : > { %v882_v56 = vmax.f32 %v754_v42, 0.0  ;;  %1546 = vmatprep.mubr.bf16.mxu1 %v983_v59  ;;  %v521_v16 = vrot.slane %v3632_v36, %v3951_v60  ;;  %v3971_v36 = vld [vmem:[%s4605_s1 + $0x30] sm:$0xff]  ;;  %v541_v53 = vrot.slane %v3725_v7, %v3924_v33  ;;  %3055 = vmatprep.subr.bf16.mxu1 %v3446_v45  ;;  %v537_v5 = vrot.slane %v3725_v7, %v3951_v60  ;;  %v3454_v7 = vld [vmem:[%s4609_s5 + $0x60] sm:$0xff]  }
  0x84   : > { %v677_v10 = vadd.f32 %v525_v51, %v3948_v38  ;;  %v986_v27 = vpack.c.bf16 %v922_v12, %v918_v63  ;;  %v685_v42 = vadd.f32 %v525_v51, %v3981_v25  ;;  %v3451_v59 = vld [vmem:[%s4609_s5 + $0x10] sm:$0xff]   ;;  %v557_v63 = vrot.slane %v3775_v47, %v3924_v33 }
  0x85   : > { %1598 = vmatpush1.bf16.msra.mxu0 %v3443_v0  ;;  %v891_v0 = vmax.f32 %v763_v46, 0.0  ;;  %v966_v4 = vpack.c.bf16 %v882_v56, %v878_v54  ;;  %v672_v29 = vadd.f32 %v521_v16, %v3966_v62  ;;  %v676_v34 = vadd.f32 %v521_v16, %v3971_v36  ;;  %v3447_v46 = vld [vmem:[%s4609_s5] sm:$0xff]   ;;  %v3449_v54 = vld [vmem:[%s4609_s5 + $0x8] sm:$0xff]  }
  0x86   : > { %v805_v24 = vmax.f32 %v677_v10, 0.0  ;;  %v813_v50 = vmax.f32 %v685_v42, 0.0  ;;  %3056 = vmatpush3.bf16.msra.mxu1 %v3447_v46  ;;  %v684_v58 = vadd.f32 %v521_v16, %v4004_v52  ;;  %v689_v1 = vadd.f32 %v541_v53, %v3943_v37  ;;  %v3453_v10 = vld [vmem:[%s4609_s5 + $0x18] sm:$0xff]  }
  0x87   : > { %v971_v8 = vpack.c.bf16 %v891_v0, %v887_v61  ;;  %v800_v43 = vmax.f32 %v672_v29, 0.0  ;;  %3057 = vmatprep.subr.bf16.mxu1 %v3448_v48  ;;  %v3450_v61 = vld [vmem:[%s4609_s5 + $0x50] sm:$0xff]   ;;  %v693_v2 = vadd.f32 %v541_v53, %v3948_v38  ;;  %v705_v29 = vadd.f32 %v557_v63, %v3943_v37 }
  0x88   : > { %1487 = vmatmul.mubr.bf16.gmra.mrb[32].mxu0 %v958_v6  ;;  %v762_v6 = vadd.f32 %v593_v21, %v3741_v13  ;;  %v923_v21 = vmax.f32 %v795_v14, 0.0  ;;  %v3976_v13 = vld [vmem:[%s4605_s1 + $0x58] sm:$0xff]  ;;  %v688_v14 = vadd.f32 %v537_v5, %v3966_v62  ;;  %v553_v42 = vrot.slane %v3775_v47, %v3951_v60 }
  0x89   : > { %1496 = vmatprep.mubr.bf16.mxu0 %v963_v9  ;;  %v673_v9 = vadd.f32 %v525_v51, %v3943_v37  ;;  %v681_v41 = vadd.f32 %v525_v51, %v3976_v13  ;;  %v3999_v51 = vld [vmem:[%s4605_s1 + $0x50] sm:$0xff]  ;;  %v697_v17 = vadd.f32 %v541_v53, %v3976_v13  ;;  %v573_v47 = vrot.slane %v3815_v23, %v3924_v33 }
  0x8a   : > { %1547 = vmatmul.mubr.bf16.gmra.mrb[8].mxu1 %v982_v3  ;;  %v890_v19 = vmax.f32 %v762_v6, 0.0  ;;  %v987_v26 = vpack.c.bf16 %v923_v21, %v919_v20  ;;  %v680_v57 = vadd.f32 %v521_v16, %v3999_v51  ;;  %v3452_v6 = vld [vmem:[%s4609_s5 + $0x58] sm:$0xff]   ;;  %v692_v16 = vadd.f32 %v537_v5, %v3971_v36 }
  0x8b   : > { %v801_v22 = vmax.f32 %v673_v9, 0.0  ;;  %v809_v49 = vmax.f32 %v681_v41, 0.0  ;;  %3058 = vmatpush3.bf16.msra.mxu1 %v3449_v54  ;;  %v821_v9 = vmax.f32 %v693_v2, 0.0  ;;  %v816_v20 = vmax.f32 %v688_v14, 0.0 }
  0x8c   : > { %v970_v28 = vpack.c.bf16 %v890_v19, %v886_v18  ;;  %1556 = vmatprep.mubr.bf16.mxu1 %v987_v26  ;;  %v808_v3 = vmax.f32 %v680_v57, 0.0  ;;  %3059 = vmatprep.subr.bf16.mxu1 %v3450_v61  ;;  %v701_v18 = vadd.f32 %v541_v53, %v3981_v25  ;;  %v3455_v19 = vld [vmem:[%s4609_s5 + $0x20] sm:$0xff]   ;;  %v820_v21 = vmax.f32 %v692_v16, 0.0 }
  0x8d   : > { %v933_v0 = vpack.c.bf16 %v813_v50, %v809_v49  ;;  %v696_v26 = vadd.f32 %v537_v5, %v3999_v51  ;;  %v704_v46 = vadd.f32 %v553_v42, %v3966_v62  ;;  %v708_v48 = vadd.f32 %v553_v42, %v3971_v36 }
  0x8e   : > { %v936_v12 = vpack.c.bf16 %v820_v21, %v816_v20  ;;  %v713_v50 = vadd.f32 %v557_v63, %v3976_v13  ;;  %v717_v53 = vadd.f32 %v557_v63, %v3981_v25 }
  0x8f   : > { %3060 = vmatpush3.bf16.msra.mxu1 %v3451_v59  ;;  %v832_v54 = vmax.f32 %v704_v46, 0.0  ;;  %v721_v59 = vadd.f32 %v573_v47, %v3943_v37 }
  0x90   : > { %1497 = vmatmul.mubr.bf16.gmra.mrb[36].mxu0 %v962_v35  ;;  %v929_v35 = vpack.c.bf16 %v805_v24, %v801_v22  ;;  %3061 = vmatprep.subr.bf16.mxu1 %v3452_v6  ;;  %v825_v22 = vmax.f32 %v697_v17, 0.0  ;;  %v829_v24 = vmax.f32 %v701_v18, 0.0  ;;  %v841_v57 = vmax.f32 %v713_v50, 0.0 }
  0x91   : > { %1506 = vmatprep.mubr.bf16.mxu0 %v967_v44  ;;  %v804_v44 = vmax.f32 %v676_v34, 0.0  ;;  %v709_v34 = vadd.f32 %v557_v63, %v3948_v38  ;;  %v569_v6 = vrot.slane %v3815_v23, %v3951_v60  ;;  %v589_v23 = vrot.slane %v3645_v39, %v3924_v33 }
  0x92   : > { %1557 = vmatmul.mubr.bf16.gmra.mrb[12].mxu1 %v986_v27  ;;  %v700_v27 = vadd.f32 %v537_v5, %v4004_v52 }
  0x93   : > { %v928_v56 = vpack.c.bf16 %v804_v44, %v800_v43  ;;  %3062 = vmatpush3.bf16.msra.mxu1 %v3453_v10  ;;  %v833_v43 = vmax.f32 %v705_v29, 0.0  ;;  %v837_v44 = vmax.f32 %v709_v34, 0.0  ;;  %v724_v14 = vadd.f32 %v569_v6, %v3971_v36 }
  0x94   : > { %3063 = vmatprep.subr.bf16.mxu1 %v3454_v7  ;;  %v828_v41 = vmax.f32 %v700_v27, 0.0  ;;  %v729_v7 = vadd.f32 %v573_v47, %v3976_v13  ;;  %v585_v29 = vrot.slane %v3645_v39, %v3951_v60  ;;  %v749_v46 = vadd.f32 %v589_v23, %v3981_v25 }
  0x95   : > { %v945_v49 = vpack.c.bf16 %v837_v44, %v833_v43  ;;  %v852_v18 = vmax.f32 %v724_v14, 0.0  ;;  %v605_v39 = vrot.slane %v3648_v40, %v3924_v33 }
  0x96   : > { %v740_v43 = vadd.f32 %v585_v29, %v3971_v36 }
  0x97   : > { %3064 = vmatpush3.bf16.msra.mxu1 %v3455_v19  ;;  %v857_v19 = vmax.f32 %v729_v7, 0.0 }
  0x98   : > { %1507 = vmatmul.mubr.bf16.gmra.mrb[40].mxu0 %v966_v4  ;;  %v812_v4 = vmax.f32 %v684_v58, 0.0  ;;  %v845_v58 = vmax.f32 %v717_v53, 0.0  ;;  %v877_v53 = vmax.f32 %v749_v46, 0.0 }
  0x99   : > { %1516 = vmatprep.mubr.bf16.mxu0 %v971_v8  ;;  %v817_v8 = vmax.f32 %v689_v1, 0.0  ;;  %v716_v1 = vadd.f32 %v553_v42, %v4004_v52 }
  0x9a   : > { %v932_v11 = vpack.c.bf16 %v812_v4, %v808_v3  ;;  %v949_v2 = vpack.c.bf16 %v845_v58, %v841_v57  ;;  %v725_v3 = vadd.f32 %v573_v47, %v3948_v38  ;;  %v748_v57 = vadd.f32 %v585_v29, %v4004_v52 }
  0x9b   : > { %v937_v15 = vpack.c.bf16 %v821_v9, %v817_v8  ;;  %v844_v5 = vmax.f32 %v716_v1, 0.0  ;;  %v849_v8 = vmax.f32 %v721_v59, 0.0 }
  0x9c   : > { %v853_v9 = vmax.f32 %v725_v3, 0.0  ;;  %v876_v1 = vmax.f32 %v748_v57, 0.0 }
  0x9e   : > { %v953_v16 = vpack.c.bf16 %v853_v9, %v849_v8  ;;  %v761_v9 = vadd.f32 %v605_v39, %v3976_v13 }
  0xa0   : > { %1517 = vmatmul.mubr.bf16.gmra.mrb[44].mxu0 %v970_v28  ;;  %v941_v28 = vpack.c.bf16 %v829_v24, %v825_v22  ;;  %v728_v22 = vadd.f32 %v569_v6, %v3999_v51  ;;  %v732_v24 = vadd.f32 %v569_v6, %v4004_v52 }
  0xa1   : > { %1599 = vmatprep.mubr.bf16.mxu0 %v929_v35  ;;  %v824_v35 = vmax.f32 %v696_v26, 0.0  ;;  %v741_v26 = vadd.f32 %v589_v23, %v3948_v38 }
  0xa2   : > { %v856_v27 = vmax.f32 %v728_v22, 0.0 }
  0xa3   : > { %v940_v45 = vpack.c.bf16 %v828_v41, %v824_v35  ;;  %v869_v35 = vmax.f32 %v741_v26, 0.0  ;;  %v3456_v26 = vld [vmem:[%s4609_s5 + $0x68] sm:$0xff]  }
  0xa4   : > { %3065 = vmatprep.subr.bf16.mxu1 %v3456_v26  ;;  %v1836_v26 = vld [vmem:[%s4608_s4] sm:$0x3] }
  0xa8   : > { %1600 = vmatmul.mubr.bf16.vlgmr.msra.gmra.mrb[0].mxu0 %v928_v56  ;;  %v836_v56 = vmax.f32 %v708_v48, 0.0 }
  0xa9   : > { %1609 = vmatprep.mubr.bf16.mxu0 %v933_v0  ;;  %v712_v0 = vadd.f32 %v553_v42, %v3999_v51  ;;  %v736_v42 = vadd.f32 %v585_v29, %v3966_v62 }
  0xaa   : > { %v944_v61 = vpack.c.bf16 %v836_v56, %v832_v54  ;;  %v744_v56 = vadd.f32 %v585_v29, %v3999_v51 }
  0xab   : > { %v840_v4 = vmax.f32 %v712_v0, 0.0  ;;  %v864_v48 = vmax.f32 %v736_v42, 0.0  ;;  %v3458_v42 = vld [vmem:[%s4609_s5 + $0x70] sm:$0xff]  }
  0xac   : > { %v872_v0 = vmax.f32 %v744_v56, 0.0 }
  0xad   : > { %v948_v10 = vpack.c.bf16 %v844_v5, %v840_v4 }
  0xae   : > { %v964_v4 = vpack.c.bf16 %v876_v1, %v872_v0  ;;  %v633_v0 = vrot.slane %v3921_v31, %v3951_v60 }
  0xb0   : > { %1610 = vmatmul.mubr.bf16.gmra.mrb[4].mxu0 %v932_v11  ;;  %v720_v11 = vadd.f32 %v569_v6, %v3966_v62 }
  0xb1   : > { %1619 = vmatprep.mubr.bf16.mxu0 %v937_v15  ;;  %v733_v15 = vadd.f32 %v573_v47, %v3981_v25  ;;  %v753_v47 = vadd.f32 %v605_v39, %v3943_v37 }
  0xb2   : > { %v848_v17 = vmax.f32 %v720_v11, 0.0 }
  0xb3   : > { %v861_v20 = vmax.f32 %v733_v15, 0.0  ;;  %v881_v59 = vmax.f32 %v753_v47, 0.0 }
  0xb4   : > { %v952_v21 = vpack.c.bf16 %v852_v18, %v848_v17 }
  0xb5   : > { %v957_v63 = vpack.c.bf16 %v861_v20, %v857_v19 }
  0xb8   : > { %1620 = vmatmul.mubr.bf16.gmra.mrb[8].mxu0 %v936_v12  ;;  %v737_v12 = vadd.f32 %v589_v23, %v3943_v37 }
  0xb9   : > { %1629 = vmatprep.mubr.bf16.mxu0 %v941_v28  ;;  %v860_v28 = vmax.f32 %v732_v24, 0.0  ;;  %v617_v24 = vrot.slane %v3884_v30, %v3951_v60 }
  0xba   : > { %v865_v34 = vmax.f32 %v737_v12, 0.0 }
  0xbb   : > { %v956_v41 = vpack.c.bf16 %v860_v28, %v856_v27  ;;  %v3457_v27 = vld [vmem:[%s4609_s5 + $0x28] sm:$0xff]   ;;  %v768_v29 = vadd.f32 %v617_v24, %v3966_v62  ;;  %v780_v56 = vadd.f32 %v617_v24, %v4004_v52 }
  0xbc   : > { %v961_v44 = vpack.c.bf16 %v869_v35, %v865_v34  ;;  %v772_v34 = vadd.f32 %v617_v24, %v3971_v36  ;;  %3066 = vmatpush3.bf16.msra.mxu1 %v3457_v27 }
  0xbd   : > { %3067 = vmatprep.subr.bf16.mxu1 %v3458_v42 }
  0xc0   : > { %1630 = vmatmul.mubr.bf16.gmra.mrb[12].mxu0 %v940_v45  ;;  %v745_v45 = vadd.f32 %v589_v23, %v3976_v13 }
  0xc1   : > { %1639 = vmatprep.mubr.bf16.mxu0 %v945_v49  ;;  %v868_v49 = vmax.f32 %v740_v43, 0.0  ;;  %v3459_v43 = vld [vmem:[%s4609_s5 + $0x30] sm:$0xff]  }
  0xc2   : > { %v873_v50 = vmax.f32 %v745_v45, 0.0  ;;  %v900_v45 = vmax.f32 %v772_v34, 0.0  ;;  %3068 = vmatpush3.bf16.msra.mxu1 %v3459_v43  ;;  %v4179_v34 = vrot.slane %v1836_v26, %v3626_v32 }
  0xc3   : > { %v960_v54 = vpack.c.bf16 %v868_v49, %v864_v48  ;;  %v637_v49 = vrot.slane %v3921_v31, %v3924_v33 }
  0xc4   : > { %v965_v58 = vpack.c.bf16 %v877_v53, %v873_v50  ;;  %v3460_v50 = vld [vmem:[%s4609_s5 + $0x78] sm:$0xff]  }
  0xc5   : > { %v3461_v53 = vld [vmem:[%s4609_s5 + $0x38] sm:$0xff]   ;;  %3069 = vmatprep.subr.bf16.mxu1 %v3460_v50 }
  0xc6   : > { %3070 = vmatpush3.bf16.msra.mxu1 %v3461_v53 }
  0xc8   : > { %1640 = vmatmul.mubr.bf16.gmra.mrb[16].mxu0 %v944_v61  ;;  %v757_v61 = vadd.f32 %v605_v39, %v3948_v38 }
  0xc9   : > { %1649 = vmatprep.mubr.bf16.mxu0 %v949_v2  ;;  %v601_v2 = vrot.slane %v3648_v40, %v3951_v60  ;;  %v621_v40 = vrot.slane %v3884_v30, %v3924_v33  ;;  %v789_v33 = vadd.f32 %v637_v49, %v3948_v38  ;;  %v792_v60 = vadd.f32 %v633_v0, %v3999_v51 }
  0xca   : > { %v885_v3 = vmax.f32 %v757_v61, 0.0  ;;  %v908_v61 = vmax.f32 %v780_v56, 0.0 }
  0xcb   : > { %v752_v5 = vadd.f32 %v601_v2, %v3966_v62  ;;  %v756_v6 = vadd.f32 %v601_v2, %v3971_v36  ;;  %v760_v17 = vadd.f32 %v601_v2, %v3999_v51  ;;  %v764_v18 = vadd.f32 %v601_v2, %v4004_v52 }
  0xcc   : > { %v969_v8 = vpack.c.bf16 %v885_v3, %v881_v59  ;;  %v769_v20 = vadd.f32 %v621_v40, %v3943_v37  ;;  %v773_v23 = vadd.f32 %v621_v40, %v3948_v38  ;;  %v777_v30 = vadd.f32 %v621_v40, %v3976_v13 }
  0xcd   : > { %v880_v11 = vmax.f32 %v752_v5, 0.0  ;;  %v884_v14 = vmax.f32 %v756_v6, 0.0  ;;  %v892_v22 = vmax.f32 %v764_v18, 0.0  ;;  %v917_v2 = vmax.f32 %v789_v33, 0.0 }
  0xce   : > { %v901_v12 = vmax.f32 %v773_v23, 0.0  ;;  %v905_v46 = vmax.f32 %v777_v30, 0.0  ;;  %v784_v3 = vadd.f32 %v633_v0, %v3966_v62  ;;  %v797_v38 = vadd.f32 %v637_v49, %v3981_v25 }
  0xcf   : > { %v968_v15 = vpack.c.bf16 %v884_v14, %v880_v11  ;;  %v796_v11 = vadd.f32 %v633_v0, %v4004_v52  ;;  %v920_v62 = vmax.f32 %v792_v60, 0.0 }
  0xd0   : > { %1650 = vmatmul.mubr.bf16.gmra.mrb[20].mxu0 %v948_v10  ;;  %v765_v10 = vadd.f32 %v605_v39, %v3981_v25  ;;  %v912_v6 = vmax.f32 %v784_v3, 0.0 }
  0xd1   : > { %1659 = vmatprep.mubr.bf16.mxu0 %v953_v16  ;;  %v889_v16 = vmax.f32 %v761_v9, 0.0 }
  0xd2   : > { %v893_v7 = vmax.f32 %v765_v10, 0.0  ;;  %v925_v10 = vmax.f32 %v797_v38, 0.0 }
  0xd4   : > { %v973_v19 = vpack.c.bf16 %v893_v7, %v889_v16 }
  0xd8   : > { %1660 = vmatmul.mubr.bf16.gmra.mrb[24].mxu0 %v952_v21  ;;  %v888_v21 = vmax.f32 %v760_v17, 0.0 }
  0xd9   : > { %1669 = vmatprep.mubr.bf16.mxu0 %v957_v63  ;;  %v897_v63 = vmax.f32 %v769_v20, 0.0 }
  0xda   : > { %v972_v28 = vpack.c.bf16 %v892_v22, %v888_v21 }
  0xdb   : > { %v977_v35 = vpack.c.bf16 %v901_v12, %v897_v63  ;;  %v1760_v12 = vld [vmem:[%s4607_s3] sm:$0x3] }
  0xdc   : > { %v4170_v27 = vrot.slane %v1760_v12, %v3679_v55 }
  0xe0   : > { %1670 = vmatmul.mubr.bf16.gmra.mrb[28].mxu0 %v956_v41  ;;  %v781_v41 = vadd.f32 %v621_v40, %v3981_v25 }
  0xe1   : > { %1679 = vmatprep.mubr.bf16.mxu0 %v961_v44  ;;  %v896_v44 = vmax.f32 %v768_v29, 0.0  ;;  %v4176_v29 = vrot.slane %v1836_v26, %v3679_v55 }
  0xe2   : > { %v909_v48 = vmax.f32 %v781_v41, 0.0 }
  0xe3   : > { %v976_v39 = vpack.c.bf16 %v900_v45, %v896_v44 }
  0xe4   : > { %v981_v57 = vpack.c.bf16 %v909_v48, %v905_v46 }
  0xe8   : > { %1680 = vmatmul.mubr.bf16.gmra.mrb[32].mxu0 %v960_v54  ;;  %v776_v54 = vadd.f32 %v617_v24, %v3999_v51 }
  0xe9   : > { %1689 = vmatprep.mubr.bf16.mxu0 %v965_v58  ;;  %v785_v58 = vadd.f32 %v637_v49, %v3943_v37  ;;  %v793_v37 = vadd.f32 %v637_v49, %v3976_v13 }
  0xea   : > { %v904_v47 = vmax.f32 %v776_v54, 0.0 }
  0xeb   : > { %v913_v1 = vmax.f32 %v785_v58, 0.0  ;;  %v921_v9 = vmax.f32 %v793_v37, 0.0 }
  0xec   : > { %v980_v59 = vpack.c.bf16 %v908_v61, %v904_v47 }
  0xed   : > { %v985_v5 = vpack.c.bf16 %v917_v2, %v913_v1  ;;  %v989_v14 = vpack.c.bf16 %v925_v10, %v921_v9  ;;  %v3464_v10 = vld [vmem:[%s4612_s8 + $0x10] sm:$0xff]  }
  0xf0   : > { %1690 = vmatmul.mubr.bf16.gmra.mrb[36].mxu0 %v964_v4  ;;  %v788_v4 = vadd.f32 %v633_v0, %v3971_v36  ;;  %v924_v36 = vmax.f32 %v796_v11, 0.0 }
  0xf1   : > { %1699 = vmatprep.mubr.bf16.mxu0 %v969_v8 }
  0xf2   : > { %v916_v8 = vmax.f32 %v788_v4, 0.0  ;;  %v988_v16 = vpack.c.bf16 %v924_v36, %v920_v62  ;;  %v3463_v4 = vld [vmem:[%s4612_s8 + $0x8] sm:$0xff]  }
  0xf4   : > { %v984_v31 = vpack.c.bf16 %v916_v8, %v912_v6 }
  0xf8   : > { %1700 = vmatmul.mubr.bf16.gmra.mrb[40].mxu0 %v968_v15 }
  0xf9   : > { %1709 = vmatprep.mubr.bf16.mxu0 %v973_v19 }
 0x100   : > { %1710 = vmatmul.mubr.bf16.gmra.mrb[44].mxu0 %v972_v28  ;;  %v4173_v28 = vrot.slane %v1760_v12, %v3626_v32 }
 0x101   : > { %1719 = vmatprep.mubr.bf16.mxu0 %v977_v35 }
 0x108   : > { %1720 = vmatmul.mubr.bf16.gmra.mrb[48].mxu0 %v976_v39  ;;  %v3462_v39 = vld [vmem:[%s4612_s8] sm:$0xff]  }
 0x109   : > { %1729 = vmatprep.mubr.bf16.mxu0 %v981_v57  ;;  %3191 = vmatprep.subr.bf16.mxu1 %v3462_v39 }
 0x110   : > { %1730 = vmatmul.mubr.bf16.gmra.mrb[52].mxu0 %v980_v59 }
 0x111   : > { %1739 = vmatprep.mubr.bf16.mxu0 %v985_v5 }
 0x118   : > { %1740 = vmatmul.mubr.bf16.gmra.mrb[56].mxu0 %v984_v31 }
 0x119   : > { %1749 = vmatprep.mubr.bf16.mxu0 %v989_v14 }
 0x120   : > { %1750 = vmatmul.mubr.bf16.gmra.mrb[60].mxu0 %v988_v16 }
 0x149   : > { %v4131_v13 = vpop.f32.mrb[0].mxu1 }
 0x14a   : > { %v4133_v25 = vpop.f32.mrb[1].mxu1 }
 0x14b   : > { %v4135_v7 = vpop.f32.mrb[2].mxu1 }
 0x14c   : > { %v4137_v40 = vpop.f32.mrb[3].mxu1 }
 0x155   : > { %v4139_v15 = vpop.f32.mrb[4].mxu1 }
 0x156   : > { %v4141_v51 = vpop.f32.mrb[5].mxu1 }
 0x157   : > { %v4143_v52 = vpop.f32.mrb[6].mxu1 }
 0x158   : > { %v4145_v17 = vpop.f32.mrb[7].mxu1 }
 0x15d   : > { %v4147_v18 = vpop.f32.mrb[8].mxu1 }
 0x15e   : > { %v4149_v19 = vpop.f32.mrb[9].mxu1 }
 0x15f   : > { %v4151_v20 = vpop.f32.mrb[10].mxu1 }
 0x160   : > { %v4153_v23 = vpop.f32.mrb[11].mxu1 }
 0x165   : > { %v4155_v21 = vpop.f32.mrb[12].mxu1 }
 0x166   : > { %v4157_v22 = vpop.f32.mrb[13].mxu1 }
 0x167   : > { %v4159_v24 = vpop.f32.mrb[14].mxu1 }
 0x168   : > { %v4161_v63 = vpop.f32.mrb[15].mxu1 }
 0x17b   : > { %v1601_v35 = vpop.f32.mrb[0].mxu0 }
 0x17c   : > { %v1772_v30 = vmul.f32 %v4170_v27, %v1601_v35  ;;  %v1603_v41 = vpop.f32.mrb[1].mxu0 }
 0x17d   : > { %v1773_v42 = vmul.f32 %v4173_v28, %v1603_v41  ;;  %v1605_v43 = vpop.f32.mrb[2].mxu0 }
 0x17e   : > { %v1848_v44 = vadd.f32 %v4176_v29, %v1772_v30  ;;  %v1774_v45 = vmul.f32 %v4170_v27, %v1605_v43  ;;  %v1607_v46 = vpop.f32.mrb[3].mxu0 }
 0x17f   : > { %v1849_v48 = vadd.f32 %v4179_v34, %v1773_v42  ;;  %v1775_v55 = vmul.f32 %v4173_v28, %v1607_v46 }
 0x180   : > { %v1850_v49 = vadd.f32 %v4176_v29, %v1774_v45  ;;  %v1912_v50 = vmax.f32 %v1848_v44, 0.0 }
 0x181   : > { %v1851_v32 = vadd.f32 %v4179_v34, %v1775_v55  ;;  %v1913_v54 = vmax.f32 %v1849_v48, 0.0 }
 0x182   : > { %v1914_v53 = vmax.f32 %v1850_v49, 0.0 }
 0x183   : > { %v1915_v56 = vmax.f32 %v1851_v32, 0.0  ;;  %v1611_v57 = vpop.f32.mrb[4].mxu0 }
 0x184   : > { %v1976_v58 = vpack.c.bf16 %v1914_v53, %v1912_v50  ;;  %v1776_v33 = vmul.f32 %v4170_v27, %v1611_v57  ;;  %v1613_v47 = vpop.f32.mrb[5].mxu0 }
 0x185   : > { %v1777_v61 = vmul.f32 %v4173_v28, %v1613_v47  ;;  %v1615_v0 = vpop.f32.mrb[6].mxu0  ;;  %v1977_v1 = vpack.c.bf16 %v1915_v56, %v1913_v54 }
 0x186   : > { %v1852_v2 = vadd.f32 %v4176_v29, %v1776_v33  ;;  %v1778_v59 = vmul.f32 %v4170_v27, %v1615_v0  ;;  %v1617_v3 = vpop.f32.mrb[7].mxu0 }
 0x187   : > { %v1853_v5 = vadd.f32 %v4179_v34, %v1777_v61  ;;  %v1779_v37 = vmul.f32 %v4173_v28, %v1617_v3  ;;  %2168 = vmatprep.mubr.bf16.mxu1 %v1977_v1 }
 0x188   : > { %v1854_v38 = vadd.f32 %v4176_v29, %v1778_v59  ;;  %2169 = vmatmul.mubr.bf16.vlgmr.msra.gmra.mrb[16].mxu1 %v1976_v58  ;;  %v1916_v8 = vmax.f32 %v1852_v2, 0.0 }
 0x189   : > { %v1855_v6 = vadd.f32 %v4179_v34, %v1779_v37  ;;  %3192 = vmatpush3.bf16.msra.mxu1 %v3462_v39  ;;  %v1917_v31 = vmax.f32 %v1853_v5, 0.0 }
 0x18a   : > { %v1918_v9 = vmax.f32 %v1854_v38, 0.0  ;;  %3193 = vmatprep.subr.bf16.mxu1 %v3463_v4 }
 0x18b   : > { %v1919_v60 = vmax.f32 %v1855_v6, 0.0  ;;  %v1621_v11 = vpop.f32.mrb[8].mxu0 }
 0x18c   : > { %v1780_v14 = vmul.f32 %v4170_v27, %v1621_v11  ;;  %v1623_v62 = vpop.f32.mrb[9].mxu0  ;;  %v1978_v36 = vpack.c.bf16 %v1918_v9, %v1916_v8 }
 0x18d   : > { %v1781_v16 = vmul.f32 %v4173_v28, %v1623_v62  ;;  %v1625_v12 = vpop.f32.mrb[10].mxu0  ;;  %v1979_v26 = vpack.c.bf16 %v1919_v60, %v1917_v31  ;;  %3194 = vmatpush3.bf16.msra.mxu1 %v3463_v4 }
 0x18e   : > { %v1856_v35 = vadd.f32 %v4176_v29, %v1780_v14  ;;  %v1782_v30 = vmul.f32 %v4170_v27, %v1625_v12  ;;  %v1627_v41 = vpop.f32.mrb[11].mxu0  ;;  %3195 = vmatprep.subr.bf16.mxu1 %v3464_v10 }
 0x18f   : > { %v1857_v42 = vadd.f32 %v4179_v34, %v1781_v16  ;;  %v1783_v43 = vmul.f32 %v4173_v28, %v1627_v41  ;;  %2176 = vmatprep.mubr.bf16.mxu1 %v1979_v26 }
 0x190   : > { %v1858_v44 = vadd.f32 %v4176_v29, %v1782_v30  ;;  %2177 = vmatmul.mubr.bf16.gmra.mrb[20].mxu1 %v1978_v36  ;;  %v1920_v46 = vmax.f32 %v1856_v35, 0.0 }
 0x191   : > { %v1859_v45 = vadd.f32 %v4179_v34, %v1783_v43  ;;  %3196 = vmatpush3.bf16.msra.mxu1 %v3464_v10  ;;  %v1921_v55 = vmax.f32 %v1857_v42, 0.0 }
 0x192   : > { %v1922_v48 = vmax.f32 %v1858_v44, 0.0 }
 0x193   : > { %v1923_v49 = vmax.f32 %v1859_v45, 0.0  ;;  %v1631_v32 = vpop.f32.mrb[12].mxu0 }
 0x194   : > { %v1784_v50 = vmul.f32 %v4170_v27, %v1631_v32  ;;  %v1633_v53 = vpop.f32.mrb[13].mxu0  ;;  %v1980_v39 = vpack.c.bf16 %v1922_v48, %v1920_v46 }
 0x195   : > { %v1785_v54 = vmul.f32 %v4173_v28, %v1633_v53  ;;  %v1635_v56 = vpop.f32.mrb[14].mxu0  ;;  %v1981_v57 = vpack.c.bf16 %v1923_v49, %v1921_v55 }
 0x196   : > { %v1860_v58 = vadd.f32 %v4176_v29, %v1784_v50  ;;  %v1786_v33 = vmul.f32 %v4170_v27, %v1635_v56  ;;  %v1637_v47 = vpop.f32.mrb[15].mxu0 }
 0x197   : > { %v1861_v61 = vadd.f32 %v4179_v34, %v1785_v54  ;;  %v1787_v0 = vmul.f32 %v4173_v28, %v1637_v47  ;;  %2184 = vmatprep.mubr.bf16.mxu1 %v1981_v57 }
 0x198   : > { %v1862_v1 = vadd.f32 %v4176_v29, %v1786_v33  ;;  %2185 = vmatmul.mubr.bf16.gmra.mrb[24].mxu1 %v1980_v39  ;;  %v1924_v59 = vmax.f32 %v1860_v58, 0.0 }
 0x199   : > { %v1863_v2 = vadd.f32 %v4179_v34, %v1787_v0  ;;  %v1925_v4 = vmax.f32 %v1861_v61, 0.0 }
 0x19a   : > { %v1926_v3 = vmax.f32 %v1862_v1, 0.0 }
 0x19b   : > { %v1927_v5 = vmax.f32 %v1863_v2, 0.0  ;;  %v1641_v37 = vpop.f32.mrb[16].mxu0 }
 0x19c   : > { %v1788_v38 = vmul.f32 %v4170_v27, %v1641_v37  ;;  %v1643_v6 = vpop.f32.mrb[17].mxu0  ;;  %v1982_v8 = vpack.c.bf16 %v1926_v3, %v1924_v59 }
 0x19d   : > { %v1789_v9 = vmul.f32 %v4173_v28, %v1643_v6  ;;  %v1645_v10 = vpop.f32.mrb[18].mxu0  ;;  %v1983_v31 = vpack.c.bf16 %v1927_v5, %v1925_v4 }
 0x19e   : > { %v1864_v60 = vadd.f32 %v4176_v29, %v1788_v38  ;;  %v1790_v11 = vmul.f32 %v4170_v27, %v1645_v10  ;;  %v1647_v14 = vpop.f32.mrb[19].mxu0 }
 0x19f   : > { %v1865_v62 = vadd.f32 %v4179_v34, %v1789_v9  ;;  %v1791_v36 = vmul.f32 %v4173_v28, %v1647_v14  ;;  %2192 = vmatprep.mubr.bf16.mxu1 %v1983_v31 }
 0x1a0   : > { %v1866_v16 = vadd.f32 %v4176_v29, %v1790_v11  ;;  %2193 = vmatmul.mubr.bf16.gmra.mrb[28].mxu1 %v1982_v8  ;;  %v1928_v26 = vmax.f32 %v1864_v60, 0.0 }
 0x1a1   : > { %v1867_v12 = vadd.f32 %v4179_v34, %v1791_v36  ;;  %v1929_v30 = vmax.f32 %v1865_v62, 0.0 }
 0x1a2   : > { %v1930_v35 = vmax.f32 %v1866_v16, 0.0 }
 0x1a3   : > { %v1931_v41 = vmax.f32 %v1867_v12, 0.0  ;;  %v1651_v42 = vpop.f32.mrb[20].mxu0 }
 0x1a4   : > { %v1792_v43 = vmul.f32 %v4170_v27, %v1651_v42  ;;  %v1653_v44 = vpop.f32.mrb[21].mxu0  ;;  %v1984_v45 = vpack.c.bf16 %v1930_v35, %v1928_v26 }
 0x1a5   : > { %v1793_v46 = vmul.f32 %v4173_v28, %v1653_v44  ;;  %v1655_v48 = vpop.f32.mrb[22].mxu0  ;;  %v1985_v55 = vpack.c.bf16 %v1931_v41, %v1929_v30 }
 0x1a6   : > { %v1868_v49 = vadd.f32 %v4176_v29, %v1792_v43  ;;  %v1794_v32 = vmul.f32 %v4170_v27, %v1655_v48  ;;  %v1657_v50 = vpop.f32.mrb[23].mxu0 }
 0x1a7   : > { %v1869_v53 = vadd.f32 %v4179_v34, %v1793_v46  ;;  %v1795_v39 = vmul.f32 %v4173_v28, %v1657_v50  ;;  %2200 = vmatprep.mubr.bf16.mxu1 %v1985_v55 }
 0x1a8   : > { %v1870_v54 = vadd.f32 %v4176_v29, %v1794_v32  ;;  %2201 = vmatmul.mubr.bf16.gmra.mrb[32].mxu1 %v1984_v45  ;;  %v1932_v57 = vmax.f32 %v1868_v49, 0.0 }
 0x1a9   : > { %v1871_v56 = vadd.f32 %v4179_v34, %v1795_v39  ;;  %v1933_v33 = vmax.f32 %v1869_v53, 0.0 }
 0x1aa   : > { %v1934_v58 = vmax.f32 %v1870_v54, 0.0 }
 0x1ab   : > { %v1935_v47 = vmax.f32 %v1871_v56, 0.0  ;;  %v1661_v61 = vpop.f32.mrb[24].mxu0 }
 0x1ac   : > { %v1796_v0 = vmul.f32 %v4170_v27, %v1661_v61  ;;  %v1663_v1 = vpop.f32.mrb[25].mxu0  ;;  %v1986_v2 = vpack.c.bf16 %v1934_v58, %v1932_v57 }
 0x1ad   : > { %v1797_v59 = vmul.f32 %v4173_v28, %v1663_v1  ;;  %v1665_v3 = vpop.f32.mrb[26].mxu0  ;;  %v1987_v4 = vpack.c.bf16 %v1935_v47, %v1933_v33 }
 0x1ae   : > { %v1872_v5 = vadd.f32 %v4176_v29, %v1796_v0  ;;  %v1798_v37 = vmul.f32 %v4170_v27, %v1665_v3  ;;  %v1667_v38 = vpop.f32.mrb[27].mxu0 }
 0x1af   : > { %v1873_v6 = vadd.f32 %v4179_v34, %v1797_v59  ;;  %v1799_v8 = vmul.f32 %v4173_v28, %v1667_v38  ;;  %2208 = vmatprep.mubr.bf16.mxu1 %v1987_v4 }
 0x1b0   : > { %v1874_v9 = vadd.f32 %v4176_v29, %v1798_v37  ;;  %2209 = vmatmul.mubr.bf16.gmra.mrb[36].mxu1 %v1986_v2  ;;  %v1936_v31 = vmax.f32 %v1872_v5, 0.0 }
 0x1b1   : > { %v1875_v10 = vadd.f32 %v4179_v34, %v1799_v8  ;;  %v1937_v11 = vmax.f32 %v1873_v6, 0.0 }
 0x1b2   : > { %v1938_v60 = vmax.f32 %v1874_v9, 0.0 }
 0x1b3   : > { %v1939_v14 = vmax.f32 %v1875_v10, 0.0  ;;  %v1671_v62 = vpop.f32.mrb[28].mxu0 }
 0x1b4   : > { %v1800_v36 = vmul.f32 %v4170_v27, %v1671_v62  ;;  %v1673_v16 = vpop.f32.mrb[29].mxu0  ;;  %v1988_v12 = vpack.c.bf16 %v1938_v60, %v1936_v31 }
 0x1b5   : > { %v1801_v26 = vmul.f32 %v4173_v28, %v1673_v16  ;;  %v1675_v35 = vpop.f32.mrb[30].mxu0  ;;  %v1989_v30 = vpack.c.bf16 %v1939_v14, %v1937_v11 }
 0x1b6   : > { %v1876_v41 = vadd.f32 %v4176_v29, %v1800_v36  ;;  %v1802_v42 = vmul.f32 %v4170_v27, %v1675_v35  ;;  %v1677_v43 = vpop.f32.mrb[31].mxu0 }
 0x1b7   : > { %v1877_v44 = vadd.f32 %v4179_v34, %v1801_v26  ;;  %v1803_v45 = vmul.f32 %v4173_v28, %v1677_v43  ;;  %2216 = vmatprep.mubr.bf16.mxu1 %v1989_v30 }
 0x1b8   : > { %v1878_v46 = vadd.f32 %v4176_v29, %v1802_v42  ;;  %2217 = vmatmul.mubr.bf16.gmra.mrb[40].mxu1 %v1988_v12  ;;  %v1940_v55 = vmax.f32 %v1876_v41, 0.0 }
 0x1b9   : > { %v1879_v48 = vadd.f32 %v4179_v34, %v1803_v45  ;;  %v1941_v32 = vmax.f32 %v1877_v44, 0.0 }
 0x1ba   : > { %v1942_v49 = vmax.f32 %v1878_v46, 0.0 }
 0x1bb   : > { %v1943_v50 = vmax.f32 %v1879_v48, 0.0  ;;  %v1681_v53 = vpop.f32.mrb[32].mxu0 }
 0x1bc   : > { %v1804_v39 = vmul.f32 %v4170_v27, %v1681_v53  ;;  %v1683_v54 = vpop.f32.mrb[33].mxu0  ;;  %v1990_v56 = vpack.c.bf16 %v1942_v49, %v1940_v55 }
 0x1bd   : > { %v1805_v57 = vmul.f32 %v4173_v28, %v1683_v54  ;;  %v1685_v58 = vpop.f32.mrb[34].mxu0  ;;  %v1991_v33 = vpack.c.bf16 %v1943_v50, %v1941_v32 }
 0x1be   : > { %v1880_v47 = vadd.f32 %v4176_v29, %v1804_v39  ;;  %v1806_v61 = vmul.f32 %v4170_v27, %v1685_v58  ;;  %v1687_v0 = vpop.f32.mrb[35].mxu0 }
 0x1bf   : > { %v1881_v1 = vadd.f32 %v4179_v34, %v1805_v57  ;;  %v1807_v2 = vmul.f32 %v4173_v28, %v1687_v0  ;;  %2224 = vmatprep.mubr.bf16.mxu1 %v1991_v33 }
 0x1c0   : > { %v1882_v59 = vadd.f32 %v4176_v29, %v1806_v61  ;;  %2225 = vmatmul.mubr.bf16.gmra.mrb[44].mxu1 %v1990_v56  ;;  %v1944_v4 = vmax.f32 %v1880_v47, 0.0 }
 0x1c1   : > { %v1883_v3 = vadd.f32 %v4179_v34, %v1807_v2  ;;  %v1945_v37 = vmax.f32 %v1881_v1, 0.0 }
 0x1c2   : > { %v1946_v5 = vmax.f32 %v1882_v59, 0.0 }
 0x1c3   : > { %v1947_v38 = vmax.f32 %v1883_v3, 0.0  ;;  %v1691_v6 = vpop.f32.mrb[36].mxu0 }
 0x1c4   : > { %v1808_v8 = vmul.f32 %v4170_v27, %v1691_v6  ;;  %v1693_v9 = vpop.f32.mrb[37].mxu0  ;;  %v1992_v10 = vpack.c.bf16 %v1946_v5, %v1944_v4 }
 0x1c5   : > { %v1809_v31 = vmul.f32 %v4173_v28, %v1693_v9  ;;  %v1695_v60 = vpop.f32.mrb[38].mxu0  ;;  %v1993_v11 = vpack.c.bf16 %v1947_v38, %v1945_v37 }
 0x1c6   : > { %v1884_v14 = vadd.f32 %v4176_v29, %v1808_v8  ;;  %v1810_v62 = vmul.f32 %v4170_v27, %v1695_v60  ;;  %v1697_v36 = vpop.f32.mrb[39].mxu0 }
 0x1c7   : > { %v1885_v16 = vadd.f32 %v4179_v34, %v1809_v31  ;;  %v1811_v12 = vmul.f32 %v4173_v28, %v1697_v36  ;;  %2232 = vmatprep.mubr.bf16.mxu1 %v1993_v11 }
 0x1c8   : > { %v1886_v26 = vadd.f32 %v4176_v29, %v1810_v62  ;;  %2233 = vmatmul.mubr.bf16.gmra.mrb[48].mxu1 %v1992_v10  ;;  %v1948_v30 = vmax.f32 %v1884_v14, 0.0 }
 0x1c9   : > { %v1887_v35 = vadd.f32 %v4179_v34, %v1811_v12  ;;  %v1949_v42 = vmax.f32 %v1885_v16, 0.0  ;;  %v3465_v12 = vld [vmem:[%s4612_s8 + $0x18] sm:$0xff]  }
 0x1ca   : > { %v1950_v41 = vmax.f32 %v1886_v26, 0.0  ;;  %3197 = vmatprep.subr.bf16.mxu1 %v3465_v12 }
 0x1cb   : > { %v1951_v43 = vmax.f32 %v1887_v35, 0.0  ;;  %v1701_v44 = vpop.f32.mrb[40].mxu0  ;;  %3198 = vmatpush3.bf16.msra.mxu1 %v3465_v12 }
 0x1cc   : > { %v1812_v45 = vmul.f32 %v4170_v27, %v1701_v44  ;;  %v1703_v46 = vpop.f32.mrb[41].mxu0  ;;  %v1994_v48 = vpack.c.bf16 %v1950_v41, %v1948_v30 }
 0x1cd   : > { %v1813_v55 = vmul.f32 %v4173_v28, %v1703_v46  ;;  %v1705_v49 = vpop.f32.mrb[42].mxu0  ;;  %v1995_v32 = vpack.c.bf16 %v1951_v43, %v1949_v42 }
 0x1ce   : > { %v1888_v50 = vadd.f32 %v4176_v29, %v1812_v45  ;;  %v1814_v53 = vmul.f32 %v4170_v27, %v1705_v49  ;;  %v1707_v39 = vpop.f32.mrb[43].mxu0 }
 0x1cf   : > { %v1889_v54 = vadd.f32 %v4179_v34, %v1813_v55  ;;  %v1815_v56 = vmul.f32 %v4173_v28, %v1707_v39  ;;  %2240 = vmatprep.mubr.bf16.mxu1 %v1995_v32  ;;  %v3467_v39 = vld [vmem:[%s4612_s8 + $0x28] sm:$0xff]  }
 0x1d0   : > { %v1890_v57 = vadd.f32 %v4176_v29, %v1814_v53  ;;  %2241 = vmatmul.mubr.bf16.gmra.mrb[52].mxu1 %v1994_v48  ;;  %v1952_v33 = vmax.f32 %v1888_v50, 0.0 }
 0x1d1   : > { %v1891_v58 = vadd.f32 %v4179_v34, %v1815_v56  ;;  %v1953_v61 = vmax.f32 %v1889_v54, 0.0 }
 0x1d2   : > { %v1954_v47 = vmax.f32 %v1890_v57, 0.0 }
 0x1d3   : > { %v1955_v0 = vmax.f32 %v1891_v58, 0.0  ;;  %v1711_v1 = vpop.f32.mrb[44].mxu0 }
 0x1d4   : > { %v1816_v2 = vmul.f32 %v4170_v27, %v1711_v1  ;;  %v1713_v59 = vpop.f32.mrb[45].mxu0  ;;  %v1996_v3 = vpack.c.bf16 %v1954_v47, %v1952_v33 }
 0x1d5   : > { %v1817_v4 = vmul.f32 %v4173_v28, %v1713_v59  ;;  %v1715_v5 = vpop.f32.mrb[46].mxu0  ;;  %v1997_v37 = vpack.c.bf16 %v1955_v0, %v1953_v61 }
 0x1d6   : > { %v1892_v38 = vadd.f32 %v4176_v29, %v1816_v2  ;;  %v1818_v6 = vmul.f32 %v4170_v27, %v1715_v5  ;;  %v1717_v8 = vpop.f32.mrb[47].mxu0 }
 0x1d7   : > { %v1893_v9 = vadd.f32 %v4179_v34, %v1817_v4  ;;  %v1819_v10 = vmul.f32 %v4173_v28, %v1717_v8  ;;  %2248 = vmatprep.mubr.bf16.mxu1 %v1997_v37 }
 0x1d8   : > { %v1894_v31 = vadd.f32 %v4176_v29, %v1818_v6  ;;  %2249 = vmatmul.mubr.bf16.gmra.mrb[56].mxu1 %v1996_v3  ;;  %v1956_v11 = vmax.f32 %v1892_v38, 0.0 }
 0x1d9   : > { %v1895_v60 = vadd.f32 %v4179_v34, %v1819_v10  ;;  %v1957_v62 = vmax.f32 %v1893_v9, 0.0  ;;  %v3469_v10 = vld [vmem:[%s4612_s8 + $0x38] sm:$0xff]  }
 0x1da   : > { %v1958_v14 = vmax.f32 %v1894_v31, 0.0 }
 0x1db   : > { %v1959_v36 = vmax.f32 %v1895_v60, 0.0  ;;  %v1721_v16 = vpop.f32.mrb[48].mxu0 }
 0x1dc   : > { %v1722_v26 = vadd.f32 %v1721_v16, %v4131_v13  ;;  %v1723_v35 = vpop.f32.mrb[49].mxu0  ;;  %v1998_v30 = vpack.c.bf16 %v1958_v14, %v1956_v11  ;;  %v3466_v13 = vld [vmem:[%s4612_s8 + $0x20] sm:$0xff]  }
 0x1dd   : > { %v1724_v41 = vadd.f32 %v1723_v35, %v4133_v25  ;;  %v1725_v42 = vpop.f32.mrb[50].mxu0  ;;  %v1999_v43 = vpack.c.bf16 %v1959_v36, %v1957_v62  ;;  %3199 = vmatprep.subr.bf16.mxu1 %v3466_v13 }
 0x1de   : > { %v1820_v44 = vmul.f32 %v4170_v27, %v1722_v26  ;;  %v1726_v45 = vadd.f32 %v1725_v42, %v4135_v7  ;;  %v1727_v46 = vpop.f32.mrb[51].mxu0  ;;  %3200 = vmatpush3.bf16.msra.mxu1 %v3466_v13 }
 0x1df   : > { %v1821_v48 = vmul.f32 %v4173_v28, %v1724_v41  ;;  %v1728_v55 = vadd.f32 %v1727_v46, %v4137_v40  ;;  %2256 = vmatprep.mubr.bf16.mxu1 %v1999_v43  ;;  %3201 = vmatprep.subr.bf16.mxu1 %v3467_v39 }
 0x1e0   : > { %v1896_v25 = vadd.f32 %v4176_v29, %v1820_v44  ;;  %v1822_v49 = vmul.f32 %v4170_v27, %v1726_v45  ;;  %2257 = vmatmul.mubr.bf16.gmra.mrb[60].mxu1 %v1998_v30 }
 0x1e1   : > { %v1897_v32 = vadd.f32 %v4179_v34, %v1821_v48  ;;  %v1823_v7 = vmul.f32 %v4173_v28, %v1728_v55 }
 0x1e2   : > { %v1898_v50 = vadd.f32 %v4176_v29, %v1822_v49  ;;  %v1960_v54 = vmax.f32 %v1896_v25, 0.0  ;;  %3202 = vmatpush3.bf16.msra.mxu1 %v3467_v39 }
 0x1e3   : > { %v1899_v40 = vadd.f32 %v4179_v34, %v1823_v7  ;;  %v1731_v53 = vpop.f32.mrb[52].mxu0  ;;  %v1961_v33 = vmax.f32 %v1897_v32, 0.0 }
 0x1e4   : > { %v1962_v56 = vmax.f32 %v1898_v50, 0.0  ;;  %v1732_v57 = vadd.f32 %v1731_v53, %v4139_v15  ;;  %v1733_v58 = vpop.f32.mrb[53].mxu0  ;;  %v3468_v15 = vld [vmem:[%s4612_s8 + $0x30] sm:$0xff]  }
 0x1e5   : > { %v1963_v47 = vmax.f32 %v1899_v40, 0.0  ;;  %v1734_v61 = vadd.f32 %v1733_v58, %v4141_v51  ;;  %v1735_v0 = vpop.f32.mrb[54].mxu0  ;;  %3203 = vmatprep.subr.bf16.mxu1 %v3468_v15 }
 0x1e6   : > { %v1824_v1 = vmul.f32 %v4170_v27, %v1732_v57  ;;  %v1736_v2 = vadd.f32 %v1735_v0, %v4143_v52  ;;  %v1737_v59 = vpop.f32.mrb[55].mxu0  ;;  %v2000_v3 = vpack.c.bf16 %v1962_v56, %v1960_v54  ;;  %3204 = vmatpush3.bf16.msra.mxu1 %v3468_v15 }
 0x1e7   : > { %v1825_v4 = vmul.f32 %v4173_v28, %v1734_v61  ;;  %v1738_v5 = vadd.f32 %v1737_v59, %v4145_v17  ;;  %v2001_v37 = vpack.c.bf16 %v1963_v47, %v1961_v33  ;;  %3205 = vmatprep.subr.bf16.mxu1 %v3469_v10 }
 0x1e8   : > { %v1900_v51 = vadd.f32 %v4176_v29, %v1824_v1  ;;  %v1826_v38 = vmul.f32 %v4170_v27, %v1736_v2 }
 0x1e9   : > { %v1901_v6 = vadd.f32 %v4179_v34, %v1825_v4  ;;  %v1827_v52 = vmul.f32 %v4173_v28, %v1738_v5  ;;  %2264 = vmatprep.mubr.bf16.mxu1 %v2001_v37 }
 0x1ea   : > { %v1902_v8 = vadd.f32 %v4176_v29, %v1826_v38  ;;  %2265 = vmatmul.mubr.bf16.gmra.mrb[64].mxu1 %v2000_v3  ;;  %v1964_v31 = vmax.f32 %v1900_v51, 0.0 }
 0x1eb   : > { %v1903_v17 = vadd.f32 %v4179_v34, %v1827_v52  ;;  %v1741_v9 = vpop.f32.mrb[56].mxu0  ;;  %v1965_v62 = vmax.f32 %v1901_v6, 0.0  ;;  %3206 = vmatpush3.bf16.msra.mxu1 %v3469_v10 }
 0x1ec   : > { %v1966_v60 = vmax.f32 %v1902_v8, 0.0  ;;  %v1742_v11 = vadd.f32 %v1741_v9, %v4147_v18  ;;  %v1743_v14 = vpop.f32.mrb[57].mxu0 }
 0x1ed   : > { %v1967_v36 = vmax.f32 %v1903_v17, 0.0  ;;  %v1744_v16 = vadd.f32 %v1743_v14, %v4149_v19  ;;  %v1745_v12 = vpop.f32.mrb[58].mxu0 }
 0x1ee   : > { %v1828_v26 = vmul.f32 %v4170_v27, %v1742_v11  ;;  %v1746_v35 = vadd.f32 %v1745_v12, %v4151_v20  ;;  %v1747_v30 = vpop.f32.mrb[59].mxu0  ;;  %v2002_v41 = vpack.c.bf16 %v1966_v60, %v1964_v31 }
 0x1ef   : > { %v1829_v42 = vmul.f32 %v4173_v28, %v1744_v16  ;;  %v1748_v43 = vadd.f32 %v1747_v30, %v4153_v23  ;;  %v2003_v44 = vpack.c.bf16 %v1967_v36, %v1965_v62 }
 0x1f0   : > { %v1904_v18 = vadd.f32 %v4176_v29, %v1828_v26  ;;  %v1830_v45 = vmul.f32 %v4170_v27, %v1746_v35 }
 0x1f1   : > { %v1905_v19 = vadd.f32 %v4179_v34, %v1829_v42  ;;  %v1831_v46 = vmul.f32 %v4173_v28, %v1748_v43  ;;  %2272 = vmatprep.mubr.bf16.mxu1 %v2003_v44 }
 0x1f2   : > { %v1906_v48 = vadd.f32 %v4176_v29, %v1830_v45  ;;  %2273 = vmatmul.mubr.bf16.gmra.mrb[68].mxu1 %v2002_v41  ;;  %v1968_v13 = vmax.f32 %v1904_v18, 0.0 }
 0x1f3   : > { %v1907_v20 = vadd.f32 %v4179_v34, %v1831_v46  ;;  %v1751_v55 = vpop.f32.mrb[60].mxu0  ;;  %v1969_v32 = vmax.f32 %v1905_v19, 0.0 }
 0x1f4   : > { %v1970_v25 = vmax.f32 %v1906_v48, 0.0  ;;  %v1752_v23 = vadd.f32 %v1751_v55, %v4155_v21  ;;  %v1753_v49 = vpop.f32.mrb[61].mxu0 }
 0x1f5   : > { %v1971_v7 = vmax.f32 %v1907_v20, 0.0  ;;  %v1754_v50 = vadd.f32 %v1753_v49, %v4157_v22  ;;  %v1755_v40 = vpop.f32.mrb[62].mxu0 }
 0x1f6   : > { %v1832_v53 = vmul.f32 %v4170_v27, %v1752_v23  ;;  %v1756_v39 = vadd.f32 %v1755_v40, %v4159_v24  ;;  %v1757_v54 = vpop.f32.mrb[63].mxu0  ;;  %v2004_v56 = vpack.c.bf16 %v1970_v25, %v1968_v13 }
 0x1f7   : > { %v1833_v57 = vmul.f32 %v4173_v28, %v1754_v50  ;;  %v1758_v58 = vadd.f32 %v1757_v54, %v4161_v63  ;;  %v2005_v33 = vpack.c.bf16 %v1971_v7, %v1969_v32 }
 0x1f8   : > { %v1908_v47 = vadd.f32 %v4176_v29, %v1832_v53  ;;  %v1834_v21 = vmul.f32 %v4170_v27, %v1756_v39 }
 0x1f9   : > { %v1909_v61 = vadd.f32 %v4179_v34, %v1833_v57  ;;  %v1835_v22 = vmul.f32 %v4173_v28, %v1758_v58  ;;  %2280 = vmatprep.mubr.bf16.mxu1 %v2005_v33  ;;  %v4352_v28 = vld [vmem:[%s4610_s6] ss:$0 sm:$0xff] }
 0x1fa   : > { %v1910_v0 = vadd.f32 %v4176_v29, %v1834_v21  ;;  %2281 = vmatmul.mubr.bf16.gmra.mrb[72].mxu1 %v2004_v56  ;;  %v1972_v1 = vmax.f32 %v1908_v47, 0.0 }
 0x1fb   : > { %v1911_v24 = vadd.f32 %v4179_v34, %v1835_v22  ;;  %v1973_v59 = vmax.f32 %v1909_v61, 0.0  ;;  %v4357_v34 = vld [vmem:[%s4611_s7] ss:$0 sm:$0xff] }
 0x1fc   : > { %v1974_v2 = vmax.f32 %v1910_v0, 0.0 }
 0x1fd   : > { %v1975_v3 = vmax.f32 %v1911_v24, 0.0 }
 0x1fe   : > { %v2006_v63 = vpack.c.bf16 %v1974_v2, %v1972_v1 }
 0x1ff   : > { %v2007_v4 = vpack.c.bf16 %v1975_v3, %v1973_v59 }
 0x201   : > { %2288 = vmatprep.mubr.bf16.mxu1 %v2007_v4 }
 0x202   : > { %2289 = vmatmul.mubr.bf16.gmra.mrb[76].mxu1 %v2006_v63 }
 0x25b   : > { %v3071_v5 = vpop.f32.mrb[16].mxu1 }
 0x25c   : > { %v3072_v27 = vpop.f32.mrb[17].mxu1 }
 0x25d   : > { %v3073_v37 = vadd.f32 %v3072_v27, %v3071_v5  ;;  %v3074_v29 = vpop.f32.mrb[18].mxu1 }
 0x25e   : > { %v3075_v15 = vpop.f32.mrb[19].mxu1 }
 0x25f   : > { %v2304_v51 = vmul.f32 %v3073_v37, %v4352_v28  ;;  %v3076_v38 = vadd.f32 %v3075_v15, %v3074_v29 }
 0x261   : > { %v2343_v6 = vadd.f32 %v4357_v34, %v2304_v51  ;;  %v2305_v52 = vmul.f32 %v3076_v38, %v4352_v28 }
 0x263   : > { %v2344_v8 = vadd.f32 %v4357_v34, %v2305_v52  ;;  %v3077_v17 = vpop.f32.mrb[20].mxu1  ;;  %v2375_v10 = vmax.f32 %v2343_v6, 0.0 }
 0x264   : > { %v3078_v9 = vpop.f32.mrb[21].mxu1 }
 0x265   : > { %v2376_v31 = vmax.f32 %v2344_v8, 0.0  ;;  %v3079_v60 = vadd.f32 %v3078_v9, %v3077_v17  ;;  %v3080_v11 = vpop.f32.mrb[22].mxu1 }
 0x266   : > { %v3081_v14 = vpop.f32.mrb[23].mxu1 }
 0x267   : > { %v2306_v62 = vmul.f32 %v3079_v60, %v4352_v28  ;;  %v3082_v36 = vadd.f32 %v3081_v14, %v3080_v11  ;;  %v2407_v16 = vpack.c.bf16 %v2376_v31, %v2375_v10 }
 0x269   : > { %v2345_v12 = vadd.f32 %v4357_v34, %v2306_v62  ;;  %v2307_v26 = vmul.f32 %v3082_v36, %v4352_v28  ;;  %3207 = vmatprep.mubr.bf16.mxu1 %v2407_v16 }
 0x26b   : > { %v2346_v35 = vadd.f32 %v4357_v34, %v2307_v26  ;;  %v3083_v30 = vpop.f32.mrb[24].mxu1  ;;  %v2377_v42 = vmax.f32 %v2345_v12, 0.0 }
 0x26c   : > { %v3084_v41 = vpop.f32.mrb[25].mxu1 }
 0x26d   : > { %v2378_v43 = vmax.f32 %v2346_v35, 0.0  ;;  %v3085_v44 = vadd.f32 %v3084_v41, %v3083_v30  ;;  %v3086_v18 = vpop.f32.mrb[26].mxu1 }
 0x26e   : > { %v3087_v45 = vpop.f32.mrb[27].mxu1 }
 0x26f   : > { %v2408_v19 = vpack.c.bf16 %v2378_v43, %v2377_v42  ;;  %v2308_v46 = vmul.f32 %v3085_v44, %v4352_v28  ;;  %v3088_v48 = vadd.f32 %v3087_v45, %v3086_v18 }
 0x271   : > { %v2347_v20 = vadd.f32 %v4357_v34, %v2308_v46  ;;  %v2309_v55 = vmul.f32 %v3088_v48, %v4352_v28  ;;  %3208 = vmatmul.mubr.bf16.vlgmr.msra.gmra.mrb[80].mxu1 %v2408_v19 }
 0x273   : > { %v2348_v13 = vadd.f32 %v4357_v34, %v2309_v55  ;;  %v3089_v25 = vpop.f32.mrb[28].mxu1  ;;  %v2379_v49 = vmax.f32 %v2347_v20, 0.0 }
 0x274   : > { %v3090_v23 = vpop.f32.mrb[29].mxu1 }
 0x275   : > { %v2380_v32 = vmax.f32 %v2348_v13, 0.0  ;;  %v3091_v7 = vadd.f32 %v3090_v23, %v3089_v25  ;;  %v3092_v50 = vpop.f32.mrb[30].mxu1 }
 0x276   : > { %v3093_v40 = vpop.f32.mrb[31].mxu1 }
 0x277   : > { %v2310_v53 = vmul.f32 %v3091_v7, %v4352_v28  ;;  %v3094_v39 = vadd.f32 %v3093_v40, %v3092_v50  ;;  %v2409_v54 = vpack.c.bf16 %v2380_v32, %v2379_v49 }
 0x279   : > { %v2349_v56 = vadd.f32 %v4357_v34, %v2310_v53  ;;  %v2311_v57 = vmul.f32 %v3094_v39, %v4352_v28  ;;  %3211 = vmatprep.mubr.bf16.mxu1 %v2409_v54 }
 0x27b   : > { %v2350_v58 = vadd.f32 %v4357_v34, %v2311_v57  ;;  %v3095_v33 = vpop.f32.mrb[32].mxu1  ;;  %v2381_v21 = vmax.f32 %v2349_v56, 0.0 }
 0x27c   : > { %v3096_v47 = vpop.f32.mrb[33].mxu1 }
 0x27d   : > { %v2382_v61 = vmax.f32 %v2350_v58, 0.0  ;;  %v3097_v22 = vadd.f32 %v3096_v47, %v3095_v33  ;;  %v3098_v0 = vpop.f32.mrb[34].mxu1 }
 0x27e   : > { %v3099_v24 = vpop.f32.mrb[35].mxu1 }
 0x27f   : > { %v2312_v1 = vmul.f32 %v3097_v22, %v4352_v28  ;;  %v3100_v2 = vadd.f32 %v3099_v24, %v3098_v0  ;;  %v2410_v59 = vpack.c.bf16 %v2382_v61, %v2381_v21 }
 0x281   : > { %v2351_v3 = vadd.f32 %v4357_v34, %v2312_v1  ;;  %v2313_v63 = vmul.f32 %v3100_v2, %v4352_v28  ;;  %3212 = vmatmul.mubr.bf16.gmra.mrb[84].mxu1 %v2410_v59 }
 0x283   : > { %v2352_v4 = vadd.f32 %v4357_v34, %v2313_v63  ;;  %v3101_v5 = vpop.f32.mrb[36].mxu1  ;;  %v2383_v37 = vmax.f32 %v2351_v3, 0.0 }
 0x284   : > { %v3102_v27 = vpop.f32.mrb[37].mxu1 }
 0x285   : > { %v2384_v29 = vmax.f32 %v2352_v4, 0.0  ;;  %v3103_v15 = vadd.f32 %v3102_v27, %v3101_v5  ;;  %v3104_v51 = vpop.f32.mrb[38].mxu1 }
 0x286   : > { %v3105_v38 = vpop.f32.mrb[39].mxu1 }
 0x287   : > { %v2314_v6 = vmul.f32 %v3103_v15, %v4352_v28  ;;  %v3106_v52 = vadd.f32 %v3105_v38, %v3104_v51  ;;  %v2411_v8 = vpack.c.bf16 %v2384_v29, %v2383_v37 }
 0x289   : > { %v2353_v17 = vadd.f32 %v4357_v34, %v2314_v6  ;;  %v2315_v9 = vmul.f32 %v3106_v52, %v4352_v28  ;;  %3215 = vmatprep.mubr.bf16.mxu1 %v2411_v8 }
 0x28b   : > { %v2354_v10 = vadd.f32 %v4357_v34, %v2315_v9  ;;  %v3107_v31 = vpop.f32.mrb[40].mxu1  ;;  %v2385_v11 = vmax.f32 %v2353_v17, 0.0 }
 0x28c   : > { %v3108_v60 = vpop.f32.mrb[41].mxu1 }
 0x28d   : > { %v2386_v14 = vmax.f32 %v2354_v10, 0.0  ;;  %v3109_v62 = vadd.f32 %v3108_v60, %v3107_v31  ;;  %v3110_v36 = vpop.f32.mrb[42].mxu1 }
 0x28e   : > { %v3111_v16 = vpop.f32.mrb[43].mxu1 }
 0x28f   : > { %v2316_v12 = vmul.f32 %v3109_v62, %v4352_v28  ;;  %v3112_v26 = vadd.f32 %v3111_v16, %v3110_v36  ;;  %v2412_v35 = vpack.c.bf16 %v2386_v14, %v2385_v11 }
 0x291   : > { %v2355_v30 = vadd.f32 %v4357_v34, %v2316_v12  ;;  %v2317_v41 = vmul.f32 %v3112_v26, %v4352_v28  ;;  %3216 = vmatmul.mubr.bf16.gmra.mrb[88].mxu1 %v2412_v35 }
 0x293   : > { %v2356_v42 = vadd.f32 %v4357_v34, %v2317_v41  ;;  %v3113_v43 = vpop.f32.mrb[44].mxu1  ;;  %v2387_v18 = vmax.f32 %v2355_v30, 0.0 }
 0x294   : > { %v3114_v44 = vpop.f32.mrb[45].mxu1 }
 0x295   : > { %v2388_v45 = vmax.f32 %v2356_v42, 0.0  ;;  %v3115_v19 = vadd.f32 %v3114_v44, %v3113_v43  ;;  %v3116_v46 = vpop.f32.mrb[46].mxu1 }
 0x296   : > { %v3117_v48 = vpop.f32.mrb[47].mxu1 }
 0x297   : > { %v2318_v20 = vmul.f32 %v3115_v19, %v4352_v28  ;;  %v3118_v55 = vadd.f32 %v3117_v48, %v3116_v46  ;;  %v2413_v13 = vpack.c.bf16 %v2388_v45, %v2387_v18 }
 0x299   : > { %v2357_v25 = vadd.f32 %v4357_v34, %v2318_v20  ;;  %v2319_v23 = vmul.f32 %v3118_v55, %v4352_v28  ;;  %3219 = vmatprep.mubr.bf16.mxu1 %v2413_v13 }
 0x29b   : > { %v2358_v49 = vadd.f32 %v4357_v34, %v2319_v23  ;;  %v3119_v32 = vpop.f32.mrb[48].mxu1  ;;  %v2389_v50 = vmax.f32 %v2357_v25, 0.0 }
 0x29c   : > { %v3120_v7 = vpop.f32.mrb[49].mxu1 }
 0x29d   : > { %v2390_v40 = vmax.f32 %v2358_v49, 0.0  ;;  %v3121_v53 = vadd.f32 %v3120_v7, %v3119_v32  ;;  %v3122_v39 = vpop.f32.mrb[50].mxu1 }
 0x29e   : > { %v3123_v54 = vpop.f32.mrb[51].mxu1 }
 0x29f   : > { %v2320_v56 = vmul.f32 %v3121_v53, %v4352_v28  ;;  %v3124_v57 = vadd.f32 %v3123_v54, %v3122_v39  ;;  %v2414_v58 = vpack.c.bf16 %v2390_v40, %v2389_v50 }
 0x2a1   : > { %v2359_v33 = vadd.f32 %v4357_v34, %v2320_v56  ;;  %v2321_v47 = vmul.f32 %v3124_v57, %v4352_v28  ;;  %3220 = vmatmul.mubr.bf16.gmra.mrb[92].mxu1 %v2414_v58 }
 0x2a3   : > { %v2360_v21 = vadd.f32 %v4357_v34, %v2321_v47  ;;  %v3125_v61 = vpop.f32.mrb[52].mxu1  ;;  %v2391_v0 = vmax.f32 %v2359_v33, 0.0 }
 0x2a4   : > { %v3126_v22 = vpop.f32.mrb[53].mxu1 }
 0x2a5   : > { %v2392_v24 = vmax.f32 %v2360_v21, 0.0  ;;  %v3127_v1 = vadd.f32 %v3126_v22, %v3125_v61  ;;  %v3128_v2 = vpop.f32.mrb[54].mxu1 }
 0x2a6   : > { %v3129_v59 = vpop.f32.mrb[55].mxu1 }
 0x2a7   : > { %v2322_v3 = vmul.f32 %v3127_v1, %v4352_v28  ;;  %v3130_v63 = vadd.f32 %v3129_v59, %v3128_v2  ;;  %v2415_v4 = vpack.c.bf16 %v2392_v24, %v2391_v0 }
 0x2a9   : > { %v2361_v5 = vadd.f32 %v4357_v34, %v2322_v3  ;;  %v2323_v27 = vmul.f32 %v3130_v63, %v4352_v28  ;;  %3223 = vmatprep.mubr.bf16.mxu1 %v2415_v4 }
 0x2ab   : > { %v2362_v37 = vadd.f32 %v4357_v34, %v2323_v27  ;;  %v3131_v29 = vpop.f32.mrb[56].mxu1  ;;  %v2393_v51 = vmax.f32 %v2361_v5, 0.0 }
 0x2ac   : > { %v3132_v15 = vpop.f32.mrb[57].mxu1 }
 0x2ad   : > { %v2394_v38 = vmax.f32 %v2362_v37, 0.0  ;;  %v3133_v6 = vadd.f32 %v3132_v15, %v3131_v29  ;;  %v3134_v52 = vpop.f32.mrb[58].mxu1 }
 0x2ae   : > { %v3135_v8 = vpop.f32.mrb[59].mxu1 }
 0x2af   : > { %v2324_v17 = vmul.f32 %v3133_v6, %v4352_v28  ;;  %v3136_v9 = vadd.f32 %v3135_v8, %v3134_v52  ;;  %v2416_v10 = vpack.c.bf16 %v2394_v38, %v2393_v51 }
 0x2b1   : > { %v2363_v31 = vadd.f32 %v4357_v34, %v2324_v17  ;;  %v2325_v60 = vmul.f32 %v3136_v9, %v4352_v28  ;;  %3224 = vmatmul.mubr.bf16.gmra.mrb[96].mxu1 %v2416_v10 }
 0x2b3   : > { %v2364_v11 = vadd.f32 %v4357_v34, %v2325_v60  ;;  %v3137_v14 = vpop.f32.mrb[60].mxu1  ;;  %v2395_v36 = vmax.f32 %v2363_v31, 0.0 }
 0x2b4   : > { %v3138_v62 = vpop.f32.mrb[61].mxu1 }
 0x2b5   : > { %v2396_v16 = vmax.f32 %v2364_v11, 0.0  ;;  %v3139_v12 = vadd.f32 %v3138_v62, %v3137_v14  ;;  %v3140_v26 = vpop.f32.mrb[62].mxu1 }
 0x2b6   : > { %v3141_v35 = vpop.f32.mrb[63].mxu1 }
 0x2b7   : > { %v2326_v30 = vmul.f32 %v3139_v12, %v4352_v28  ;;  %v3142_v41 = vadd.f32 %v3141_v35, %v3140_v26  ;;  %v2417_v42 = vpack.c.bf16 %v2396_v16, %v2395_v36  ;;  %v4426_v35 = vld [vmem:[%s4613_s9] ss:$0 sm:$0xff] }
 0x2b9   : > { %v2365_v43 = vadd.f32 %v4357_v34, %v2326_v30  ;;  %v2327_v44 = vmul.f32 %v3142_v41, %v4352_v28  ;;  %3227 = vmatprep.mubr.bf16.mxu1 %v2417_v42 }
 0x2bb   : > { %v2366_v18 = vadd.f32 %v4357_v34, %v2327_v44  ;;  %v2397_v45 = vmax.f32 %v2365_v43, 0.0 }
 0x2bd   : > { %v2398_v19 = vmax.f32 %v2366_v18, 0.0  ;;  %v3143_v46 = vpop.f32.mrb[64].mxu1 }
 0x2be   : > { %v3144_v48 = vpop.f32.mrb[65].mxu1 }
 0x2bf   : > { %v3145_v20 = vadd.f32 %v3144_v48, %v3143_v46  ;;  %v3146_v55 = vpop.f32.mrb[66].mxu1  ;;  %v2418_v13 = vpack.c.bf16 %v2398_v19, %v2397_v45 }
 0x2c0   : > { %v3147_v25 = vpop.f32.mrb[67].mxu1 }
 0x2c1   : > { %v2328_v23 = vmul.f32 %v3145_v20, %v4352_v28  ;;  %v3148_v49 = vadd.f32 %v3147_v25, %v3146_v55  ;;  %3228 = vmatmul.mubr.bf16.gmra.mrb[100].mxu1 %v2418_v13 }
 0x2c3   : > { %v2367_v32 = vadd.f32 %v4357_v34, %v2328_v23  ;;  %v2329_v7 = vmul.f32 %v3148_v49, %v4352_v28 }
 0x2c5   : > { %v2368_v50 = vadd.f32 %v4357_v34, %v2329_v7  ;;  %v3149_v40 = vpop.f32.mrb[68].mxu1  ;;  %v2399_v39 = vmax.f32 %v2367_v32, 0.0 }
 0x2c6   : > { %v3150_v53 = vpop.f32.mrb[69].mxu1 }
 0x2c7   : > { %v2400_v54 = vmax.f32 %v2368_v50, 0.0  ;;  %v3151_v56 = vadd.f32 %v3150_v53, %v3149_v40  ;;  %v3152_v57 = vpop.f32.mrb[70].mxu1 }
 0x2c8   : > { %v3153_v58 = vpop.f32.mrb[71].mxu1 }
 0x2c9   : > { %v2330_v33 = vmul.f32 %v3151_v56, %v4352_v28  ;;  %v3154_v47 = vadd.f32 %v3153_v58, %v3152_v57  ;;  %v2419_v21 = vpack.c.bf16 %v2400_v54, %v2399_v39 }
 0x2cb   : > { %v2369_v61 = vadd.f32 %v4357_v34, %v2330_v33  ;;  %v2331_v22 = vmul.f32 %v3154_v47, %v4352_v28  ;;  %3231 = vmatprep.mubr.bf16.mxu1 %v2419_v21 }
 0x2cd   : > { %v2370_v0 = vadd.f32 %v4357_v34, %v2331_v22  ;;  %v3155_v24 = vpop.f32.mrb[72].mxu1  ;;  %v2401_v2 = vmax.f32 %v2369_v61, 0.0 }
 0x2ce   : > { %v3156_v1 = vpop.f32.mrb[73].mxu1 }
 0x2cf   : > { %v2402_v59 = vmax.f32 %v2370_v0, 0.0  ;;  %v3157_v3 = vadd.f32 %v3156_v1, %v3155_v24  ;;  %v3158_v63 = vpop.f32.mrb[74].mxu1 }
 0x2d0   : > { %v3159_v4 = vpop.f32.mrb[75].mxu1 }
 0x2d1   : > { %v2332_v5 = vmul.f32 %v3157_v3, %v4352_v28  ;;  %v3160_v27 = vadd.f32 %v3159_v4, %v3158_v63  ;;  %v2420_v37 = vpack.c.bf16 %v2402_v59, %v2401_v2 }
 0x2d3   : > { %v2371_v29 = vadd.f32 %v4357_v34, %v2332_v5  ;;  %v2333_v15 = vmul.f32 %v3160_v27, %v4352_v28  ;;  %3232 = vmatmul.mubr.bf16.gmra.mrb[104].mxu1 %v2420_v37 }
 0x2d5   : > { %v2372_v51 = vadd.f32 %v4357_v34, %v2333_v15  ;;  %v3161_v38 = vpop.f32.mrb[76].mxu1  ;;  %v2403_v52 = vmax.f32 %v2371_v29, 0.0 }
 0x2d6   : > { %v3162_v6 = vpop.f32.mrb[77].mxu1 }
 0x2d7   : > { %v2404_v8 = vmax.f32 %v2372_v51, 0.0  ;;  %v3163_v17 = vadd.f32 %v3162_v6, %v3161_v38  ;;  %v3164_v9 = vpop.f32.mrb[78].mxu1 }
 0x2d8   : > { %v3165_v10 = vpop.f32.mrb[79].mxu1 }
 0x2d9   : > { %v2334_v31 = vmul.f32 %v3163_v17, %v4352_v28  ;;  %v3166_v60 = vadd.f32 %v3165_v10, %v3164_v9  ;;  %v2421_v11 = vpack.c.bf16 %v2404_v8, %v2403_v52 }
 0x2db   : > { %v2373_v14 = vadd.f32 %v4357_v34, %v2334_v31  ;;  %v2335_v62 = vmul.f32 %v3166_v60, %v4352_v28  ;;  %3235 = vmatprep.mubr.bf16.mxu1 %v2421_v11  ;;  %v4433_v28 = vld [vmem:[%s4614_s10] ss:$0 sm:$0xff] }
 0x2dd   : > { %v2374_v36 = vadd.f32 %v4357_v34, %v2335_v62  ;;  %v2405_v16 = vmax.f32 %v2373_v14, 0.0 }
 0x2df   : > { %v2406_v12 = vmax.f32 %v2374_v36, 0.0 }
 0x2e1   : > { %v2422_v26 = vpack.c.bf16 %v2406_v12, %v2405_v16 }
 0x2e3   : > { %3236 = vmatmul.mubr.bf16.gmra.mrb[108].mxu1 %v2422_v26 }
 0x344   : > { %v3209_v30 = vpop.f32.mrb[80].mxu1 }
 0x345   : > { %v2537_v41 = vadd.f32 %v3209_v30, %v4426_v35  ;;  %v2528_v42 = vpop.f32.mrb[81].mxu1 }
 0x346   : > { %v2529_v43 = vadd.f32 %v4426_v35, %v2528_v42  ;;  %v3210_v44 = vpop.f32.mrb[82].mxu1 }
 0x347   : > { %v2657_v34 = vmax.f32 %v2537_v41, 0.0  ;;  %v2540_v18 = vadd.f32 %v3210_v44, %v4426_v35  ;;  %v2531_v45 = vpop.f32.mrb[83].mxu1 }
 0x348   : > { %v2655_v19 = vmax.f32 %v2529_v43, 0.0  ;;  %v2532_v46 = vadd.f32 %v4426_v35, %v2531_v45 }
 0x349   : > { %v2658_v48 = vmax.f32 %v2540_v18, 0.0  ;;  %v2696_v20 = vmul.f32 %v4433_v28, %v2657_v34 }
 0x34a   : > { %v2656_v55 = vmax.f32 %v2532_v46, 0.0  ;;  %v2694_v13 = vmul.f32 %v4433_v28, %v2655_v19 }
 0x34b   : > { %2730 = vadd.xlane.f32.xlu1 %v2696_v20  ;;  %v2697_v25 = vmul.f32 %v4433_v28, %v2658_v48 }
 0x34c   : > { %2726 = vadd.xlane.f32.xlu0 %v2694_v13  ;;  %v2695_v23 = vmul.f32 %v4433_v28, %v2656_v55 }
 0x34f   : > { %2732 = vadd.xlane.f32.xlu1 %v2697_v25 }
 0x350   : > { %2728 = vadd.xlane.f32.xlu0 %v2695_v23 }
 0x354   : > { %v3213_v49 = vpop.f32.mrb[84].mxu1 }
 0x355   : > { %v2553_v32 = vadd.f32 %v3213_v49, %v4426_v35  ;;  %v2544_v7 = vpop.f32.mrb[85].mxu1 }
 0x356   : > { %v2545_v50 = vadd.f32 %v4426_v35, %v2544_v7  ;;  %v3214_v40 = vpop.f32.mrb[86].mxu1 }
 0x357   : > { %v2661_v53 = vmax.f32 %v2553_v32, 0.0  ;;  %v2556_v39 = vadd.f32 %v3214_v40, %v4426_v35  ;;  %v2547_v54 = vpop.f32.mrb[87].mxu1 }
 0x358   : > { %v2548_v56 = vadd.f32 %v4426_v35, %v2547_v54  ;;  %v2659_v57 = vmax.f32 %v2545_v50, 0.0 }
 0x359   : > { %v2662_v58 = vmax.f32 %v2556_v39, 0.0  ;;  %v2700_v33 = vmul.f32 %v4433_v28, %v2661_v53 }
 0x35a   : > { %v2660_v47 = vmax.f32 %v2548_v56, 0.0  ;;  %v2698_v61 = vmul.f32 %v4433_v28, %v2659_v57 }
 0x35b   : > { %2738 = vadd.xlane.f32.xlu0 %v2700_v33  ;;  %v2701_v21 = vmul.f32 %v4433_v28, %v2662_v58 }
 0x35c   : > { %v2699_v22 = vmul.f32 %v4433_v28, %v2660_v47 }
 0x35d   : > { %2740 = vadd.xlane.f32.xlu1 %v2701_v21 }
 0x35f   : > { %2734 = vadd.xlane.f32.xlu0 %v2698_v61 }
 0x361   : > { %2736 = vadd.xlane.f32.xlu1 %v2699_v22 }
 0x364   : > { %v3217_v0 = vpop.f32.mrb[88].mxu1 }
 0x365   : > { %v2569_v24 = vadd.f32 %v3217_v0, %v4426_v35  ;;  %v2560_v1 = vpop.f32.mrb[89].mxu1 }
 0x366   : > { %v2561_v2 = vadd.f32 %v4426_v35, %v2560_v1  ;;  %v3218_v59 = vpop.f32.mrb[90].mxu1 }
 0x367   : > { %v2665_v3 = vmax.f32 %v2569_v24, 0.0  ;;  %v2572_v63 = vadd.f32 %v3218_v59, %v4426_v35  ;;  %v2563_v4 = vpop.f32.mrb[91].mxu1 }
 0x368   : > { %v2564_v5 = vadd.f32 %v4426_v35, %v2563_v4  ;;  %v2663_v27 = vmax.f32 %v2561_v2, 0.0 }
 0x369   : > { %v2666_v37 = vmax.f32 %v2572_v63, 0.0  ;;  %v2704_v29 = vmul.f32 %v4433_v28, %v2665_v3 }
 0x36a   : > { %v2664_v15 = vmax.f32 %v2564_v5, 0.0  ;;  %v2702_v38 = vmul.f32 %v4433_v28, %v2663_v27 }
 0x36b   : > { %2746 = vadd.xlane.f32.xlu0 %v2704_v29  ;;  %v2705_v51 = vmul.f32 %v4433_v28, %v2666_v37 }
 0x36c   : > { %v2703_v6 = vmul.f32 %v4433_v28, %v2664_v15 }
 0x36d   : > { %2748 = vadd.xlane.f32.xlu1 %v2705_v51 }
 0x36f   : > { %2742 = vadd.xlane.f32.xlu0 %v2702_v38 }
 0x371   : > { %2744 = vadd.xlane.f32.xlu1 %v2703_v6 }
 0x374   : > { %v3221_v52 = vpop.f32.mrb[92].mxu1 }
 0x375   : > { %v2585_v8 = vadd.f32 %v3221_v52, %v4426_v35  ;;  %v2576_v17 = vpop.f32.mrb[93].mxu1 }
 0x376   : > { %v2577_v9 = vadd.f32 %v4426_v35, %v2576_v17  ;;  %v3222_v10 = vpop.f32.mrb[94].mxu1 }
 0x377   : > { %v2669_v31 = vmax.f32 %v2585_v8, 0.0  ;;  %v2588_v60 = vadd.f32 %v3222_v10, %v4426_v35  ;;  %v2579_v11 = vpop.f32.mrb[95].mxu1 }
 0x378   : > { %v2580_v14 = vadd.f32 %v4426_v35, %v2579_v11  ;;  %v2667_v62 = vmax.f32 %v2577_v9, 0.0 }
 0x379   : > { %v2670_v36 = vmax.f32 %v2588_v60, 0.0  ;;  %v2708_v16 = vmul.f32 %v4433_v28, %v2669_v31 }
 0x37a   : > { %v2668_v12 = vmax.f32 %v2580_v14, 0.0  ;;  %v2706_v30 = vmul.f32 %v4433_v28, %v2667_v62 }
 0x37b   : > { %2754 = vadd.xlane.f32.xlu0 %v2708_v16  ;;  %v2709_v26 = vmul.f32 %v4433_v28, %v2670_v36 }
 0x37c   : > { %v2707_v41 = vmul.f32 %v4433_v28, %v2668_v12 }
 0x37d   : > { %2756 = vadd.xlane.f32.xlu1 %v2709_v26 }
 0x37f   : > { %2750 = vadd.xlane.f32.xlu0 %v2706_v30 }
 0x381   : > { %2752 = vadd.xlane.f32.xlu1 %v2707_v41 }
 0x384   : > { %v3225_v42 = vpop.f32.mrb[96].mxu1 }
 0x385   : > { %v2601_v43 = vadd.f32 %v3225_v42, %v4426_v35  ;;  %v2592_v44 = vpop.f32.mrb[97].mxu1 }
 0x386   : > { %v2593_v34 = vadd.f32 %v4426_v35, %v2592_v44  ;;  %v3226_v18 = vpop.f32.mrb[98].mxu1  ;;  %v4498_v44 = vld [vmem:[#allocation2] ss:$0 sm:$0xff] }
 0x387   : > { %v2673_v45 = vmax.f32 %v2601_v43, 0.0  ;;  %v2604_v19 = vadd.f32 %v3226_v18, %v4426_v35  ;;  %v2595_v46 = vpop.f32.mrb[99].mxu1 }
 0x388   : > { %v2596_v48 = vadd.f32 %v4426_v35, %v2595_v46  ;;  %v2671_v20 = vmax.f32 %v2593_v34, 0.0 }
 0x389   : > { %v2674_v55 = vmax.f32 %v2604_v19, 0.0  ;;  %v2712_v13 = vmul.f32 %v4433_v28, %v2673_v45 }
 0x38a   : > { %v2672_v25 = vmax.f32 %v2596_v48, 0.0  ;;  %v2710_v49 = vmul.f32 %v4433_v28, %v2671_v20 }
 0x38b   : > { %2762 = vadd.xlane.f32.xlu0 %v2712_v13  ;;  %v2713_v23 = vmul.f32 %v4433_v28, %v2674_v55 }
 0x38c   : > { %v2711_v32 = vmul.f32 %v4433_v28, %v2672_v25 }
 0x38d   : > { %2764 = vadd.xlane.f32.xlu1 %v2713_v23 }
 0x38f   : > { %2758 = vadd.xlane.f32.xlu0 %v2710_v49 }
 0x391   : > { %2760 = vadd.xlane.f32.xlu1 %v2711_v32 }
 0x394   : > { %v3229_v7 = vpop.f32.mrb[100].mxu1 }
 0x395   : > { %v2617_v50 = vadd.f32 %v3229_v7, %v4426_v35  ;;  %v2608_v40 = vpop.f32.mrb[101].mxu1 }
 0x396   : > { %v2609_v53 = vadd.f32 %v4426_v35, %v2608_v40  ;;  %v3230_v39 = vpop.f32.mrb[102].mxu1 }
 0x397   : > { %v2677_v54 = vmax.f32 %v2617_v50, 0.0  ;;  %v2620_v56 = vadd.f32 %v3230_v39, %v4426_v35  ;;  %v2611_v57 = vpop.f32.mrb[103].mxu1 }
 0x398   : > { %v2612_v58 = vadd.f32 %v4426_v35, %v2611_v57  ;;  %v2675_v33 = vmax.f32 %v2609_v53, 0.0 }
 0x399   : > { %v2678_v47 = vmax.f32 %v2620_v56, 0.0  ;;  %v2716_v21 = vmul.f32 %v4433_v28, %v2677_v54 }
 0x39a   : > { %v2676_v61 = vmax.f32 %v2612_v58, 0.0  ;;  %v2714_v0 = vmul.f32 %v4433_v28, %v2675_v33 }
 0x39b   : > { %2770 = vadd.xlane.f32.xlu0 %v2716_v21  ;;  %v2717_v22 = vmul.f32 %v4433_v28, %v2678_v47 }
 0x39c   : > { %v2715_v24 = vmul.f32 %v4433_v28, %v2676_v61 }
 0x39d   : > { %2772 = vadd.xlane.f32.xlu1 %v2717_v22 }
 0x39f   : > { %2766 = vadd.xlane.f32.xlu0 %v2714_v0 }
 0x3a1   : > { %2768 = vadd.xlane.f32.xlu1 %v2715_v24 }
 0x3a6   : > { %v3233_v1 = vpop.f32.mrb[104].mxu1 }
 0x3a7   : > { %v2633_v2 = vadd.f32 %v3233_v1, %v4426_v35  ;;  %v2624_v59 = vpop.f32.mrb[105].mxu1 }
 0x3a8   : > { %v2625_v3 = vadd.f32 %v4426_v35, %v2624_v59  ;;  %v3234_v63 = vpop.f32.mrb[106].mxu1 }
 0x3a9   : > { %v2681_v4 = vmax.f32 %v2633_v2, 0.0  ;;  %v2636_v5 = vadd.f32 %v3234_v63, %v4426_v35  ;;  %v2627_v27 = vpop.f32.mrb[107].mxu1 }
 0x3aa   : > { %v2628_v37 = vadd.f32 %v4426_v35, %v2627_v27  ;;  %v2679_v29 = vmax.f32 %v2625_v3, 0.0 }
 0x3ab   : > { %v2682_v15 = vmax.f32 %v2636_v5, 0.0  ;;  %v2720_v51 = vmul.f32 %v4433_v28, %v2681_v4 }
 0x3ac   : > { %v2680_v38 = vmax.f32 %v2628_v37, 0.0  ;;  %v2718_v52 = vmul.f32 %v4433_v28, %v2679_v29 }
 0x3ad   : > { %2778 = vadd.xlane.f32.xlu0 %v2720_v51  ;;  %v2721_v6 = vmul.f32 %v4433_v28, %v2682_v15 }
 0x3ae   : > { %v2719_v8 = vmul.f32 %v4433_v28, %v2680_v38 }
 0x3af   : > { %2780 = vadd.xlane.f32.xlu1 %v2721_v6 }
 0x3b1   : > { %2774 = vadd.xlane.f32.xlu0 %v2718_v52 }
 0x3b3   : > { %2776 = vadd.xlane.f32.xlu1 %v2719_v8 }
 0x3b6   : > { %v3237_v17 = vpop.f32.mrb[108].mxu1 }
 0x3b7   : > { %v2640_v9 = vpop.f32.mrb[109].mxu1  ;;  %v2649_v10 = vadd.f32 %v3237_v17, %v4426_v35 }
 0x3b8   : > { %v2641_v31 = vadd.f32 %v4426_v35, %v2640_v9  ;;  %v3238_v60 = vpop.f32.mrb[110].mxu1 }
 0x3b9   : > { %v2643_v11 = vpop.f32.mrb[111].mxu1  ;;  %v2652_v62 = vadd.f32 %v3238_v60, %v4426_v35  ;;  %v2685_v16 = vmax.f32 %v2649_v10, 0.0 }
 0x3ba   : > { %v2683_v14 = vmax.f32 %v2641_v31, 0.0  ;;  %v2644_v36 = vadd.f32 %v4426_v35, %v2643_v11 }
 0x3bb   : > { %v2686_v30 = vmax.f32 %v2652_v62, 0.0  ;;  %v2724_v42 = vmul.f32 %v4433_v28, %v2685_v16 }
 0x3bc   : > { %v2684_v12 = vmax.f32 %v2644_v36, 0.0  ;;  %v2722_v26 = vmul.f32 %v4433_v28, %v2683_v14 }
 0x3bd   : > { %v2725_v43 = vmul.f32 %v4433_v28, %v2686_v30 }
 0x3be   : > { %2782 = vadd.xlane.f32.xlu0 %v2722_v26  ;;  %v2723_v41 = vmul.f32 %v4433_v28, %v2684_v12 }
 0x3c0   : > { %2784 = vadd.xlane.f32.xlu1 %v2723_v41 }
 0x3c2   : > { %2786 = vadd.xlane.f32.xlu0 %v2724_v42 }
 0x3c4   : > { %2788 = vadd.xlane.f32.xlu1 %v2725_v43 }
 0x3d8   : > { %v2731_v35 = vpop.xlane.xlu1 %2730 }
 0x3d9   : > { %v2799_v34 = vadd.f32 %v4498_v44, %v2731_v35  ;;  %v2727_v18 = vpop.xlane.xlu0 %2726 }
 0x3da   : > { %v2797_v28 = vadd.f32 %v4498_v44, %v2727_v18 }
 0x3db   : > { %v2831_v45 = vmax.f32 %v2799_v34, 0.0 }
 0x3dc   : > { %v2829_v19 = vmax.f32 %v2797_v28, 0.0  ;;  %v2733_v46 = vpop.xlane.xlu1 %2732 }
 0x3dd   : > { %2864 = vst.msk [vmem:[%s4504_s14 + $0x10] sm:$0xff] %vm2861_vm0, %v2831_v45  ;;  %v2800_v48 = vadd.f32 %v4498_v44, %v2733_v46  ;;  %v2729_v20 = vpop.xlane.xlu0 %2728 }
 0x3de   : > { %2862 = vst.msk [vmem:[%s4504_s14] sm:$0xff] %vm2861_vm0, %v2829_v19  ;;  %v2798_v55 = vadd.f32 %v4498_v44, %v2729_v20 }
 0x3df   : > { %v2832_v13 = vmax.f32 %v2800_v48, 0.0 }
 0x3e0   : > { %v2830_v25 = vmax.f32 %v2798_v55, 0.0 }
 0x3e1   : > { %2865 = vst.msk [vmem:[%s4504_s14 + $0x18] sm:$0xff] %vm2861_vm0, %v2832_v13 }
 0x3e2   : > { %2863 = vst.msk [vmem:[%s4504_s14 + $0x8] sm:$0xff] %vm2861_vm0, %v2830_v25 }
 0x3e8   : > { %v2739_v23 = vpop.xlane.xlu0 %2738 }
 0x3e9   : > { %v2803_v49 = vadd.f32 %v4498_v44, %v2739_v23 }
 0x3ea   : > { %v2741_v32 = vpop.xlane.xlu1 %2740 }
 0x3eb   : > { %v2835_v7 = vmax.f32 %v2803_v49, 0.0  ;;  %v2804_v50 = vadd.f32 %v4498_v44, %v2741_v32 }
 0x3ec   : > { %v2735_v40 = vpop.xlane.xlu0 %2734 }
 0x3ed   : > { %2868 = vst.msk [vmem:[%s4504_s14 + $0x30] sm:$0xff] %vm2861_vm0, %v2835_v7  ;;  %v2836_v53 = vmax.f32 %v2804_v50, 0.0  ;;  %v2801_v39 = vadd.f32 %v4498_v44, %v2735_v40 }
 0x3ee   : > { %v2737_v54 = vpop.xlane.xlu1 %2736 }
 0x3ef   : > { %2869 = vst.msk [vmem:[%s4504_s14 + $0x38] sm:$0xff] %vm2861_vm0, %v2836_v53  ;;  %v2833_v56 = vmax.f32 %v2801_v39, 0.0  ;;  %v2802_v57 = vadd.f32 %v4498_v44, %v2737_v54 }
 0x3f1   : > { %2866 = vst.msk [vmem:[%s4504_s14 + $0x20] sm:$0xff] %vm2861_vm0, %v2833_v56  ;;  %v2834_v58 = vmax.f32 %v2802_v57, 0.0 }
 0x3f3   : > { %2867 = vst.msk [vmem:[%s4504_s14 + $0x28] sm:$0xff] %vm2861_vm0, %v2834_v58 }
 0x3f8   : > { %v2747_v33 = vpop.xlane.xlu0 %2746 }
 0x3f9   : > { %v2807_v47 = vadd.f32 %v4498_v44, %v2747_v33 }
 0x3fa   : > { %v2749_v21 = vpop.xlane.xlu1 %2748 }
 0x3fb   : > { %v2839_v61 = vmax.f32 %v2807_v47, 0.0  ;;  %v2808_v22 = vadd.f32 %v4498_v44, %v2749_v21 }
 0x3fc   : > { %v2743_v0 = vpop.xlane.xlu0 %2742 }
 0x3fd   : > { %2872 = vst.msk [vmem:[%s4504_s14 + $0x50] sm:$0xff] %vm2861_vm0, %v2839_v61  ;;  %v2840_v24 = vmax.f32 %v2808_v22, 0.0  ;;  %v2805_v1 = vadd.f32 %v4498_v44, %v2743_v0 }
 0x3fe   : > { %v2745_v2 = vpop.xlane.xlu1 %2744 }
 0x3ff   : > { %2873 = vst.msk [vmem:[%s4504_s14 + $0x58] sm:$0xff] %vm2861_vm0, %v2840_v24  ;;  %v2837_v59 = vmax.f32 %v2805_v1, 0.0  ;;  %v2806_v3 = vadd.f32 %v4498_v44, %v2745_v2 }
 0x401   : > { %2870 = vst.msk [vmem:[%s4504_s14 + $0x40] sm:$0xff] %vm2861_vm0, %v2837_v59  ;;  %v2838_v63 = vmax.f32 %v2806_v3, 0.0 }
 0x403   : > { %2871 = vst.msk [vmem:[%s4504_s14 + $0x48] sm:$0xff] %vm2861_vm0, %v2838_v63 }
 0x408   : > { %v2755_v4 = vpop.xlane.xlu0 %2754 }
 0x409   : > { %v2811_v5 = vadd.f32 %v4498_v44, %v2755_v4 }
 0x40a   : > { %v2757_v27 = vpop.xlane.xlu1 %2756 }
 0x40b   : > { %v2843_v37 = vmax.f32 %v2811_v5, 0.0  ;;  %v2812_v29 = vadd.f32 %v4498_v44, %v2757_v27 }
 0x40c   : > { %v2751_v15 = vpop.xlane.xlu0 %2750 }
 0x40d   : > { %2876 = vst.msk [vmem:[%s4504_s14 + $0x70] sm:$0xff] %vm2861_vm0, %v2843_v37  ;;  %v2844_v51 = vmax.f32 %v2812_v29, 0.0  ;;  %v2809_v38 = vadd.f32 %v4498_v44, %v2751_v15 }
 0x40e   : > { %v2753_v6 = vpop.xlane.xlu1 %2752 }
 0x40f   : > { %2877 = vst.msk [vmem:[%s4504_s14 + $0x78] sm:$0xff] %vm2861_vm0, %v2844_v51  ;;  %v2841_v52 = vmax.f32 %v2809_v38, 0.0  ;;  %v2810_v8 = vadd.f32 %v4498_v44, %v2753_v6 }
 0x411   : > { %2874 = vst.msk [vmem:[%s4504_s14 + $0x60] sm:$0xff] %vm2861_vm0, %v2841_v52  ;;  %v2842_v17 = vmax.f32 %v2810_v8, 0.0 }
 0x413   : > { %2875 = vst.msk [vmem:[%s4504_s14 + $0x68] sm:$0xff] %vm2861_vm0, %v2842_v17 }
 0x418   : > { %v2763_v9 = vpop.xlane.xlu0 %2762 }
 0x419   : > { %v2815_v10 = vadd.f32 %v4498_v44, %v2763_v9 }
 0x41a   : > { %v2765_v31 = vpop.xlane.xlu1 %2764 }
 0x41b   : > { %v2847_v60 = vmax.f32 %v2815_v10, 0.0  ;;  %v2816_v11 = vadd.f32 %v4498_v44, %v2765_v31 }
 0x41c   : > { %v2759_v14 = vpop.xlane.xlu0 %2758 }
 0x41d   : > { %2880 = vst.msk [vmem:[%s4504_s14 + $0x90] sm:$0xff] %vm2861_vm0, %v2847_v60  ;;  %v2848_v62 = vmax.f32 %v2816_v11, 0.0  ;;  %v2813_v36 = vadd.f32 %v4498_v44, %v2759_v14 }
 0x41e   : > { %v2761_v16 = vpop.xlane.xlu1 %2760 }
 0x41f   : > { %2881 = vst.msk [vmem:[%s4504_s14 + $0x98] sm:$0xff] %vm2861_vm0, %v2848_v62  ;;  %v2845_v12 = vmax.f32 %v2813_v36, 0.0  ;;  %v2814_v26 = vadd.f32 %v4498_v44, %v2761_v16 }
 0x421   : > { %2878 = vst.msk [vmem:[%s4504_s14 + $0x80] sm:$0xff] %vm2861_vm0, %v2845_v12  ;;  %v2846_v30 = vmax.f32 %v2814_v26, 0.0 }
 0x423   : > { %2879 = vst.msk [vmem:[%s4504_s14 + $0x88] sm:$0xff] %vm2861_vm0, %v2846_v30 }
 0x428   : > { %v2771_v41 = vpop.xlane.xlu0 %2770 }
 0x429   : > { %v2819_v42 = vadd.f32 %v4498_v44, %v2771_v41 }
 0x42a   : > { %v2773_v43 = vpop.xlane.xlu1 %2772 }
 0x42b   : > { %v2851_v35 = vmax.f32 %v2819_v42, 0.0  ;;  %v2820_v34 = vadd.f32 %v4498_v44, %v2773_v43 }
 0x42c   : > { %v2767_v18 = vpop.xlane.xlu0 %2766 }
 0x42d   : > { %2884 = vst.msk [vmem:[%s4504_s14 + $0xb0] sm:$0xff] %vm2861_vm0, %v2851_v35  ;;  %v2852_v28 = vmax.f32 %v2820_v34, 0.0  ;;  %v2817_v45 = vadd.f32 %v4498_v44, %v2767_v18 }
 0x42e   : > { %v2769_v19 = vpop.xlane.xlu1 %2768 }
 0x42f   : > { %2885 = vst.msk [vmem:[%s4504_s14 + $0xb8] sm:$0xff] %vm2861_vm0, %v2852_v28  ;;  %v2849_v46 = vmax.f32 %v2817_v45, 0.0  ;;  %v2818_v48 = vadd.f32 %v4498_v44, %v2769_v19 }
 0x431   : > { %2882 = vst.msk [vmem:[%s4504_s14 + $0xa0] sm:$0xff] %vm2861_vm0, %v2849_v46  ;;  %v2850_v20 = vmax.f32 %v2818_v48, 0.0 }
 0x433   : > { %2883 = vst.msk [vmem:[%s4504_s14 + $0xa8] sm:$0xff] %vm2861_vm0, %v2850_v20 }
 0x43a   : > { %v2779_v55 = vpop.xlane.xlu0 %2778 }
 0x43b   : > { %v2823_v13 = vadd.f32 %v4498_v44, %v2779_v55 }
 0x43c   : > { %v2781_v25 = vpop.xlane.xlu1 %2780 }
 0x43d   : > { %v2855_v23 = vmax.f32 %v2823_v13, 0.0  ;;  %v2824_v49 = vadd.f32 %v4498_v44, %v2781_v25 }
 0x43e   : > { %v2775_v32 = vpop.xlane.xlu0 %2774 }
 0x43f   : > { %2888 = vst.msk [vmem:[%s4504_s14 + $0xd0] sm:$0xff] %vm2861_vm0, %v2855_v23  ;;  %v2856_v7 = vmax.f32 %v2824_v49, 0.0  ;;  %v2821_v50 = vadd.f32 %v4498_v44, %v2775_v32 }
 0x440   : > { %v2777_v40 = vpop.xlane.xlu1 %2776 }
 0x441   : > { %2889 = vst.msk [vmem:[%s4504_s14 + $0xd8] sm:$0xff] %vm2861_vm0, %v2856_v7  ;;  %v2853_v53 = vmax.f32 %v2821_v50, 0.0  ;;  %v2822_v39 = vadd.f32 %v4498_v44, %v2777_v40 }
 0x443   : > { %2886 = vst.msk [vmem:[%s4504_s14 + $0xc0] sm:$0xff] %vm2861_vm0, %v2853_v53  ;;  %v2854_v54 = vmax.f32 %v2822_v39, 0.0 }
 0x445   : > { %2887 = vst.msk [vmem:[%s4504_s14 + $0xc8] sm:$0xff] %vm2861_vm0, %v2854_v54 }
 0x44b   : > { %v2783_v56 = vpop.xlane.xlu0 %2782 }
 0x44c   : > { %v2825_v57 = vadd.f32 %v4498_v44, %v2783_v56 }
 0x44d   : > { %v2785_v58 = vpop.xlane.xlu1 %2784 }
 0x44e   : > { %v2857_v33 = vmax.f32 %v2825_v57, 0.0  ;;  %v2826_v47 = vadd.f32 %v4498_v44, %v2785_v58 }
 0x44f   : > { %v2787_v21 = vpop.xlane.xlu0 %2786 }
 0x450   : > { %2890 = vst.msk [vmem:[%s4504_s14 + $0xe0] sm:$0xff] %vm2861_vm0, %v2857_v33  ;;  %v2858_v61 = vmax.f32 %v2826_v47, 0.0  ;;  %v2827_v22 = vadd.f32 %v4498_v44, %v2787_v21 }
 0x451   : > { %v2789_v0 = vpop.xlane.xlu1 %2788 }
 0x452   : > { %2891 = vst.msk [vmem:[%s4504_s14 + $0xe8] sm:$0xff] %vm2861_vm0, %v2858_v61  ;;  %v2859_v24 = vmax.f32 %v2827_v22, 0.0  ;;  %v2828_v1 = vadd.f32 %v4498_v44, %v2789_v0 }
 0x454   : > { %2892 = vst.msk [vmem:[%s4504_s14 + $0xf0] sm:$0xff] %vm2861_vm0, %v2859_v24  ;;  %v2860_v2 = vmax.f32 %v2828_v1, 0.0 }
 0x456   : > { %2893 = vst.msk [vmem:[%s4504_s14 + $0xf8] sm:$0xff] %vm2861_vm0, %v2860_v2 }
 0x457 PF: > { %s24_s23 = sadd.s32 1, %s3476_s23  }
 0x458   : > { %p21_p5 = scmp.ge.s32.totalorder %s24_s23, 6  }
 0x45a   :  { %23 = sbr.rel (!%p21_p5) target bundleno = 3 (0x3), region = 98 }

// kernel: forward_stacker_features.2
= control target key start
LH: loop header
LB: loop body
LE: loop exit
PB: predicated region body
PF: predicated region fallthrough
CT: control target
= control target key end

     0   :  { %v49_v37 = vlaneseq  ;;  %s4135_s4 = inlined_call_operand.vmem [shape: bf16[512,512], index: 4, kind: input, shape index: {}]   ;;  %s4136_s0 = inlined_call_operand.vmem [shape: f32[32,512], index: 0, kind: input, shape index: {}]   ;;  %s4137_s2 = inlined_call_operand.vmem [shape: f32[1,512], index: 2, kind: input, shape index: {}]   ;;  %s4138_s3 = inlined_call_operand.vmem [shape: f32[1,512], index: 3, kind: input, shape index: {}]   ;;  %s4139_s5 = inlined_call_operand.vmem [shape: bf16[512,512], index: 5, kind: input, shape index: {}]   ;;  %s4140_s1 = inlined_call_operand.vmem [shape: f32[32,512], index: 1, kind: input, shape index: {}]   ;;  %s4141_s6 = inlined_call_operand.vmem [shape: f32[1,512], index: 6, kind: input, shape index: {}]   ;;  %s4142_s8 = inlined_call_operand.vmem [shape: f32[32,512], index: 8, kind: output, shape index: {0}]   ;;  %s4143_s7 = inlined_call_operand.vmem [shape: f32[1,512], index: 7, kind: input, shape index: {}]   ;;  %s4144_s9 = inlined_call_operand.vmem [shape: f32[32,512], index: 9, kind: output, shape index: {1}]  }
   0x1   :  { %v2567_v0 = vld [vmem:[%s4135_s4 + $0x4] ss:$16 sps:$4 sm:$0xff]   ;;  %v2569_v1 = vld [vmem:[%s4135_s4 + $0xc] ss:$16 sps:$4 sm:$0xff]   ;;  %v2571_v2 = vld [vmem:[%s4135_s4] ss:$16 sps:$4 sm:$0xff]  }
   0x2   :  { %956 = vmatprep.subr.bf16.mxu0 %v2567_v0  ;;  %v2572_v3 = vld [vmem:[%s4135_s4 + $0x8] ss:$16 sps:$4 sm:$0xff]   ;;  %1062 = vmatprep.subr.bf16.mxu1 %v2569_v1  ;;  %v2573_v4 = vld [vmem:[%s4135_s4 + $0x24] ss:$16 sps:$4 sm:$0xff]   ;;  %v2575_v5 = vld [vmem:[%s4135_s4 + $0x2c] ss:$16 sps:$4 sm:$0xff]  }
   0x3   :  { %957 = vmatpush1.bf16.msra.mxu0 %v2571_v2  ;;  %1063 = vmatpush1.bf16.msra.mxu1 %v2572_v3  ;;  %v2577_v6 = vld [vmem:[%s4135_s4 + $0x20] ss:$16 sps:$4 sm:$0xff]   ;;  %v2578_v7 = vld [vmem:[%s4135_s4 + $0x28] ss:$16 sps:$4 sm:$0xff]   ;;  %v2579_v8 = vld [vmem:[%s4135_s4 + $0x44] ss:$16 sps:$4 sm:$0xff]  }
   0x4   :  { %958 = vmatprep.subr.bf16.mxu0 %v2573_v4  ;;  %1064 = vmatprep.subr.bf16.mxu1 %v2575_v5  ;;  %v2581_v9 = vld [vmem:[%s4135_s4 + $0x4c] ss:$16 sps:$4 sm:$0xff]   ;;  %v2583_v10 = vld [vmem:[%s4135_s4 + $0x40] ss:$16 sps:$4 sm:$0xff]   ;;  %v2584_v11 = vld [vmem:[%s4135_s4 + $0x48] ss:$16 sps:$4 sm:$0xff]  }
   0x5   :  { %v2585_v12 = vld [vmem:[%s4135_s4 + $0x64] ss:$16 sps:$4 sm:$0xff]   ;;  %v2587_v13 = vld [vmem:[%s4135_s4 + $0x6c] ss:$16 sps:$4 sm:$0xff]   ;;  %v2589_v14 = vld [vmem:[%s4135_s4 + $0x60] ss:$16 sps:$4 sm:$0xff]  }
   0x6   :  { %v2590_v15 = vld [vmem:[%s4135_s4 + $0x68] ss:$16 sps:$4 sm:$0xff]   ;;  %v2591_v16 = vld [vmem:[%s4135_s4 + $0x84] ss:$16 sps:$4 sm:$0xff]   ;;  %v2593_v17 = vld [vmem:[%s4135_s4 + $0x8c] ss:$16 sps:$4 sm:$0xff]  }
   0x7   :  { %959 = vmatpush1.bf16.msra.mxu0 %v2577_v6  ;;  %1065 = vmatpush1.bf16.msra.mxu1 %v2578_v7  ;;  %v2595_v18 = vld [vmem:[%s4135_s4 + $0x80] ss:$16 sps:$4 sm:$0xff]   ;;  %v2596_v19 = vld [vmem:[%s4135_s4 + $0x88] ss:$16 sps:$4 sm:$0xff]   ;;  %v2597_v20 = vld [vmem:[%s4135_s4 + $0xa4] ss:$16 sps:$4 sm:$0xff]  }
   0x8   :  { %960 = vmatprep.subr.bf16.mxu0 %v2579_v8  ;;  %1066 = vmatprep.subr.bf16.mxu1 %v2581_v9  ;;  %v2599_v21 = vld [vmem:[%s4135_s4 + $0xac] ss:$16 sps:$4 sm:$0xff]   ;;  %v2601_v22 = vld [vmem:[%s4135_s4 + $0xa0] ss:$16 sps:$4 sm:$0xff]   ;;  %v2602_v23 = vld [vmem:[%s4135_s4 + $0xa8] ss:$16 sps:$4 sm:$0xff]  }
   0x9   :  { %v2603_v24 = vld [vmem:[%s4135_s4 + $0xc4] ss:$16 sps:$4 sm:$0xff]   ;;  %v2605_v25 = vld [vmem:[%s4135_s4 + $0xcc] ss:$16 sps:$4 sm:$0xff]   ;;  %v2607_v26 = vld [vmem:[%s4135_s4 + $0xc0] ss:$16 sps:$4 sm:$0xff]  }
   0xa   :  { %v2608_v27 = vld [vmem:[%s4135_s4 + $0xc8] ss:$16 sps:$4 sm:$0xff]   ;;  %v2609_v28 = vld [vmem:[%s4135_s4 + $0xe4] ss:$16 sps:$4 sm:$0xff]   ;;  %v2611_v29 = vld [vmem:[%s4135_s4 + $0xec] ss:$16 sps:$4 sm:$0xff]  }
   0xb   :  { %961 = vmatpush1.bf16.msra.mxu0 %v2583_v10  ;;  %1067 = vmatpush1.bf16.msra.mxu1 %v2584_v11  ;;  %v2613_v30 = vld [vmem:[%s4135_s4 + $0xe0] ss:$16 sps:$4 sm:$0xff]   ;;  %v2614_v31 = vld [vmem:[%s4135_s4 + $0xe8] ss:$16 sps:$4 sm:$0xff]   ;;  %v2615_v32 = vld [vmem:[%s4135_s4 + $0x104] ss:$16 sps:$4 sm:$0xff]  }
   0xc   :  { %962 = vmatprep.subr.bf16.mxu0 %v2585_v12  ;;  %1068 = vmatprep.subr.bf16.mxu1 %v2587_v13  ;;  %v2617_v33 = vld [vmem:[%s4135_s4 + $0x10c] ss:$16 sps:$4 sm:$0xff]   ;;  %v2619_v34 = vld [vmem:[%s4135_s4 + $0x100] ss:$16 sps:$4 sm:$0xff]   ;;  %v2620_v35 = vld [vmem:[%s4135_s4 + $0x108] ss:$16 sps:$4 sm:$0xff]  }
   0xd   :  { %v2621_v36 = vld [vmem:[%s4135_s4 + $0x124] ss:$16 sps:$4 sm:$0xff]   ;;  %v2623_v38 = vld [vmem:[%s4135_s4 + $0x12c] ss:$16 sps:$4 sm:$0xff]   ;;  %v2625_v39 = vld [vmem:[%s4135_s4 + $0x120] ss:$16 sps:$4 sm:$0xff]  }
   0xe   :  { %v2626_v40 = vld [vmem:[%s4135_s4 + $0x128] ss:$16 sps:$4 sm:$0xff]   ;;  %v2627_v41 = vld [vmem:[%s4135_s4 + $0x144] ss:$16 sps:$4 sm:$0xff]   ;;  %v3124_v42 = vshrl.u32 %v49_v37, 7 }
   0xf   :  { %963 = vmatpush1.bf16.msra.mxu0 %v2589_v14  ;;  %1069 = vmatpush1.bf16.msra.mxu1 %v2590_v15  ;;  %v2629_v43 = vld [vmem:[%s4135_s4 + $0x14c] ss:$16 sps:$4 sm:$0xff]   ;;  %v2631_v44 = vld [vmem:[%s4135_s4 + $0x140] ss:$16 sps:$4 sm:$0xff]   ;;  %v2632_v45 = vld [vmem:[%s4135_s4 + $0x148] ss:$16 sps:$4 sm:$0xff]  }
  0x10   :  { %964 = vmatprep.subr.bf16.mxu0 %v2591_v16  ;;  %1070 = vmatprep.subr.bf16.mxu1 %v2593_v17  ;;  %v2633_v46 = vld [vmem:[%s4135_s4 + $0x164] ss:$16 sps:$4 sm:$0xff]   ;;  %v3139_v47 = vsub.s32 1, %v3124_v42  ;;  %v2635_v48 = vld [vmem:[%s4135_s4 + $0x16c] ss:$16 sps:$4 sm:$0xff]   ;;  %v3183_v61 = vsub.s32 0, %v3124_v42 }
  0x11   :  { %v2637_v49 = vld [vmem:[%s4135_s4 + $0x160] ss:$16 sps:$4 sm:$0xff]   ;;  %v2638_v50 = vld [vmem:[%s4135_s4 + $0x168] ss:$16 sps:$4 sm:$0xff]   ;;  %v2639_v55 = vld [vmem:[%s4135_s4 + $0x184] ss:$16 sps:$4 sm:$0xff]  }
  0x12   :  { %v32_v51 = vld [vmem:[%s4136_s0 + $0x8] sm:$0xff]  ;;  %v3159_v53 = vld [vmem:[%s4137_s2] sm:$0xf]  ;;  %v2645_v2 = vld [vmem:[%s4135_s4 + $0x1a4] ss:$16 sps:$4 sm:$0xff]  }
  0x13   :  { %965 = vmatpush1.bf16.msra.mxu0 %v2595_v18  ;;  %1071 = vmatpush1.bf16.msra.mxu1 %v2596_v19  ;;  %v36_v52 = vld [vmem:[%s4136_s0 + $0x28] sm:$0xff]  ;;  %v3164_v54 = vld [vmem:[%s4138_s3] sm:$0xf]  ;;  %v3171_v56 = vrot.slane %v3159_v53, %v3139_v47  ;;  %v3207_v7 = vrot.slane %v3159_v53, %v3183_v61  ;;  %v2651_v10 = vld [vmem:[%s4135_s4 + $0x1c4] ss:$16 sps:$4 sm:$0xff]  }
  0x14   :  { %966 = vmatprep.subr.bf16.mxu0 %v2597_v20  ;;  %1072 = vmatprep.subr.bf16.mxu1 %v2599_v21  ;;  %v3175_v57 = vrot.slane %v3164_v54, %v3139_v47  ;;  %v2641_v58 = vld [vmem:[%s4135_s4 + $0x18c] ss:$16 sps:$4 sm:$0xff]   ;;  %v2643_v62 = vld [vmem:[%s4135_s4 + $0x180] ss:$16 sps:$4 sm:$0xff]   ;;  %v2644_v63 = vld [vmem:[%s4135_s4 + $0x188] ss:$16 sps:$4 sm:$0xff]   ;;  %v3225_v14 = vrot.slane %v3164_v54, %v3183_v61 }
  0x15   :  { %v70_v59 = vmul.f32 %v3171_v56, %v32_v51  ;;  %v74_v60 = vmul.f32 %v3171_v56, %v36_v52  ;;  %v2647_v3 = vld [vmem:[%s4135_s4 + $0x1ac] ss:$16 sps:$4 sm:$0xff]   ;;  %v2649_v4 = vld [vmem:[%s4135_s4 + $0x1a0] ss:$16 sps:$4 sm:$0xff]   ;;  %v2650_v6 = vld [vmem:[%s4135_s4 + $0x1a8] ss:$16 sps:$4 sm:$0xff]  }
  0x16   :  { %v31_v8 = vld [vmem:[%s4136_s0] sm:$0xff]  ;;  %v2653_v11 = vld [vmem:[%s4135_s4 + $0x1cc] ss:$16 sps:$4 sm:$0xff]   ;;  %v2656_v16 = vld [vmem:[%s4135_s4 + $0x1c8] ss:$16 sps:$4 sm:$0xff]  }
  0x17   :  { %967 = vmatpush1.bf16.msra.mxu0 %v2601_v22  ;;  %1073 = vmatpush1.bf16.msra.mxu1 %v2602_v23  ;;  %v108_v0 = vadd.f32 %v3175_v57, %v70_v59  ;;  %v112_v1 = vadd.f32 %v3175_v57, %v74_v60  ;;  %v35_v9 = vld [vmem:[%s4136_s0 + $0x20] sm:$0xff]  ;;  %v69_v12 = vmul.f32 %v3207_v7, %v31_v8  ;;  %v2659_v18 = vld [vmem:[%s4135_s4 + $0x1ec] ss:$16 sps:$4 sm:$0xff]   ;;  %v2662_v22 = vld [vmem:[%s4135_s4 + $0x1e8] ss:$16 sps:$4 sm:$0xff]  }
  0x18   :  { %968 = vmatprep.subr.bf16.mxu0 %v2603_v24  ;;  %1074 = vmatprep.subr.bf16.mxu1 %v2605_v25  ;;  %v73_v13 = vmul.f32 %v3207_v7, %v35_v9  ;;  %v2655_v15 = vld [vmem:[%s4135_s4 + $0x1c0] ss:$16 sps:$4 sm:$0xff]   ;;  %v2657_v17 = vld [vmem:[%s4135_s4 + $0x1e4] ss:$16 sps:$4 sm:$0xff]   ;;  %v2668_v24 = vld [vmem:[%s4135_s4 + $0x20c] ss:$16 sps:$4 sm:$0xff]  }
  0x19   :  { %v124_v5 = vpack.c.bf16 %v112_v1, %v108_v0  ;;  %v107_v19 = vadd.f32 %v3225_v14, %v69_v12  ;;  %v2661_v21 = vld [vmem:[%s4135_s4 + $0x1e0] ss:$16 sps:$4 sm:$0xff]   ;;  %v2665_v23 = vld [vmem:[%s4135_s4 + $0x204] ss:$16 sps:$4 sm:$0xff]   ;;  %v2686_v37 = vld [vmem:[%s4135_s4 + $0x26c] ss:$16 sps:$4 sm:$0xff]  }
  0x1a   :  { %v111_v20 = vadd.f32 %v3225_v14, %v73_v13  ;;  %v39_v51 = vld [vmem:[%s4136_s0 + $0x40] sm:$0xff]  ;;  %v34_v13 = vld [vmem:[%s4136_s0 + $0x18] sm:$0xff] }
  0x1b   :  { %969 = vmatpush1.bf16.msra.mxu0 %v2607_v26  ;;  %1075 = vmatpush1.bf16.msra.mxu1 %v2608_v27  ;;  %v2663_v26 = vld [vmem:[%s4135_s4 + $0x200] ss:$16 sps:$4 sm:$0xff]   ;;  %v2666_v27 = vld [vmem:[%s4135_s4 + $0x208] ss:$16 sps:$4 sm:$0xff]   ;;  %v77_v59 = vmul.f32 %v3207_v7, %v39_v51  ;;  %v2701_v1 = vld [vmem:[%s4135_s4 + $0x2c4] ss:$16 sps:$4 sm:$0xff]  }
  0x1c   :  { %970 = vmatprep.subr.bf16.mxu0 %v2609_v28  ;;  %1076 = vmatprep.subr.bf16.mxu1 %v2611_v29  ;;  %v123_v25 = vpack.c.bf16 %v111_v20, %v107_v19  ;;  %v2671_v28 = vld [vmem:[%s4135_s4 + $0x224] ss:$16 sps:$4 sm:$0xff]   ;;  %v2674_v29 = vld [vmem:[%s4135_s4 + $0x22c] ss:$16 sps:$4 sm:$0xff]   ;;  %v2693_v60 = vld [vmem:[%s4135_s4 + $0x2a0] ss:$16 sps:$4 sm:$0xff]  }
  0x1d   :  { %988 = vmatprep.mubr.bf16.mxu0 %v124_v5  ;;  %1094 = vmatprep.mubr.bf16.mxu1 %v124_v5  ;;  %v115_v5 = vadd.f32 %v3225_v14, %v77_v59  ;;  %v2752_v59 = vld [vmem:[%s4135_s4 + $0x3cc] ss:$16 sps:$4 sm:$0xff]  }
  0x1f   :  { %971 = vmatpush1.bf16.msra.mxu0 %v2613_v30  ;;  %1077 = vmatpush1.bf16.msra.mxu1 %v2614_v31  ;;  %v2669_v30 = vld [vmem:[%s4135_s4 + $0x220] ss:$16 sps:$4 sm:$0xff]   ;;  %v2672_v31 = vld [vmem:[%s4135_s4 + $0x228] ss:$16 sps:$4 sm:$0xff]  }
  0x20   :  { %972 = vmatprep.subr.bf16.mxu0 %v2615_v32  ;;  %1078 = vmatprep.subr.bf16.mxu1 %v2617_v33  ;;  %v2677_v32 = vld [vmem:[%s4135_s4 + $0x244] ss:$16 sps:$4 sm:$0xff]   ;;  %v2680_v33 = vld [vmem:[%s4135_s4 + $0x24c] ss:$16 sps:$4 sm:$0xff]  }
  0x23   :  { %973 = vmatpush1.bf16.msra.mxu0 %v2619_v34  ;;  %1079 = vmatpush1.bf16.msra.mxu1 %v2620_v35  ;;  %v2675_v34 = vld [vmem:[%s4135_s4 + $0x240] ss:$16 sps:$4 sm:$0xff]   ;;  %v2678_v35 = vld [vmem:[%s4135_s4 + $0x248] ss:$16 sps:$4 sm:$0xff]  }
  0x24   :  { %974 = vmatprep.subr.bf16.mxu0 %v2621_v36  ;;  %1080 = vmatprep.subr.bf16.mxu1 %v2623_v38  ;;  %v2683_v36 = vld [vmem:[%s4135_s4 + $0x264] ss:$16 sps:$4 sm:$0xff]   ;;  %v2681_v38 = vld [vmem:[%s4135_s4 + $0x260] ss:$16 sps:$4 sm:$0xff]  }
  0x27   :  { %975 = vmatpush1.bf16.msra.mxu0 %v2625_v39  ;;  %1081 = vmatpush1.bf16.msra.mxu1 %v2626_v40  ;;  %v2684_v39 = vld [vmem:[%s4135_s4 + $0x268] ss:$16 sps:$4 sm:$0xff]   ;;  %v2689_v40 = vld [vmem:[%s4135_s4 + $0x284] ss:$16 sps:$4 sm:$0xff]  }
  0x28   :  { %976 = vmatprep.subr.bf16.mxu0 %v2627_v41  ;;  %1082 = vmatprep.subr.bf16.mxu1 %v2629_v43  ;;  %v2692_v41 = vld [vmem:[%s4135_s4 + $0x28c] ss:$16 sps:$4 sm:$0xff]   ;;  %v2687_v43 = vld [vmem:[%s4135_s4 + $0x280] ss:$16 sps:$4 sm:$0xff]  }
  0x2b   :  { %977 = vmatpush1.bf16.msra.mxu0 %v2631_v44  ;;  %1083 = vmatpush1.bf16.msra.mxu1 %v2632_v45  ;;  %v2690_v44 = vld [vmem:[%s4135_s4 + $0x288] ss:$16 sps:$4 sm:$0xff]   ;;  %v3308_v45 = vsub.s32 3, %v3124_v42 }
  0x2c   :  { %978 = vmatprep.subr.bf16.mxu0 %v2633_v46  ;;  %1084 = vmatprep.subr.bf16.mxu1 %v2635_v48  ;;  %v2695_v46 = vld [vmem:[%s4135_s4 + $0x2a4] ss:$16 sps:$4 sm:$0xff]   ;;  %v2698_v48 = vld [vmem:[%s4135_s4 + $0x2ac] ss:$16 sps:$4 sm:$0xff]  }
  0x2d   :  { %v3340_v0 = vrot.slane %v3159_v53, %v3308_v45  ;;  %v3354_v9 = vrot.slane %v3164_v54, %v3308_v45 }
  0x2f   :  { %979 = vmatpush1.bf16.msra.mxu0 %v2637_v49  ;;  %1085 = vmatpush1.bf16.msra.mxu1 %v2638_v50  ;;  %v40_v49 = vld [vmem:[%s4136_s0 + $0x48] sm:$0xff] }
  0x30   :  { %980 = vmatprep.subr.bf16.mxu0 %v2639_v55  ;;  %1086 = vmatprep.subr.bf16.mxu1 %v2641_v58  ;;  %v44_v50 = vld [vmem:[%s4136_s0 + $0x68] sm:$0xff]  ;;  %v78_v52 = vmul.f32 %v3171_v56, %v40_v49  ;;  %v43_v58 = vld [vmem:[%s4136_s0 + $0x60] sm:$0xff] }
  0x31   :  { %v82_v55 = vmul.f32 %v3171_v56, %v44_v50  ;;  %v2743_v49 = vld [vmem:[%s4135_s4 + $0x3a4] ss:$16 sps:$4 sm:$0xff]   ;;  %v2741_v50 = vld [vmem:[%s4135_s4 + $0x3a0] ss:$16 sps:$4 sm:$0xff]  }
  0x33   :  { %981 = vmatpush1.bf16.msra.mxu0 %v2643_v62  ;;  %1087 = vmatpush1.bf16.msra.mxu1 %v2644_v63  ;;  %v2696_v62 = vld [vmem:[%s4135_s4 + $0x2a8] ss:$16 sps:$4 sm:$0xff]   ;;  %v81_v63 = vmul.f32 %v3207_v7, %v43_v58  ;;  %v37_v58 = vld [vmem:[%s4136_s0 + $0x30] sm:$0xff] }
  0x34   :  { %982 = vmatprep.subr.bf16.mxu0 %v2645_v2  ;;  %1088 = vmatprep.subr.bf16.mxu1 %v2647_v3  ;;  %v2704_v2 = vld [vmem:[%s4135_s4 + $0x2cc] ss:$16 sps:$4 sm:$0xff]   ;;  %v116_v3 = vadd.f32 %v3175_v57, %v78_v52  ;;  %v2744_v52 = vld [vmem:[%s4135_s4 + $0x3a8] ss:$16 sps:$4 sm:$0xff]  }
  0x37   :  { %983 = vmatpush1.bf16.msra.mxu0 %v2649_v4  ;;  %1089 = vmatpush1.bf16.msra.mxu1 %v2650_v6  ;;  %v120_v4 = vadd.f32 %v3175_v57, %v82_v55  ;;  %v119_v6 = vadd.f32 %v3225_v14, %v81_v63  ;;  %v33_v55 = vld [vmem:[%s4136_s0 + $0x10] sm:$0xff] }
  0x38   :  { %984 = vmatprep.subr.bf16.mxu0 %v2651_v10  ;;  %1090 = vmatprep.subr.bf16.mxu1 %v2653_v11  ;;  %v2699_v10 = vld [vmem:[%s4135_s4 + $0x2c0] ss:$16 sps:$4 sm:$0xff]   ;;  %v2702_v11 = vld [vmem:[%s4135_s4 + $0x2c8] ss:$16 sps:$4 sm:$0xff]  }
  0x39   :  { %v128_v8 = vpack.c.bf16 %v120_v4, %v116_v3  ;;  %v127_v12 = vpack.c.bf16 %v119_v6, %v115_v5  ;;  %v2747_v3 = vld [vmem:[%s4135_s4 + $0x3c0] ss:$16 sps:$4 sm:$0xff]   ;;  %v2750_v4 = vld [vmem:[%s4135_s4 + $0x3c8] ss:$16 sps:$4 sm:$0xff]   ;;  %v2758_v5 = vld [vmem:[%s4135_s4 + $0x3ec] ss:$16 sps:$4 sm:$0xff]  }
  0x3a   :  { %v2753_v6 = vld [vmem:[%s4135_s4 + $0x3e0] ss:$16 sps:$4 sm:$0xff]  }
  0x3b   :  { %985 = vmatpush1.bf16.msra.mxu0 %v2655_v15  ;;  %1091 = vmatpush1.bf16.msra.mxu1 %v2656_v16  ;;  %v2707_v15 = vld [vmem:[%s4135_s4 + $0x2e4] ss:$16 sps:$4 sm:$0xff]   ;;  %v2710_v16 = vld [vmem:[%s4135_s4 + $0x2ec] ss:$16 sps:$4 sm:$0xff]  }
  0x3c   :  { %986 = vmatprep.subr.bf16.mxu0 %v2657_v17  ;;  %1092 = vmatprep.subr.bf16.mxu1 %v2659_v18  ;;  %v38_v17 = vld [vmem:[%s4136_s0 + $0x38] sm:$0xff]  ;;  %v72_v18 = vmul.f32 %v3340_v0, %v34_v13 }
  0x3d   :  { %v76_v19 = vmul.f32 %v3340_v0, %v38_v17  ;;  %v2761_v17 = vld [vmem:[%s4139_s5 + $0x4] ss:$16 sps:$4 sm:$0xff]  }
  0x3e   :  { %v110_v20 = vadd.f32 %v3354_v9, %v72_v18  ;;  %v2764_v18 = vld [vmem:[%s4139_s5 + $0xc] ss:$16 sps:$4 sm:$0xff]  }
  0x3f   :  { %987 = vmatpush1.bf16.msra.mxu0 %v2661_v21  ;;  %1093 = vmatpush1.bf16.msra.mxu1 %v2662_v22  ;;  %v2705_v21 = vld [vmem:[%s4135_s4 + $0x2e0] ss:$16 sps:$4 sm:$0xff]   ;;  %v2708_v22 = vld [vmem:[%s4135_s4 + $0x2e8] ss:$16 sps:$4 sm:$0xff]  }
  0x40   :  { %1009 = vmatprep.subr.bf16.mxu0 %v2665_v23  ;;  %1115 = vmatprep.subr.bf16.mxu1 %v2668_v24  ;;  %v114_v23 = vadd.f32 %v3354_v9, %v76_v19  ;;  %v2713_v24 = vld [vmem:[%s4135_s4 + $0x304] ss:$16 sps:$4 sm:$0xff]  }
  0x42   :  { %989 = vmatmul.mubr.bf16.vlgmr.msra.gmra.mrb[0].mxu0 %v123_v25  ;;  %1095 = vmatmul.mubr.bf16.vlgmr.msra.gmra.mrb[0].mxu1 %v123_v25  ;;  %v2716_v25 = vld [vmem:[%s4135_s4 + $0x30c] ss:$16 sps:$4 sm:$0xff]  }
  0x43   :  { %1010 = vmatpush1.bf16.msra.mxu0 %v2663_v26  ;;  %1116 = vmatpush1.bf16.msra.mxu1 %v2666_v27  ;;  %v126_v26 = vpack.c.bf16 %v114_v23, %v110_v20  ;;  %v2711_v27 = vld [vmem:[%s4135_s4 + $0x300] ss:$16 sps:$4 sm:$0xff]  }
  0x44   :  { %1011 = vmatprep.subr.bf16.mxu0 %v2671_v28  ;;  %1117 = vmatprep.subr.bf16.mxu1 %v2674_v29  ;;  %v2714_v28 = vld [vmem:[%s4135_s4 + $0x308] ss:$16 sps:$4 sm:$0xff]   ;;  %v2719_v29 = vld [vmem:[%s4135_s4 + $0x324] ss:$16 sps:$4 sm:$0xff]  }
  0x45   :  { %998 = vmatprep.mubr.bf16.mxu0 %v128_v8  ;;  %1104 = vmatprep.mubr.bf16.mxu1 %v128_v8 }
  0x47   :  { %1012 = vmatpush1.bf16.msra.mxu0 %v2669_v30  ;;  %1118 = vmatpush1.bf16.msra.mxu1 %v2672_v31  ;;  %v2722_v30 = vld [vmem:[%s4135_s4 + $0x32c] ss:$16 sps:$4 sm:$0xff]   ;;  %v2717_v31 = vld [vmem:[%s4135_s4 + $0x320] ss:$16 sps:$4 sm:$0xff]  }
  0x48   :  { %1013 = vmatprep.subr.bf16.mxu0 %v2677_v32  ;;  %1119 = vmatprep.subr.bf16.mxu1 %v2680_v33  ;;  %v2720_v32 = vld [vmem:[%s4135_s4 + $0x328] ss:$16 sps:$4 sm:$0xff]   ;;  %v2725_v33 = vld [vmem:[%s4135_s4 + $0x344] ss:$16 sps:$4 sm:$0xff]  }
  0x4a   :  { %999 = vmatmul.mubr.bf16.gmra.mrb[4].mxu0 %v127_v12  ;;  %1105 = vmatmul.mubr.bf16.gmra.mrb[4].mxu1 %v127_v12 }
  0x4b   :  { %1014 = vmatpush1.bf16.msra.mxu0 %v2675_v34  ;;  %1120 = vmatpush1.bf16.msra.mxu1 %v2678_v35  ;;  %v2728_v34 = vld [vmem:[%s4135_s4 + $0x34c] ss:$16 sps:$4 sm:$0xff]   ;;  %v2723_v35 = vld [vmem:[%s4135_s4 + $0x340] ss:$16 sps:$4 sm:$0xff]  }
  0x4c   :  { %1015 = vmatprep.subr.bf16.mxu0 %v2683_v36  ;;  %1121 = vmatprep.subr.bf16.mxu1 %v2686_v37  ;;  %v2726_v36 = vld [vmem:[%s4135_s4 + $0x348] ss:$16 sps:$4 sm:$0xff]   ;;  %v2731_v37 = vld [vmem:[%s4135_s4 + $0x364] ss:$16 sps:$4 sm:$0xff]  }
  0x4d   :  { %1041 = vmatprep.mubr.bf16.mxu0 %v126_v26  ;;  %1147 = vmatprep.mubr.bf16.mxu1 %v126_v26  ;;  %v2767_v26 = vld [vmem:[%s4139_s5 + $0x24] ss:$16 sps:$4 sm:$0xff]  }
  0x4f   :  { %1016 = vmatpush1.bf16.msra.mxu0 %v2681_v38  ;;  %1122 = vmatpush1.bf16.msra.mxu1 %v2684_v39  ;;  %v2734_v38 = vld [vmem:[%s4135_s4 + $0x36c] ss:$16 sps:$4 sm:$0xff]   ;;  %v2729_v39 = vld [vmem:[%s4135_s4 + $0x360] ss:$16 sps:$4 sm:$0xff]  }
  0x50   :  { %1017 = vmatprep.subr.bf16.mxu0 %v2689_v40  ;;  %1123 = vmatprep.subr.bf16.mxu1 %v2692_v41  ;;  %v2732_v40 = vld [vmem:[%s4135_s4 + $0x368] ss:$16 sps:$4 sm:$0xff]   ;;  %v2737_v41 = vld [vmem:[%s4135_s4 + $0x384] ss:$16 sps:$4 sm:$0xff]  }
  0x53   :  { %1018 = vmatpush1.bf16.msra.mxu0 %v2687_v43  ;;  %1124 = vmatpush1.bf16.msra.mxu1 %v2690_v44  ;;  %v2740_v43 = vld [vmem:[%s4135_s4 + $0x38c] ss:$16 sps:$4 sm:$0xff]   ;;  %v3439_v44 = vsub.s32 2, %v3124_v42 }
  0x54   :  { %1019 = vmatprep.subr.bf16.mxu0 %v2695_v46  ;;  %1125 = vmatprep.subr.bf16.mxu1 %v2698_v48  ;;  %v2735_v46 = vld [vmem:[%s4135_s4 + $0x380] ss:$16 sps:$4 sm:$0xff]   ;;  %v2738_v48 = vld [vmem:[%s4135_s4 + $0x388] ss:$16 sps:$4 sm:$0xff]   ;;  %v2746_v42 = vld [vmem:[%s4135_s4 + $0x3ac] ss:$16 sps:$4 sm:$0xff]  }
  0x55   :  { %v3458_v51 = vrot.slane %v3159_v53, %v3439_v44  ;;  %v2749_v53 = vld [vmem:[%s4135_s4 + $0x3c4] ss:$16 sps:$4 sm:$0xff]  }
  0x57   :  { %1020 = vmatpush1.bf16.msra.mxu0 %v2693_v60  ;;  %1126 = vmatpush1.bf16.msra.mxu1 %v2696_v62  ;;  %v42_v60 = vld [vmem:[%s4136_s0 + $0x58] sm:$0xff]  ;;  %v3480_v62 = vrot.slane %v3164_v54, %v3439_v44  ;;  %v71_v63 = vmul.f32 %v3458_v51, %v33_v55  ;;  %v2755_v54 = vld [vmem:[%s4135_s4 + $0x3e4] ss:$16 sps:$4 sm:$0xff]  }
  0x58   :  { %1021 = vmatprep.subr.bf16.mxu0 %v2701_v1  ;;  %1127 = vmatprep.subr.bf16.mxu1 %v2704_v2  ;;  %v75_v1 = vmul.f32 %v3458_v51, %v37_v58  ;;  %v46_v2 = vld [vmem:[%s4136_s0 + $0x78] sm:$0xff]  ;;  %v80_v8 = vmul.f32 %v3340_v0, %v42_v60  ;;  %v2785_v55 = vld [vmem:[%s4139_s5 + $0x84] ss:$16 sps:$4 sm:$0xff]  }
  0x59   :  { %v109_v12 = vadd.f32 %v3480_v62, %v71_v63  ;;  %v2788_v58 = vld [vmem:[%s4139_s5 + $0x8c] ss:$16 sps:$4 sm:$0xff]   ;;  %v2791_v60 = vld [vmem:[%s4139_s5 + $0xa4] ss:$16 sps:$4 sm:$0xff]  }
  0x5a   :  { %v113_v13 = vadd.f32 %v3480_v62, %v75_v1  ;;  %v118_v19 = vadd.f32 %v3354_v9, %v80_v8  ;;  %v2794_v63 = vld [vmem:[%s4139_s5 + $0xac] ss:$16 sps:$4 sm:$0xff]   ;;  %v2789_v1 = vld [vmem:[%s4139_s5 + $0xa0] ss:$16 sps:$4 sm:$0xff]  }
  0x5b   :  { %1022 = vmatpush1.bf16.msra.mxu0 %v2699_v10  ;;  %1128 = vmatpush1.bf16.msra.mxu1 %v2702_v11  ;;  %v84_v10 = vmul.f32 %v3340_v0, %v46_v2  ;;  %v2756_v11 = vld [vmem:[%s4135_s4 + $0x3e8] ss:$16 sps:$4 sm:$0xff]   ;;  %v2806_v8 = vld [vmem:[%s4139_s5 + $0xec] ss:$16 sps:$4 sm:$0xff]  }
  0x5c   :  { %1023 = vmatprep.subr.bf16.mxu0 %v2707_v15  ;;  %1129 = vmatprep.subr.bf16.mxu1 %v2710_v16  ;;  %v41_v15 = vld [vmem:[%s4136_s0 + $0x50] sm:$0xff]  ;;  %v2792_v2 = vld [vmem:[%s4139_s5 + $0xa8] ss:$16 sps:$4 sm:$0xff]  }
  0x5d   :  { %v45_v16 = vld [vmem:[%s4136_s0 + $0x70] sm:$0xff]  ;;  %v122_v20 = vadd.f32 %v3354_v9, %v84_v10 }
  0x5e   :  { %v83_v23 = vmul.f32 %v3458_v51, %v45_v16  ;;  %v2801_v10 = vld [vmem:[%s4139_s5 + $0xe0] ss:$16 sps:$4 sm:$0xff]   ;;  %v2810_v16 = vld [vmem:[%s4139_s5 + $0x108] ss:$16 sps:$4 sm:$0xff]  }
  0x5f   :  { %1024 = vmatpush1.bf16.msra.mxu0 %v2705_v21  ;;  %1130 = vmatpush1.bf16.msra.mxu1 %v2708_v22  ;;  %v125_v21 = vpack.c.bf16 %v113_v13, %v109_v12  ;;  %v79_v22 = vmul.f32 %v3458_v51, %v41_v15  ;;  %v2809_v12 = vld [vmem:[%s4139_s5 + $0x104] ss:$16 sps:$4 sm:$0xff]   ;;  %v2812_v13 = vld [vmem:[%s4139_s5 + $0x10c] ss:$16 sps:$4 sm:$0xff]   ;;  %v2807_v15 = vld [vmem:[%s4139_s5 + $0x100] ss:$16 sps:$4 sm:$0xff]  }
  0x60   :  { %1025 = vmatprep.subr.bf16.mxu0 %v2713_v24  ;;  %1131 = vmatprep.subr.bf16.mxu1 %v2716_v25  ;;  %v2759_v24 = vld [vmem:[%s4139_s5] ss:$16 sps:$4 sm:$0xff]   ;;  %v2762_v25 = vld [vmem:[%s4139_s5 + $0x8] ss:$16 sps:$4 sm:$0xff]  }
  0x63   :  { %1026 = vmatpush1.bf16.msra.mxu0 %v2711_v27  ;;  %1132 = vmatpush1.bf16.msra.mxu1 %v2714_v28  ;;  %v2770_v27 = vld [vmem:[%s4139_s5 + $0x2c] ss:$16 sps:$4 sm:$0xff]   ;;  %v130_v28 = vpack.c.bf16 %v122_v20, %v118_v19  ;;  %v2813_v19 = vld [vmem:[%s4139_s5 + $0x120] ss:$16 sps:$4 sm:$0xff]   ;;  %v2816_v20 = vld [vmem:[%s4139_s5 + $0x128] ss:$16 sps:$4 sm:$0xff]  }
  0x64   :  { %1027 = vmatprep.subr.bf16.mxu0 %v2719_v29  ;;  %1133 = vmatprep.subr.bf16.mxu1 %v2722_v30  ;;  %v117_v29 = vadd.f32 %v3480_v62, %v79_v22  ;;  %v121_v30 = vadd.f32 %v3480_v62, %v83_v23  ;;  %v2824_v22 = vld [vmem:[%s4139_s5 + $0x14c] ss:$16 sps:$4 sm:$0xff]   ;;  %v2819_v23 = vld [vmem:[%s4139_s5 + $0x140] ss:$16 sps:$4 sm:$0xff]  }
  0x67   :  { %1028 = vmatpush1.bf16.msra.mxu0 %v2717_v31  ;;  %1134 = vmatpush1.bf16.msra.mxu1 %v2720_v32  ;;  %v2765_v31 = vld [vmem:[%s4139_s5 + $0x20] ss:$16 sps:$4 sm:$0xff]   ;;  %v2768_v32 = vld [vmem:[%s4139_s5 + $0x28] ss:$16 sps:$4 sm:$0xff]  }
  0x68   :  { %1029 = vmatprep.subr.bf16.mxu0 %v2725_v33  ;;  %1135 = vmatprep.subr.bf16.mxu1 %v2728_v34  ;;  %v2773_v33 = vld [vmem:[%s4139_s5 + $0x44] ss:$16 sps:$4 sm:$0xff]   ;;  %v2776_v34 = vld [vmem:[%s4139_s5 + $0x4c] ss:$16 sps:$4 sm:$0xff]  }
  0x6b   :  { %1030 = vmatpush1.bf16.msra.mxu0 %v2723_v35  ;;  %1136 = vmatpush1.bf16.msra.mxu1 %v2726_v36  ;;  %v132_v35 = vld [vmem:[%s4140_s1 + $0x8] sm:$0xff] }
  0x6c   :  { %1031 = vmatprep.subr.bf16.mxu0 %v2731_v37  ;;  %1137 = vmatprep.subr.bf16.mxu1 %v2734_v38  ;;  %v136_v36 = vld [vmem:[%s4140_s1 + $0x28] sm:$0xff]  ;;  %v129_v37 = vpack.c.bf16 %v121_v30, %v117_v29  ;;  %v2771_v38 = vld [vmem:[%s4139_s5 + $0x40] ss:$16 sps:$4 sm:$0xff]   ;;  %v2833_v29 = vld [vmem:[%s4139_s5 + $0x184] ss:$16 sps:$4 sm:$0xff]  }
  0x6d   :  { %v2836_v30 = vld [vmem:[%s4139_s5 + $0x18c] ss:$16 sps:$4 sm:$0xff]  }
  0x6f   :  { %1032 = vmatpush1.bf16.msra.mxu0 %v2729_v39  ;;  %1138 = vmatpush1.bf16.msra.mxu1 %v2732_v40  ;;  %v148_v39 = vmul.f32 %v132_v35, %v3171_v56  ;;  %v152_v40 = vmul.f32 %v136_v36, %v3171_v56  ;;  %v2837_v35 = vld [vmem:[%s4139_s5 + $0x1a0] ss:$16 sps:$4 sm:$0xff]   ;;  %v2840_v36 = vld [vmem:[%s4139_s5 + $0x1a8] ss:$16 sps:$4 sm:$0xff]  }
  0x70   :  { %1033 = vmatprep.subr.bf16.mxu0 %v2737_v41  ;;  %1139 = vmatprep.subr.bf16.mxu1 %v2740_v43  ;;  %v2774_v41 = vld [vmem:[%s4139_s5 + $0x48] ss:$16 sps:$4 sm:$0xff]   ;;  %v2779_v43 = vld [vmem:[%s4139_s5 + $0x64] ss:$16 sps:$4 sm:$0xff]  }
  0x73   :  { %1034 = vmatpush1.bf16.msra.mxu0 %v2735_v46  ;;  %1140 = vmatpush1.bf16.msra.mxu1 %v2738_v48  ;;  %v2782_v46 = vld [vmem:[%s4139_s5 + $0x6c] ss:$16 sps:$4 sm:$0xff]   ;;  %v164_v48 = vadd.f32 %v148_v39, %v3175_v57  ;;  %v2845_v39 = vld [vmem:[%s4139_s5 + $0x1c4] ss:$16 sps:$4 sm:$0xff]  }
  0x74   :  { %1035 = vmatprep.subr.bf16.mxu0 %v2743_v49  ;;  %1141 = vmatprep.subr.bf16.mxu1 %v2746_v42  ;;  %v168_v49 = vadd.f32 %v152_v40, %v3175_v57  ;;  %v2848_v40 = vld [vmem:[%s4139_s5 + $0x1cc] ss:$16 sps:$4 sm:$0xff]  }
  0x76   :  { %v180_v42 = vpack.c.bf16 %v168_v49, %v164_v48  ;;  %v144_v48 = vld [vmem:[%s4140_s1 + $0x68] sm:$0xff]  ;;  %v2843_v49 = vld [vmem:[%s4139_s5 + $0x1c0] ss:$16 sps:$4 sm:$0xff]  }
  0x77   :  { %1036 = vmatpush1.bf16.msra.mxu0 %v2741_v50  ;;  %1142 = vmatpush1.bf16.msra.mxu1 %v2744_v52  ;;  %v2777_v50 = vld [vmem:[%s4139_s5 + $0x60] ss:$16 sps:$4 sm:$0xff]   ;;  %v2780_v52 = vld [vmem:[%s4139_s5 + $0x68] ss:$16 sps:$4 sm:$0xff]  }
  0x78   :  { %1037 = vmatprep.subr.bf16.mxu0 %v2749_v53  ;;  %1143 = vmatprep.subr.bf16.mxu1 %v2752_v59  ;;  %v2783_v53 = vld [vmem:[%s4139_s5 + $0x80] ss:$16 sps:$4 sm:$0xff]   ;;  %v2786_v59 = vld [vmem:[%s4139_s5 + $0x88] ss:$16 sps:$4 sm:$0xff]  }
  0x7b   :  { %1038 = vmatpush1.bf16.msra.mxu0 %v2747_v3  ;;  %1144 = vmatpush1.bf16.msra.mxu1 %v2750_v4  ;;  %v2797_v3 = vld [vmem:[%s4139_s5 + $0xc4] ss:$16 sps:$4 sm:$0xff]   ;;  %v2800_v4 = vld [vmem:[%s4139_s5 + $0xcc] ss:$16 sps:$4 sm:$0xff]  }
  0x7c   :  { %1039 = vmatprep.subr.bf16.mxu0 %v2755_v54  ;;  %1145 = vmatprep.subr.bf16.mxu1 %v2758_v5  ;;  %v2795_v54 = vld [vmem:[%s4139_s5 + $0xc0] ss:$16 sps:$4 sm:$0xff]   ;;  %v2798_v5 = vld [vmem:[%s4139_s5 + $0xc8] ss:$16 sps:$4 sm:$0xff]  }
  0x7f   :  { %1040 = vmatpush1.bf16.msra.mxu0 %v2753_v6  ;;  %1146 = vmatpush1.bf16.msra.mxu1 %v2756_v11  ;;  %v2803_v6 = vld [vmem:[%s4139_s5 + $0xe4] ss:$16 sps:$4 sm:$0xff]   ;;  %v2804_v11 = vld [vmem:[%s4139_s5 + $0xe8] ss:$16 sps:$4 sm:$0xff]  }
  0x80   :  { %1989 = vmatprep.subr.bf16.mxu0 %v2761_v17  ;;  %2095 = vmatprep.subr.bf16.mxu1 %v2764_v18  ;;  %v2815_v17 = vld [vmem:[%s4139_s5 + $0x124] ss:$16 sps:$4 sm:$0xff]   ;;  %v2818_v18 = vld [vmem:[%s4139_s5 + $0x12c] ss:$16 sps:$4 sm:$0xff]  }
  0x82   :  { %1042 = vmatmul.mubr.bf16.vlgmr.msra.gmra.mrb[0].mxu0 %v125_v21  ;;  %1148 = vmatmul.mubr.bf16.vlgmr.msra.gmra.mrb[0].mxu1 %v125_v21  ;;  %v2821_v21 = vld [vmem:[%s4139_s5 + $0x144] ss:$16 sps:$4 sm:$0xff]  }
  0x83   :  { %1990 = vmatpush1.bf16.msra.mxu0 %v2759_v24  ;;  %2096 = vmatpush1.bf16.msra.mxu1 %v2762_v25  ;;  %v2822_v24 = vld [vmem:[%s4139_s5 + $0x148] ss:$16 sps:$4 sm:$0xff]   ;;  %v2827_v25 = vld [vmem:[%s4139_s5 + $0x164] ss:$16 sps:$4 sm:$0xff]  }
  0x84   :  { %1991 = vmatprep.subr.bf16.mxu0 %v2767_v26  ;;  %2097 = vmatprep.subr.bf16.mxu1 %v2770_v27  ;;  %v2830_v26 = vld [vmem:[%s4139_s5 + $0x16c] ss:$16 sps:$4 sm:$0xff]   ;;  %v2825_v27 = vld [vmem:[%s4139_s5 + $0x160] ss:$16 sps:$4 sm:$0xff]  }
  0x85   :  { %1051 = vmatprep.mubr.bf16.mxu0 %v130_v28  ;;  %1157 = vmatprep.mubr.bf16.mxu1 %v130_v28  ;;  %v2828_v28 = vld [vmem:[%s4139_s5 + $0x168] ss:$16 sps:$4 sm:$0xff]  }
  0x87   :  { %1992 = vmatpush1.bf16.msra.mxu0 %v2765_v31  ;;  %2098 = vmatpush1.bf16.msra.mxu1 %v2768_v32  ;;  %v2831_v31 = vld [vmem:[%s4139_s5 + $0x180] ss:$16 sps:$4 sm:$0xff]   ;;  %v2834_v32 = vld [vmem:[%s4139_s5 + $0x188] ss:$16 sps:$4 sm:$0xff]  }
  0x88   :  { %1993 = vmatprep.subr.bf16.mxu0 %v2773_v33  ;;  %2099 = vmatprep.subr.bf16.mxu1 %v2776_v34  ;;  %v2839_v33 = vld [vmem:[%s4139_s5 + $0x1a4] ss:$16 sps:$4 sm:$0xff]   ;;  %v2842_v34 = vld [vmem:[%s4139_s5 + $0x1ac] ss:$16 sps:$4 sm:$0xff]  }
  0x8a   :  { %1052 = vmatmul.mubr.bf16.gmra.mrb[4].mxu0 %v129_v37  ;;  %1158 = vmatmul.mubr.bf16.gmra.mrb[4].mxu1 %v129_v37  ;;  %v131_v37 = vld [vmem:[%s4140_s1] sm:$0xff] }
  0x8b   :  { %1994 = vmatpush1.bf16.msra.mxu0 %v2771_v38  ;;  %2100 = vmatpush1.bf16.msra.mxu1 %v2774_v41  ;;  %v135_v38 = vld [vmem:[%s4140_s1 + $0x20] sm:$0xff]  ;;  %v147_v41 = vmul.f32 %v131_v37, %v3207_v7 }
  0x8c   :  { %1995 = vmatprep.subr.bf16.mxu0 %v2779_v43  ;;  %2101 = vmatprep.subr.bf16.mxu1 %v2782_v46  ;;  %v151_v43 = vmul.f32 %v135_v38, %v3207_v7  ;;  %v140_v46 = vld [vmem:[%s4140_s1 + $0x48] sm:$0xff]  ;;  %v2887_v37 = vld [vmem:[%s4139_s5 + $0x2a4] ss:$16 sps:$4 sm:$0xff]  }
  0x8d   :  { %2021 = vmatprep.mubr.bf16.mxu0 %v180_v42  ;;  %2127 = vmatprep.mubr.bf16.mxu1 %v180_v42  ;;  %v2846_v42 = vld [vmem:[%s4139_s5 + $0x1c8] ss:$16 sps:$4 sm:$0xff]   ;;  %v2890_v38 = vld [vmem:[%s4139_s5 + $0x2ac] ss:$16 sps:$4 sm:$0xff]  }
  0x8f   :  { %1996 = vmatpush1.bf16.msra.mxu0 %v2777_v50  ;;  %2102 = vmatpush1.bf16.msra.mxu1 %v2780_v52  ;;  %v2851_v50 = vld [vmem:[%s4139_s5 + $0x1e4] ss:$16 sps:$4 sm:$0xff]   ;;  %v2854_v52 = vld [vmem:[%s4139_s5 + $0x1ec] ss:$16 sps:$4 sm:$0xff]  }
  0x90   :  { %1997 = vmatprep.subr.bf16.mxu0 %v2785_v55  ;;  %2103 = vmatprep.subr.bf16.mxu1 %v2788_v58  ;;  %v156_v55 = vmul.f32 %v140_v46, %v3171_v56  ;;  %v160_v58 = vmul.f32 %v144_v48, %v3171_v56  ;;  %v143_v56 = vld [vmem:[%s4140_s1 + $0x60] sm:$0xff]  ;;  %v2894_v48 = vld [vmem:[%s4139_s5 + $0x2c8] ss:$16 sps:$4 sm:$0xff]  }
  0x91   :  { %v2891_v46 = vld [vmem:[%s4139_s5 + $0x2c0] ss:$16 sps:$4 sm:$0xff]  }
  0x93   :  { %1998 = vmatpush1.bf16.msra.mxu0 %v2783_v53  ;;  %2104 = vmatpush1.bf16.msra.mxu1 %v2786_v59  ;;  %v2849_v53 = vld [vmem:[%s4139_s5 + $0x1e0] ss:$16 sps:$4 sm:$0xff]   ;;  %v163_v59 = vadd.f32 %v147_v41, %v3225_v14  ;;  %v2893_v41 = vld [vmem:[%s4139_s5 + $0x2c4] ss:$16 sps:$4 sm:$0xff]  }
  0x94   :  { %1999 = vmatprep.subr.bf16.mxu0 %v2791_v60  ;;  %2105 = vmatprep.subr.bf16.mxu1 %v2794_v63  ;;  %v167_v60 = vadd.f32 %v151_v43, %v3225_v14  ;;  %v2852_v63 = vld [vmem:[%s4139_s5 + $0x1e8] ss:$16 sps:$4 sm:$0xff]   ;;  %v2896_v43 = vld [vmem:[%s4139_s5 + $0x2cc] ss:$16 sps:$4 sm:$0xff]  }
  0x97   :  { %2000 = vmatpush1.bf16.msra.mxu0 %v2789_v1  ;;  %2106 = vmatpush1.bf16.msra.mxu1 %v2792_v2  ;;  %v139_v1 = vld [vmem:[%s4140_s1 + $0x40] sm:$0xff] }
  0x98   :  { %2001 = vmatprep.subr.bf16.mxu0 %v2797_v3  ;;  %2107 = vmatprep.subr.bf16.mxu1 %v2800_v4  ;;  %v2857_v2 = vld [vmem:[%s4139_s5 + $0x204] ss:$16 sps:$4 sm:$0xff]   ;;  %v2860_v3 = vld [vmem:[%s4139_s5 + $0x20c] ss:$16 sps:$4 sm:$0xff]   ;;  %v172_v4 = vadd.f32 %v156_v55, %v3175_v57 }
  0x99   :  { %v2905_v55 = vld [vmem:[%s4139_s5 + $0x304] ss:$16 sps:$4 sm:$0xff]  }
  0x9b   :  { %2002 = vmatpush1.bf16.msra.mxu0 %v2795_v54  ;;  %2108 = vmatpush1.bf16.msra.mxu1 %v2798_v5  ;;  %v176_v54 = vadd.f32 %v160_v58, %v3175_v57  ;;  %v179_v5 = vpack.c.bf16 %v167_v60, %v163_v59  ;;  %v2858_v57 = vld [vmem:[%s4139_s5 + $0x208] ss:$16 sps:$4 sm:$0xff]   ;;  %v2908_v58 = vld [vmem:[%s4139_s5 + $0x30c] ss:$16 sps:$4 sm:$0xff]   ;;  %v2911_v60 = vld [vmem:[%s4139_s5 + $0x324] ss:$16 sps:$4 sm:$0xff]  }
  0x9c   :  { %2003 = vmatprep.subr.bf16.mxu0 %v2803_v6  ;;  %2109 = vmatprep.subr.bf16.mxu1 %v2806_v8  ;;  %v155_v6 = vmul.f32 %v139_v1, %v3207_v7  ;;  %v159_v8 = vmul.f32 %v143_v56, %v3207_v7  ;;  %v2863_v7 = vld [vmem:[%s4139_s5 + $0x224] ss:$16 sps:$4 sm:$0xff]   ;;  %v2906_v59 = vld [vmem:[%s4139_s5 + $0x308] ss:$16 sps:$4 sm:$0xff]   ;;  %v2909_v1 = vld [vmem:[%s4139_s5 + $0x320] ss:$16 sps:$4 sm:$0xff]  }
  0x9d   :  { %v2912_v56 = vld [vmem:[%s4139_s5 + $0x328] ss:$16 sps:$4 sm:$0xff]  }
  0x9f   :  { %2004 = vmatpush1.bf16.msra.mxu0 %v2801_v10  ;;  %2110 = vmatpush1.bf16.msra.mxu1 %v2804_v11  ;;  %v134_v10 = vld [vmem:[%s4140_s1 + $0x18] sm:$0xff] }
  0xa0   :  { %2005 = vmatprep.subr.bf16.mxu0 %v2809_v12  ;;  %2111 = vmatprep.subr.bf16.mxu1 %v2812_v13  ;;  %v138_v11 = vld [vmem:[%s4140_s1 + $0x38] sm:$0xff]  ;;  %v2855_v12 = vld [vmem:[%s4139_s5 + $0x200] ss:$16 sps:$4 sm:$0xff]  }
  0xa1   :  { %v2866_v13 = vld [vmem:[%s4139_s5 + $0x22c] ss:$16 sps:$4 sm:$0xff]  }
  0xa3   :  { %2006 = vmatpush1.bf16.msra.mxu0 %v2807_v15  ;;  %2112 = vmatpush1.bf16.msra.mxu1 %v2810_v16  ;;  %v184_v15 = vpack.c.bf16 %v176_v54, %v172_v4  ;;  %v150_v16 = vmul.f32 %v134_v10, %v3340_v0  ;;  %v2915_v4 = vld [vmem:[%s4139_s5 + $0x340] ss:$16 sps:$4 sm:$0xff]   ;;  %v2918_v54 = vld [vmem:[%s4139_s5 + $0x348] ss:$16 sps:$4 sm:$0xff]  }
  0xa4   :  { %2007 = vmatprep.subr.bf16.mxu0 %v2815_v17  ;;  %2113 = vmatprep.subr.bf16.mxu1 %v2818_v18  ;;  %v154_v17 = vmul.f32 %v138_v11, %v3340_v0  ;;  %v171_v18 = vadd.f32 %v155_v6, %v3225_v14  ;;  %v2926_v6 = vld [vmem:[%s4139_s5 + $0x36c] ss:$16 sps:$4 sm:$0xff]   ;;  %v2924_v10 = vld [vmem:[%s4139_s5 + $0x368] ss:$16 sps:$4 sm:$0xff]   ;;  %v2929_v11 = vld [vmem:[%s4139_s5 + $0x384] ss:$16 sps:$4 sm:$0xff]  }
  0xa7   :  { %2008 = vmatpush1.bf16.msra.mxu0 %v2813_v19  ;;  %2114 = vmatpush1.bf16.msra.mxu1 %v2816_v20  ;;  %v175_v19 = vadd.f32 %v159_v8, %v3225_v14  ;;  %v2861_v20 = vld [vmem:[%s4139_s5 + $0x220] ss:$16 sps:$4 sm:$0xff]   ;;  %v2872_v14 = vld [vmem:[%s4139_s5 + $0x24c] ss:$16 sps:$4 sm:$0xff]  }
  0xa8   :  { %2009 = vmatprep.subr.bf16.mxu0 %v2821_v21  ;;  %2115 = vmatprep.subr.bf16.mxu1 %v2824_v22  ;;  %v2864_v21 = vld [vmem:[%s4139_s5 + $0x228] ss:$16 sps:$4 sm:$0xff]   ;;  %v2869_v22 = vld [vmem:[%s4139_s5 + $0x244] ss:$16 sps:$4 sm:$0xff]   ;;  %v2921_v8 = vld [vmem:[%s4139_s5 + $0x360] ss:$16 sps:$4 sm:$0xff]  }
  0xab   :  { %2010 = vmatpush1.bf16.msra.mxu0 %v2819_v23  ;;  %2116 = vmatpush1.bf16.msra.mxu1 %v2822_v24  ;;  %v166_v23 = vadd.f32 %v150_v16, %v3354_v9  ;;  %v170_v24 = vadd.f32 %v154_v17, %v3354_v9  ;;  %v2933_v16 = vld [vmem:[%s4139_s5 + $0x3a0] ss:$16 sps:$4 sm:$0xff]   ;;  %v2936_v17 = vld [vmem:[%s4139_s5 + $0x3a8] ss:$16 sps:$4 sm:$0xff]  }
  0xac   :  { %2011 = vmatprep.subr.bf16.mxu0 %v2827_v25  ;;  %2117 = vmatprep.subr.bf16.mxu1 %v2830_v26  ;;  %v183_v25 = vpack.c.bf16 %v175_v19, %v171_v18  ;;  %v2867_v26 = vld [vmem:[%s4139_s5 + $0x240] ss:$16 sps:$4 sm:$0xff]   ;;  %v2941_v18 = vld [vmem:[%s4139_s5 + $0x3c4] ss:$16 sps:$4 sm:$0xff]  }
  0xad   :  { %v133_v19 = vld [vmem:[%s4140_s1 + $0x10] sm:$0xff] }
  0xaf   :  { %2012 = vmatpush1.bf16.msra.mxu0 %v2825_v27  ;;  %2118 = vmatpush1.bf16.msra.mxu1 %v2828_v28  ;;  %v2870_v27 = vld [vmem:[%s4139_s5 + $0x248] ss:$16 sps:$4 sm:$0xff]   ;;  %v2875_v28 = vld [vmem:[%s4139_s5 + $0x264] ss:$16 sps:$4 sm:$0xff]  }
  0xb0   :  { %2013 = vmatprep.subr.bf16.mxu0 %v2833_v29  ;;  %2119 = vmatprep.subr.bf16.mxu1 %v2836_v30  ;;  %v2878_v29 = vld [vmem:[%s4139_s5 + $0x26c] ss:$16 sps:$4 sm:$0xff]   ;;  %v182_v30 = vpack.c.bf16 %v170_v24, %v166_v23  ;;  %v149_v23 = vmul.f32 %v133_v19, %v3458_v51 }
  0xb3   :  { %2014 = vmatpush1.bf16.msra.mxu0 %v2831_v31  ;;  %2120 = vmatpush1.bf16.msra.mxu1 %v2834_v32  ;;  %v2873_v31 = vld [vmem:[%s4139_s5 + $0x260] ss:$16 sps:$4 sm:$0xff]   ;;  %v2876_v32 = vld [vmem:[%s4139_s5 + $0x268] ss:$16 sps:$4 sm:$0xff]  }
  0xb4   :  { %2015 = vmatprep.subr.bf16.mxu0 %v2839_v33  ;;  %2121 = vmatprep.subr.bf16.mxu1 %v2842_v34  ;;  %v2881_v33 = vld [vmem:[%s4139_s5 + $0x284] ss:$16 sps:$4 sm:$0xff]   ;;  %v2884_v34 = vld [vmem:[%s4139_s5 + $0x28c] ss:$16 sps:$4 sm:$0xff]  }
  0xb7   :  { %2016 = vmatpush1.bf16.msra.mxu0 %v2837_v35  ;;  %2122 = vmatpush1.bf16.msra.mxu1 %v2840_v36  ;;  %v2879_v35 = vld [vmem:[%s4139_s5 + $0x280] ss:$16 sps:$4 sm:$0xff]   ;;  %v2882_v36 = vld [vmem:[%s4139_s5 + $0x288] ss:$16 sps:$4 sm:$0xff]  }
  0xb8   :  { %2017 = vmatprep.subr.bf16.mxu0 %v2845_v39  ;;  %2123 = vmatprep.subr.bf16.mxu1 %v2848_v40  ;;  %v2885_v39 = vld [vmem:[%s4139_s5 + $0x2a0] ss:$16 sps:$4 sm:$0xff]   ;;  %v2888_v40 = vld [vmem:[%s4139_s5 + $0x2a8] ss:$16 sps:$4 sm:$0xff]  }
  0xbb   :  { %2018 = vmatpush1.bf16.msra.mxu0 %v2843_v49  ;;  %2124 = vmatpush1.bf16.msra.mxu1 %v2846_v42  ;;  %v2899_v49 = vld [vmem:[%s4139_s5 + $0x2e4] ss:$16 sps:$4 sm:$0xff]   ;;  %v2902_v42 = vld [vmem:[%s4139_s5 + $0x2ec] ss:$16 sps:$4 sm:$0xff]  }
  0xbc   :  { %2019 = vmatprep.subr.bf16.mxu0 %v2851_v50  ;;  %2125 = vmatprep.subr.bf16.mxu1 %v2854_v52  ;;  %v2897_v50 = vld [vmem:[%s4139_s5 + $0x2e0] ss:$16 sps:$4 sm:$0xff]   ;;  %v2900_v52 = vld [vmem:[%s4139_s5 + $0x2e8] ss:$16 sps:$4 sm:$0xff]  }
  0xbf   :  { %2020 = vmatpush1.bf16.msra.mxu0 %v2849_v53  ;;  %2126 = vmatpush1.bf16.msra.mxu1 %v2852_v63  ;;  %v2903_v53 = vld [vmem:[%s4139_s5 + $0x300] ss:$16 sps:$4 sm:$0xff]   ;;  %v2914_v63 = vld [vmem:[%s4139_s5 + $0x32c] ss:$16 sps:$4 sm:$0xff]  }
  0xc0   :  { %2042 = vmatprep.subr.bf16.mxu0 %v2857_v2  ;;  %2148 = vmatprep.subr.bf16.mxu1 %v2860_v3  ;;  %v2917_v2 = vld [vmem:[%s4139_s5 + $0x344] ss:$16 sps:$4 sm:$0xff]   ;;  %v2920_v3 = vld [vmem:[%s4139_s5 + $0x34c] ss:$16 sps:$4 sm:$0xff]  }
  0xc2   :  { %2022 = vmatmul.mubr.bf16.vlgmr.msra.gmra.mrb[8].mxu0 %v179_v5  ;;  %2128 = vmatmul.mubr.bf16.vlgmr.msra.gmra.mrb[8].mxu1 %v179_v5  ;;  %v2923_v5 = vld [vmem:[%s4139_s5 + $0x364] ss:$16 sps:$4 sm:$0xff]  }
  0xc3   :  { %2043 = vmatpush1.bf16.msra.mxu0 %v2855_v12  ;;  %2149 = vmatpush1.bf16.msra.mxu1 %v2858_v57  ;;  %v2932_v12 = vld [vmem:[%s4139_s5 + $0x38c] ss:$16 sps:$4 sm:$0xff]   ;;  %v2927_v57 = vld [vmem:[%s4139_s5 + $0x380] ss:$16 sps:$4 sm:$0xff]  }
  0xc4   :  { %2044 = vmatprep.subr.bf16.mxu0 %v2863_v7  ;;  %2150 = vmatprep.subr.bf16.mxu1 %v2866_v13  ;;  %v2930_v7 = vld [vmem:[%s4139_s5 + $0x388] ss:$16 sps:$4 sm:$0xff]   ;;  %v2935_v13 = vld [vmem:[%s4139_s5 + $0x3a4] ss:$16 sps:$4 sm:$0xff]  }
  0xc5   :  { %2031 = vmatprep.mubr.bf16.mxu0 %v184_v15  ;;  %2137 = vmatprep.mubr.bf16.mxu1 %v184_v15  ;;  %v2938_v15 = vld [vmem:[%s4139_s5 + $0x3ac] ss:$16 sps:$4 sm:$0xff]  }
  0xc7   :  { %2045 = vmatpush1.bf16.msra.mxu0 %v2861_v20  ;;  %2151 = vmatpush1.bf16.msra.mxu1 %v2864_v21  ;;  %v137_v20 = vld [vmem:[%s4140_s1 + $0x30] sm:$0xff]  ;;  %v2944_v21 = vld [vmem:[%s4139_s5 + $0x3cc] ss:$16 sps:$4 sm:$0xff]  }
  0xc8   :  { %2046 = vmatprep.subr.bf16.mxu0 %v2869_v22  ;;  %2152 = vmatprep.subr.bf16.mxu1 %v2872_v14  ;;  %v142_v22 = vld [vmem:[%s4140_s1 + $0x58] sm:$0xff]  ;;  %v153_v24 = vmul.f32 %v137_v20, %v3458_v51 }
  0xc9   :  { %v146_v14 = vld [vmem:[%s4140_s1 + $0x78] sm:$0xff] }
  0xca   :  { %2032 = vmatmul.mubr.bf16.gmra.mrb[12].mxu0 %v183_v25  ;;  %2138 = vmatmul.mubr.bf16.gmra.mrb[12].mxu1 %v183_v25  ;;  %v2939_v25 = vld [vmem:[%s4139_s5 + $0x3c0] ss:$16 sps:$4 sm:$0xff]  }
  0xcb   :  { %2047 = vmatpush1.bf16.msra.mxu0 %v2867_v26  ;;  %2153 = vmatpush1.bf16.msra.mxu1 %v2870_v27  ;;  %v2942_v26 = vld [vmem:[%s4139_s5 + $0x3c8] ss:$16 sps:$4 sm:$0xff]   ;;  %v158_v27 = vmul.f32 %v142_v22, %v3340_v0 }
  0xcc   :  { %2048 = vmatprep.subr.bf16.mxu0 %v2875_v28  ;;  %2154 = vmatprep.subr.bf16.mxu1 %v2878_v29  ;;  %v162_v28 = vmul.f32 %v146_v14, %v3340_v0  ;;  %v2947_v29 = vld [vmem:[%s4139_s5 + $0x3e4] ss:$16 sps:$4 sm:$0xff]   ;;  %v2948_v0 = vld [vmem:[%s4139_s5 + $0x3e8] ss:$16 sps:$4 sm:$0xff]  }
  0xcd   :  { %2074 = vmatprep.mubr.bf16.mxu0 %v182_v30  ;;  %2180 = vmatprep.mubr.bf16.mxu1 %v182_v30  ;;  %v2950_v30 = vld [vmem:[%s4139_s5 + $0x3ec] ss:$16 sps:$4 sm:$0xff]  }
  0xcf   :  { %2049 = vmatpush1.bf16.msra.mxu0 %v2873_v31  ;;  %2155 = vmatpush1.bf16.msra.mxu1 %v2876_v32  ;;  %v2945_v31 = vld [vmem:[%s4139_s5 + $0x3e0] ss:$16 sps:$4 sm:$0xff]   ;;  %v165_v32 = vadd.f32 %v149_v23, %v3480_v62 }
  0xd0   :  { %2050 = vmatprep.subr.bf16.mxu0 %v2881_v33  ;;  %2156 = vmatprep.subr.bf16.mxu1 %v2884_v34  ;;  %v169_v33 = vadd.f32 %v153_v24, %v3480_v62  ;;  %v174_v34 = vadd.f32 %v158_v27, %v3354_v9  ;;  %v2217_v23 = vld [vmem:[%s4143_s7] sm:$0xf] }
  0xd1   :  { %v2222_v24 = vrot.slane %v2217_v23, %v3183_v61 }
  0xd3   :  { %2051 = vmatpush1.bf16.msra.mxu0 %v2879_v35  ;;  %2157 = vmatpush1.bf16.msra.mxu1 %v2882_v36  ;;  %v178_v35 = vadd.f32 %v162_v28, %v3354_v9  ;;  %v141_v36 = vld [vmem:[%s4140_s1 + $0x50] sm:$0xff]  ;;  %v2226_v28 = vrot.slane %v2217_v23, %v3139_v47 }
  0xd4   :  { %2052 = vmatprep.subr.bf16.mxu0 %v2887_v37  ;;  %2158 = vmatprep.subr.bf16.mxu1 %v2890_v38  ;;  %v145_v37 = vld [vmem:[%s4140_s1 + $0x70] sm:$0xff]  ;;  %v181_v38 = vpack.c.bf16 %v169_v33, %v165_v32 }
  0xd7   :  { %2053 = vmatpush1.bf16.msra.mxu0 %v2885_v39  ;;  %2159 = vmatpush1.bf16.msra.mxu1 %v2888_v40  ;;  %v157_v39 = vmul.f32 %v141_v36, %v3458_v51  ;;  %v161_v40 = vmul.f32 %v145_v37, %v3458_v51 }
  0xd8   :  { %2054 = vmatprep.subr.bf16.mxu0 %v2893_v41  ;;  %2160 = vmatprep.subr.bf16.mxu1 %v2896_v43  ;;  %v186_v41 = vpack.c.bf16 %v178_v35, %v174_v34 }
  0xd9   :  { %v173_v9 = vadd.f32 %v157_v39, %v3480_v62  ;;  %v177_v43 = vadd.f32 %v161_v40, %v3480_v62 }
  0xdb   :  { %2055 = vmatpush1.bf16.msra.mxu0 %v2891_v46  ;;  %2161 = vmatpush1.bf16.msra.mxu1 %v2894_v48  ;;  %v185_v46 = vpack.c.bf16 %v177_v43, %v173_v9  ;;  %v187_v48 = vld [vmem:[%s4141_s6] sm:$0xf] }
  0xdc   :  { %2056 = vmatprep.subr.bf16.mxu0 %v2899_v49  ;;  %2162 = vmatprep.subr.bf16.mxu1 %v2902_v42  ;;  %v3989_v51 = vrot.slane %v187_v48, %v3183_v61  ;;  %v3992_v49 = vrot.slane %v187_v48, %v3439_v44  ;;  %v3995_v42 = vrot.slane %v187_v48, %v3139_v47 }
  0xdd   :  { %v3998_v62 = vrot.slane %v187_v48, %v3308_v45 }
  0xdf   :  { %2057 = vmatpush1.bf16.msra.mxu0 %v2897_v50  ;;  %2163 = vmatpush1.bf16.msra.mxu1 %v2900_v52 }
  0xe0   :  { %2058 = vmatprep.subr.bf16.mxu0 %v2905_v55  ;;  %2164 = vmatprep.subr.bf16.mxu1 %v2908_v58 }
  0xe3   :  { %2059 = vmatpush1.bf16.msra.mxu0 %v2903_v53  ;;  %2165 = vmatpush1.bf16.msra.mxu1 %v2906_v59 }
  0xe4   :  { %2060 = vmatprep.subr.bf16.mxu0 %v2911_v60  ;;  %2166 = vmatprep.subr.bf16.mxu1 %v2914_v63 }
  0xe7   :  { %2061 = vmatpush1.bf16.msra.mxu0 %v2909_v1  ;;  %2167 = vmatpush1.bf16.msra.mxu1 %v2912_v56 }
  0xe8   :  { %2062 = vmatprep.subr.bf16.mxu0 %v2917_v2  ;;  %2168 = vmatprep.subr.bf16.mxu1 %v2920_v3 }
  0xeb   :  { %2063 = vmatpush1.bf16.msra.mxu0 %v2915_v4  ;;  %2169 = vmatpush1.bf16.msra.mxu1 %v2918_v54 }
  0xec   :  { %2064 = vmatprep.subr.bf16.mxu0 %v2923_v5  ;;  %2170 = vmatprep.subr.bf16.mxu1 %v2926_v6 }
  0xef   :  { %2065 = vmatpush1.bf16.msra.mxu0 %v2921_v8  ;;  %2171 = vmatpush1.bf16.msra.mxu1 %v2924_v10 }
  0xf0   :  { %2066 = vmatprep.subr.bf16.mxu0 %v2929_v11  ;;  %2172 = vmatprep.subr.bf16.mxu1 %v2932_v12 }
  0xf3   :  { %2067 = vmatpush1.bf16.msra.mxu0 %v2927_v57  ;;  %2173 = vmatpush1.bf16.msra.mxu1 %v2930_v7 }
  0xf4   :  { %2068 = vmatprep.subr.bf16.mxu0 %v2935_v13  ;;  %2174 = vmatprep.subr.bf16.mxu1 %v2938_v15 }
  0xf7   :  { %2069 = vmatpush1.bf16.msra.mxu0 %v2933_v16  ;;  %2175 = vmatpush1.bf16.msra.mxu1 %v2936_v17 }
  0xf8   :  { %2070 = vmatprep.subr.bf16.mxu0 %v2941_v18  ;;  %2176 = vmatprep.subr.bf16.mxu1 %v2944_v21 }
  0xfb   :  { %2071 = vmatpush1.bf16.msra.mxu0 %v2939_v25  ;;  %2177 = vmatpush1.bf16.msra.mxu1 %v2942_v26  ;;  %v2230_v25 = vrot.slane %v2217_v23, %v3439_v44 }
  0xfc   :  { %2072 = vmatprep.subr.bf16.mxu0 %v2947_v29  ;;  %2178 = vmatprep.subr.bf16.mxu1 %v2950_v30  ;;  %v2234_v29 = vrot.slane %v2217_v23, %v3308_v45 }
  0xff   :  { %2073 = vmatpush1.bf16.msra.mxu0 %v2945_v31  ;;  %2179 = vmatpush1.bf16.msra.mxu1 %v2948_v0 }
 0x102   :  { %2075 = vmatmul.mubr.bf16.vlgmr.msra.gmra.mrb[8].mxu0 %v181_v38  ;;  %2181 = vmatmul.mubr.bf16.vlgmr.msra.gmra.mrb[8].mxu1 %v181_v38 }
 0x103   :  { %2084 = vmatprep.mubr.bf16.mxu0 %v186_v41  ;;  %2190 = vmatprep.mubr.bf16.mxu1 %v186_v41 }
 0x10a   :  { %2085 = vmatmul.mubr.bf16.gmra.mrb[12].mxu0 %v185_v46  ;;  %2191 = vmatmul.mubr.bf16.gmra.mrb[12].mxu1 %v185_v46 }
 0x155   :  { %v1043_v50 = vpop.f32.mrb[0].mxu0  ;;  %v1149_v52 = vpop.f32.mrb[0].mxu1 }
 0x156   :  { %v1189_v55 = vmul.f32 %v3989_v51, %v1043_v50  ;;  %v1191_v58 = vmul.f32 %v3992_v49, %v1149_v52  ;;  %v1045_v53 = vpop.f32.mrb[1].mxu0  ;;  %v1151_v59 = vpop.f32.mrb[1].mxu1 }
 0x157   :  { %v1190_v60 = vmul.f32 %v3995_v42, %v1045_v53  ;;  %v1192_v63 = vmul.f32 %v3998_v62, %v1151_v59  ;;  %v1047_v1 = vpop.f32.mrb[2].mxu0  ;;  %v1153_v56 = vpop.f32.mrb[2].mxu1 }
 0x158   :  { %1205 = vst [vmem:[%s4142_s8] sm:$0xff] %v1189_v55  ;;  %1207 = vst [vmem:[%s4142_s8 + $0x10] sm:$0xff] %v1191_v58  ;;  %v1193_v2 = vmul.f32 %v3989_v51, %v1047_v1  ;;  %v1195_v3 = vmul.f32 %v3992_v49, %v1153_v56  ;;  %v1049_v4 = vpop.f32.mrb[3].mxu0  ;;  %v1155_v54 = vpop.f32.mrb[3].mxu1 }
 0x159   :  { %1206 = vst [vmem:[%s4142_s8 + $0x8] sm:$0xff] %v1190_v60  ;;  %1208 = vst [vmem:[%s4142_s8 + $0x18] sm:$0xff] %v1192_v63  ;;  %v1194_v5 = vmul.f32 %v3995_v42, %v1049_v4  ;;  %v1196_v6 = vmul.f32 %v3998_v62, %v1155_v54 }
 0x15a   :  { %1209 = vst [vmem:[%s4142_s8 + $0x20] sm:$0xff] %v1193_v2  ;;  %1211 = vst [vmem:[%s4142_s8 + $0x30] sm:$0xff] %v1195_v3 }
 0x15b   :  { %1210 = vst [vmem:[%s4142_s8 + $0x28] sm:$0xff] %v1194_v5  ;;  %1212 = vst [vmem:[%s4142_s8 + $0x38] sm:$0xff] %v1196_v6 }
 0x15d   :  { %v1053_v8 = vpop.f32.mrb[4].mxu0  ;;  %v1159_v10 = vpop.f32.mrb[4].mxu1 }
 0x15e   :  { %v1197_v11 = vmul.f32 %v3989_v51, %v1053_v8  ;;  %v1199_v12 = vmul.f32 %v3992_v49, %v1159_v10  ;;  %v1055_v57 = vpop.f32.mrb[5].mxu0  ;;  %v1161_v7 = vpop.f32.mrb[5].mxu1 }
 0x15f   :  { %v1198_v13 = vmul.f32 %v3995_v42, %v1055_v57  ;;  %v1200_v15 = vmul.f32 %v3998_v62, %v1161_v7  ;;  %v1057_v16 = vpop.f32.mrb[6].mxu0  ;;  %v1163_v17 = vpop.f32.mrb[6].mxu1 }
 0x160   :  { %1213 = vst [vmem:[%s4142_s8 + $0x40] sm:$0xff] %v1197_v11  ;;  %1215 = vst [vmem:[%s4142_s8 + $0x50] sm:$0xff] %v1199_v12  ;;  %v1201_v18 = vmul.f32 %v3989_v51, %v1057_v16  ;;  %v1203_v19 = vmul.f32 %v3992_v49, %v1163_v17  ;;  %v1059_v20 = vpop.f32.mrb[7].mxu0  ;;  %v1165_v21 = vpop.f32.mrb[7].mxu1 }
 0x161   :  { %1214 = vst [vmem:[%s4142_s8 + $0x48] sm:$0xff] %v1198_v13  ;;  %1216 = vst [vmem:[%s4142_s8 + $0x58] sm:$0xff] %v1200_v15  ;;  %v1202_v22 = vmul.f32 %v3995_v42, %v1059_v20  ;;  %v1204_v14 = vmul.f32 %v3998_v62, %v1165_v21 }
 0x162   :  { %1217 = vst [vmem:[%s4142_s8 + $0x60] sm:$0xff] %v1201_v18  ;;  %1219 = vst [vmem:[%s4142_s8 + $0x70] sm:$0xff] %v1203_v19 }
 0x163   :  { %1218 = vst [vmem:[%s4142_s8 + $0x68] sm:$0xff] %v1202_v22  ;;  %1220 = vst [vmem:[%s4142_s8 + $0x78] sm:$0xff] %v1204_v14 }
 0x1d5   :  { %v2076_v26 = vpop.f32.mrb[8].mxu0  ;;  %v2182_v27 = vpop.f32.mrb[8].mxu1 }
 0x1d6   :  { %v2201_v30 = vmul.f32 %v2076_v26, %v3989_v51  ;;  %v2203_v31 = vmul.f32 %v2182_v27, %v3992_v49  ;;  %v2078_v32 = vpop.f32.mrb[9].mxu0  ;;  %v2184_v33 = vpop.f32.mrb[9].mxu1 }
 0x1d7   :  { %v2202_v0 = vmul.f32 %v2078_v32, %v3995_v42  ;;  %v2204_v34 = vmul.f32 %v2184_v33, %v3998_v62  ;;  %v2080_v35 = vpop.f32.mrb[10].mxu0  ;;  %v2186_v61 = vpop.f32.mrb[10].mxu1 }
 0x1d8   :  { %v2239_v36 = vadd.f32 %v2222_v24, %v2201_v30  ;;  %v2241_v44 = vadd.f32 %v2230_v25, %v2203_v31  ;;  %v2205_v37 = vmul.f32 %v2080_v35, %v3989_v51  ;;  %v2207_v47 = vmul.f32 %v2186_v61, %v3992_v49  ;;  %v2082_v38 = vpop.f32.mrb[11].mxu0  ;;  %v2188_v45 = vpop.f32.mrb[11].mxu1 }
 0x1d9   :  { %v2240_v39 = vadd.f32 %v2226_v28, %v2202_v0  ;;  %v2242_v40 = vadd.f32 %v2234_v29, %v2204_v34  ;;  %v2206_v41 = vmul.f32 %v2082_v38, %v3995_v42  ;;  %v2208_v9 = vmul.f32 %v2188_v45, %v3998_v62 }
 0x1da   :  { %2255 = vst [vmem:[%s4144_s9] sm:$0xff] %v2239_v36  ;;  %2257 = vst [vmem:[%s4144_s9 + $0x10] sm:$0xff] %v2241_v44  ;;  %v2243_v43 = vadd.f32 %v2222_v24, %v2205_v37  ;;  %v2245_v46 = vadd.f32 %v2230_v25, %v2207_v47 }
 0x1db   :  { %2256 = vst [vmem:[%s4144_s9 + $0x8] sm:$0xff] %v2240_v39  ;;  %2258 = vst [vmem:[%s4144_s9 + $0x18] sm:$0xff] %v2242_v40  ;;  %v2244_v48 = vadd.f32 %v2226_v28, %v2206_v41  ;;  %v2246_v50 = vadd.f32 %v2234_v29, %v2208_v9 }
 0x1dc   :  { %2259 = vst [vmem:[%s4144_s9 + $0x20] sm:$0xff] %v2243_v43  ;;  %2261 = vst [vmem:[%s4144_s9 + $0x30] sm:$0xff] %v2245_v46 }
 0x1dd   :  { %2260 = vst [vmem:[%s4144_s9 + $0x28] sm:$0xff] %v2244_v48  ;;  %2262 = vst [vmem:[%s4144_s9 + $0x38] sm:$0xff] %v2246_v50  ;;  %v2086_v52 = vpop.f32.mrb[12].mxu0  ;;  %v2192_v55 = vpop.f32.mrb[12].mxu1 }
 0x1de   :  { %v2209_v58 = vmul.f32 %v2086_v52, %v3989_v51  ;;  %v2211_v53 = vmul.f32 %v2192_v55, %v3992_v49  ;;  %v2088_v59 = vpop.f32.mrb[13].mxu0  ;;  %v2194_v60 = vpop.f32.mrb[13].mxu1 }
 0x1df   :  { %v2210_v63 = vmul.f32 %v2088_v59, %v3995_v42  ;;  %v2212_v1 = vmul.f32 %v2194_v60, %v3998_v62  ;;  %v2090_v56 = vpop.f32.mrb[14].mxu0  ;;  %v2196_v2 = vpop.f32.mrb[14].mxu1 }
 0x1e0   :  { %v2247_v3 = vadd.f32 %v2222_v24, %v2209_v58  ;;  %v2249_v4 = vadd.f32 %v2230_v25, %v2211_v53  ;;  %v2213_v54 = vmul.f32 %v2090_v56, %v3989_v51  ;;  %v2215_v5 = vmul.f32 %v2196_v2, %v3992_v49  ;;  %v2092_v6 = vpop.f32.mrb[15].mxu0  ;;  %v2198_v8 = vpop.f32.mrb[15].mxu1 }
 0x1e1   :  { %v2248_v10 = vadd.f32 %v2226_v28, %v2210_v63  ;;  %v2250_v11 = vadd.f32 %v2234_v29, %v2212_v1  ;;  %v2214_v12 = vmul.f32 %v2092_v6, %v3995_v42  ;;  %v2216_v57 = vmul.f32 %v2198_v8, %v3998_v62 }
 0x1e2   :  { %2263 = vst [vmem:[%s4144_s9 + $0x40] sm:$0xff] %v2247_v3  ;;  %2265 = vst [vmem:[%s4144_s9 + $0x50] sm:$0xff] %v2249_v4  ;;  %v2251_v7 = vadd.f32 %v2222_v24, %v2213_v54  ;;  %v2253_v51 = vadd.f32 %v2230_v25, %v2215_v5 }
 0x1e3   :  { %2264 = vst [vmem:[%s4144_s9 + $0x48] sm:$0xff] %v2248_v10  ;;  %2266 = vst [vmem:[%s4144_s9 + $0x58] sm:$0xff] %v2250_v11  ;;  %v2252_v49 = vadd.f32 %v2226_v28, %v2214_v12  ;;  %v2254_v42 = vadd.f32 %v2234_v29, %v2216_v57 }
 0x1e4   :  { %2267 = vst [vmem:[%s4144_s9 + $0x60] sm:$0xff] %v2251_v7  ;;  %2269 = vst [vmem:[%s4144_s9 + $0x70] sm:$0xff] %v2253_v51 }
 0x1e5   :  { %2268 = vst [vmem:[%s4144_s9 + $0x68] sm:$0xff] %v2252_v49  ;;  %2270 = vst [vmem:[%s4144_s9 + $0x78] sm:$0xff] %v2254_v42 }

</bundles_post_ra>
